<compile_context>
chip_gen: v6e
topology: v6e:2x2x1
jax: 0.10.0
libtpu: 0.0.40
codegen_flags: <defaults>
</compile_context>

<pallas_src>
import jax
import jax.numpy as jnp
from jax.experimental import pallas as pl
from jax.experimental.pallas import tpu as pltpu

N_PERIOD, D_PERIOD = 4, 2
N_STATIONS, D_STATIONS = 162, 3
N_PLATFORMS, D_PLATFORMS = 460, 3
N_CONT = 7
N_FEAT = 12


def baselearner_kernel(xt_ref, yt_ref, tp_ref, ts_ref, tpl_ref,
                       wn_ref, wy_ref, by_ref, out_ref):
    """One batch tile.

    xt_ref : (12, TM)  features on sublanes, batch on lanes
    yt_ref : (1, TM)
    tp_ref : SMEM (4,)    folded period table  (emb_period @ w_period.T)
    ts_ref : (3, 162)     folded station tables (row c = slot c)
    tpl_ref: (1, 460)     folded platform table
    wn_ref : SMEM (7,)    fcn weights
    wy_ref : SMEM (1,)    fcy weight
    by_ref : SMEM (1,)    fcy bias
    out_ref: (1, TM)
    """
    tm = xt_ref.shape[1]
    f32 = jnp.float32

    # ---- x1: period embedding + fc_period, folded -> 4 VPU selects (no MXU).
    idx_p = xt_ref[0:1, :].astype(jnp.int32)                      # (1, TM)
    acc = jnp.zeros((1, tm), f32)
    for r in range(N_PERIOD):
        acc = jnp.where(idx_p == r, tp_ref[r], acc)

    # ---- x2: stations (3 slots), folded tables; one shared iota for all slots.
    iota_s = jax.lax.broadcasted_iota(jnp.int32, (N_STATIONS, tm), 0)
    for c in range(3):
        idx_s = xt_ref[1 + c:2 + c, :].astype(jnp.int32)          # (1, TM)
        oh_s = (iota_s == idx_s).astype(f32)                      # (162, TM)
        acc = acc + jnp.dot(ts_ref[c:c + 1, :], oh_s,
                            preferred_element_type=f32)           # (1, TM)

    # ---- x3: platforms, folded table.
    idx_l = xt_ref[4:5, :].astype(jnp.int32)                      # (1, TM)
    iota_l = jax.lax.broadcasted_iota(jnp.int32, (N_PLATFORMS, tm), 0)
    oh_l = (iota_l == idx_l).astype(f32)                          # (460, TM)
    acc = acc + jnp.dot(tpl_ref[...], oh_l, preferred_element_type=f32)

    # ---- x4: fcn(x[:, 5:]) as lane-dense scalar*vector FMAs (weights in SMEM).
    for k in range(N_CONT):
        acc = acc + wn_ref[k] * xt_ref[5 + k:6 + k, :]

    # ---- x5: fcy(y) = y * w + b (scalars in SMEM).
    acc = acc + yt_ref[...] * wy_ref[0] + by_ref[0]

    out_ref[...] = acc.astype(out_ref.dtype)


def baselearner_forward(params, x, y, *, tm=1024):
    if x.ndim == 1:
        x = x.reshape(1, -1)
    n = x.shape[0]
    y = y.reshape(n, 1)
    n_pad = ((n + tm - 1) // tm) * tm
    grid = (n_pad // tm,)

    # Lane-dense layout: batch on the lane axis.
    xt = jnp.pad(x.astype(jnp.float32).T, ((0, 0), (0, n_pad - n)))  # (12, n_pad)
    yt = jnp.pad(y.astype(jnp.float32).T, ((0, 0), (0, n_pad - n)))  # (1,  n_pad)

    # Fold the bias-free 1-output heads into the embedding tables (trace time).
    tp = (params["emb_period"] @ params["w_period"].T).reshape(N_PERIOD)
    ts = jnp.stack(
        [(params["emb_stations"] @ params["w_stations"][:, 3 * c:3 * c + 3].T)[:, 0]
         for c in range(3)], axis=0)                                  # (3, 162)
    tpl = (params["emb_platforms"] @ params["w_platforms"].T).T       # (1, 460)
    wn = params["w_fcn"].reshape(N_CONT)
    wy = params["w_fcy"].reshape(1)
    by = params["b_fcy"].reshape(1)

    smem = pl.BlockSpec(memory_space=pltpu.MemorySpace.SMEM)

    out = pl.pallas_call(
        baselearner_kernel,
        out_shape=jax.ShapeDtypeStruct((1, n_pad), jnp.float32),
        grid=grid,
        in_specs=[
            pl.BlockSpec((N_FEAT, tm), lambda i: (0, i)),          # x^T batch tile
            pl.BlockSpec((1, tm), lambda i: (0, i)),               # y^T batch tile
            smem,                                                  # folded period (4,)
            pl.BlockSpec((3, N_STATIONS), lambda i: (0, 0)),       # folded stations (resident)
            pl.BlockSpec((1, N_PLATFORMS), lambda i: (0, 0)),      # folded platforms (resident)
            smem,                                                  # fcn weights (7,)
            smem,                                                  # fcy weight (1,)
            smem,                                                  # fcy bias (1,)
        ],
        out_specs=pl.BlockSpec((1, tm), lambda i: (0, i)),         # lane-dense output
        compiler_params=pltpu.CompilerParams(
            dimension_semantics=("parallel",),
            vmem_limit_bytes=32 * 1024 * 1024),
    )(xt, yt,
      tp.astype(jnp.float32), ts.astype(jnp.float32), tpl.astype(jnp.float32),
      wn.astype(jnp.float32), wy.astype(jnp.float32), by.astype(jnp.float32))

    return out[0, :n].reshape(n, 1)


def _kaiming_uniform(key, shape):
    # torch kaiming_uniform_ default: bound = sqrt(6 / fan_in), fan_in = shape[1]
    fan_in = shape[1]
    bound = (6.0 / fan_in) ** 0.5
    return jax.random.uniform(key, shape, jnp.float32, -bound, bound)


def init_params(key):
    ks = jax.random.split(key, 8)
    return {
        # nn.Embedding default init: N(0, 1)
        "emb_period": jax.random.normal(ks[0], (N_PERIOD, D_PERIOD), jnp.float32),
        "emb_stations": jax.random.normal(ks[1], (N_STATIONS, D_STATIONS), jnp.float32),
        "emb_platforms": jax.random.normal(ks[2], (N_PLATFORMS, D_PLATFORMS), jnp.float32),
        # Linear weights (out_features, in_features), kaiming_uniform_
        "w_period": _kaiming_uniform(ks[3], (1, 2)),
        "w_stations": _kaiming_uniform(ks[4], (1, 9)),
        "w_platforms": _kaiming_uniform(ks[5], (1, 3)),
        "w_fcn": _kaiming_uniform(ks[6], (1, 7)),
        "w_fcy": _kaiming_uniform(ks[7], (1, 1)),
        "b_fcy": jnp.zeros((1, 1), jnp.float32),
    }


def _reference_forward(params, x, y):
    """Pure-JAX reference mirroring the PyTorch forward."""
    if x.ndim == 1:
        x = x.reshape(1, -1)
    n = x.shape[0]
    x1 = params["emb_period"][x[:, 0].astype(jnp.int32)].reshape(n, -1) @ params["w_period"].T
    x2 = params["emb_stations"][x[:, 1:4].astype(jnp.int32)].reshape(n, -1) @ params["w_stations"].T
    x3 = params["emb_platforms"][x[:, 4].astype(jnp.int32)].reshape(n, -1) @ params["w_platforms"].T
    x4 = x[:, 5:] @ params["w_fcn"].T
    x5 = y @ params["w_fcy"].T + params["b_fcy"]
    return x1 + x2 + x3 + x4 + x5


if __name__ == "__main__":
    key = jax.random.PRNGKey(0)
    k_params, k_idx0, k_idx1, k_idx4, k_cont, k_y = jax.random.split(key, 6)

    params = init_params(k_params)

    n = 8
    idx_period = jax.random.randint(k_idx0, (n, 1), 0, N_PERIOD).astype(jnp.float32)
    idx_stations = jax.random.randint(k_idx1, (n, 3), 0, N_STATIONS).astype(jnp.float32)
    idx_platform = jax.random.randint(k_idx4, (n, 1), 0, N_PLATFORMS).astype(jnp.float32)
    cont = jax.random.normal(k_cont, (n, N_CONT), jnp.float32)
    x = jnp.concatenate([idx_period, idx_stations, idx_platform, cont], axis=1)  # (8, 12)
    y = jax.random.normal(k_y, (n, 1), jnp.float32)

    out = baselearner_forward(params, x, y)
    out = jax.block_until_ready(out)

    ref = _reference_forward(params, x, y)
    assert out.shape == (n, 1)
    assert jnp.allclose(out, ref, atol=1e-5, rtol=1e-5), (out, ref)

    print("KERNEL_OK")
</pallas_src>

<mosaic_0001>
module attributes {stable_mosaic.version = 11 : i64} {
  func.func @baselearner_kernel(%arg0: i32, %arg1: memref<12x1024xf32, #tpu.memory_space<vmem>>, %arg2: memref<1x1024xf32, #tpu.memory_space<vmem>>, %arg3: memref<4xf32, #tpu.memory_space<smem>>, %arg4: memref<3x162xf32, #tpu.memory_space<vmem>>, %arg5: memref<1x460xf32, #tpu.memory_space<vmem>>, %arg6: memref<7xf32, #tpu.memory_space<smem>>, %arg7: memref<1xf32, #tpu.memory_space<smem>>, %arg8: memref<1xf32, #tpu.memory_space<smem>>, %arg9: memref<1x1024xf32, #tpu.memory_space<vmem>>) attributes {dimension_semantics = [#tpu.dimension_semantics<parallel>], iteration_bounds = array<i64: 1>, scalar_prefetch = 0 : i64, scratch_operands = 0 : i64, tpu.core_type = #tpu.core_type<tc>, window_params = [{transform_indices = @transform_0, window_bounds = array<i64: 12, 1024>}, {transform_indices = @transform_1, window_bounds = array<i64: 1, 1024>}, {transform_indices = @transform_2, window_bounds = array<i64: 4>}, {pipeline_mode = #tpu.pipeline_mode<synchronous>, transform_indices = @transform_3, window_bounds = array<i64: 3, 162>}, {pipeline_mode = #tpu.pipeline_mode<synchronous>, transform_indices = @transform_4, window_bounds = array<i64: 1, 460>}, {transform_indices = @transform_5, window_bounds = array<i64: 7>}, {transform_indices = @transform_6, window_bounds = array<i64: 1>}, {transform_indices = @transform_7, window_bounds = array<i64: 1>}, {transform_indices = @transform_8, window_bounds = array<i64: 1, 1024>}]} {
    %c0 = arith.constant 0 : index
    %c0_0 = arith.constant 0 : index
    %0 = vector.load %arg1[%c0, %c0_0] : memref<12x1024xf32, #tpu.memory_space<vmem>>, vector<1x1024xf32>
    %1 = arith.fptosi %0 : vector<1x1024xf32> to vector<1x1024xi32>
    %cst = arith.constant 0.000000e+00 : f32
    %2 = vector.broadcast %cst : f32 to vector<1x1024xf32>
    %c0_i32 = arith.constant 0 : i32
    %3 = vector.broadcast %c0_i32 : i32 to vector<1x1024xi32>
    %4 = arith.cmpi eq, %1, %3 : vector<1x1024xi32>
    %c0_1 = arith.constant 0 : index
    %5 = memref.load %arg3[%c0_1] : memref<4xf32, #tpu.memory_space<smem>>
    %6 = vector.broadcast %5 : f32 to vector<1x1024xf32>
    %7 = arith.select %4, %6, %2 : vector<1x1024xi1>, vector<1x1024xf32>
    %c1_i32 = arith.constant 1 : i32
    %8 = vector.broadcast %c1_i32 : i32 to vector<1x1024xi32>
    %9 = arith.cmpi eq, %1, %8 : vector<1x1024xi32>
    %c1 = arith.constant 1 : index
    %10 = memref.load %arg3[%c1] : memref<4xf32, #tpu.memory_space<smem>>
    %11 = vector.broadcast %10 : f32 to vector<1x1024xf32>
    %12 = arith.select %9, %11, %7 : vector<1x1024xi1>, vector<1x1024xf32>
    %c2_i32 = arith.constant 2 : i32
    %13 = vector.broadcast %c2_i32 : i32 to vector<1x1024xi32>
    %14 = arith.cmpi eq, %1, %13 : vector<1x1024xi32>
    %c2 = arith.constant 2 : index
    %15 = memref.load %arg3[%c2] : memref<4xf32, #tpu.memory_space<smem>>
    %16 = vector.broadcast %15 : f32 to vector<1x1024xf32>
    %17 = arith.select %14, %16, %12 : vector<1x1024xi1>, vector<1x1024xf32>
    %c3_i32 = arith.constant 3 : i32
    %18 = vector.broadcast %c3_i32 : i32 to vector<1x1024xi32>
    %19 = arith.cmpi eq, %1, %18 : vector<1x1024xi32>
    %c3 = arith.constant 3 : index
    %20 = memref.load %arg3[%c3] : memref<4xf32, #tpu.memory_space<smem>>
    %21 = vector.broadcast %20 : f32 to vector<1x1024xf32>
    %22 = arith.select %19, %21, %17 : vector<1x1024xi1>, vector<1x1024xf32>
    %23 = tpu.iota {dimensions = array<i32: 0>} : vector<162x1024xi32>
    %c1_2 = arith.constant 1 : index
    %c0_3 = arith.constant 0 : index
    %24 = vector.load %arg1[%c1_2, %c0_3] : memref<12x1024xf32, #tpu.memory_space<vmem>>, vector<1x1024xf32>
    %25 = arith.fptosi %24 : vector<1x1024xf32> to vector<1x1024xi32>
    %26 = vector.broadcast %25 : vector<1x1024xi32> to vector<162x1024xi32>
    %27 = arith.cmpi eq, %23, %26 : vector<162x1024xi32>
    %28 = arith.extui %27 : vector<162x1024xi1> to vector<162x1024xi32>
    %29 = arith.sitofp %28 : vector<162x1024xi32> to vector<162x1024xf32>
    %c0_4 = arith.constant 0 : index
    %c0_5 = arith.constant 0 : index
    %30 = vector.load %arg4[%c0_4, %c0_5] : memref<3x162xf32, #tpu.memory_space<vmem>>, vector<1x162xf32>
    %cst_6 = arith.constant dense<0.000000e+00> : vector<1x1024xf32>
    %31 = tpu.matmul %30, %29, %cst_6 {dimension_numbers = #tpu.dot_dimension_numbers<[1], [0], [0], [1], [0, 0, 1, 1], [], []>} : vector<1x162xf32>, vector<162x1024xf32>, vector<1x1024xf32> -> vector<1x1024xf32>
    %32 = arith.addf %22, %31 : vector<1x1024xf32>
    %c2_7 = arith.constant 2 : index
    %c0_8 = arith.constant 0 : index
    %33 = vector.load %arg1[%c2_7, %c0_8] : memref<12x1024xf32, #tpu.memory_space<vmem>>, vector<1x1024xf32>
    %34 = arith.fptosi %33 : vector<1x1024xf32> to vector<1x1024xi32>
    %35 = vector.broadcast %34 : vector<1x1024xi32> to vector<162x1024xi32>
    %36 = arith.cmpi eq, %23, %35 : vector<162x1024xi32>
    %37 = arith.extui %36 : vector<162x1024xi1> to vector<162x1024xi32>
    %38 = arith.sitofp %37 : vector<162x1024xi32> to vector<162x1024xf32>
    %c1_9 = arith.constant 1 : index
    %c0_10 = arith.constant 0 : index
    %39 = vector.load %arg4[%c1_9, %c0_10] : memref<3x162xf32, #tpu.memory_space<vmem>>, vector<1x162xf32>
    %cst_11 = arith.constant dense<0.000000e+00> : vector<1x1024xf32>
    %40 = tpu.matmul %39, %38, %cst_11 {dimension_numbers = #tpu.dot_dimension_numbers<[1], [0], [0], [1], [0, 0, 1, 1], [], []>} : vector<1x162xf32>, vector<162x1024xf32>, vector<1x1024xf32> -> vector<1x1024xf32>
    %41 = arith.addf %32, %40 : vector<1x1024xf32>
    %c3_12 = arith.constant 3 : index
    %c0_13 = arith.constant 0 : index
    %42 = vector.load %arg1[%c3_12, %c0_13] : memref<12x1024xf32, #tpu.memory_space<vmem>>, vector<1x1024xf32>
    %43 = arith.fptosi %42 : vector<1x1024xf32> to vector<1x1024xi32>
    %44 = vector.broadcast %43 : vector<1x1024xi32> to vector<162x1024xi32>
    %45 = arith.cmpi eq, %23, %44 : vector<162x1024xi32>
    %46 = arith.extui %45 : vector<162x1024xi1> to vector<162x1024xi32>
    %47 = arith.sitofp %46 : vector<162x1024xi32> to vector<162x1024xf32>
    %c2_14 = arith.constant 2 : index
    %c0_15 = arith.constant 0 : index
    %48 = vector.load %arg4[%c2_14, %c0_15] : memref<3x162xf32, #tpu.memory_space<vmem>>, vector<1x162xf32>
    %cst_16 = arith.constant dense<0.000000e+00> : vector<1x1024xf32>
    %49 = tpu.matmul %48, %47, %cst_16 {dimension_numbers = #tpu.dot_dimension_numbers<[1], [0], [0], [1], [0, 0, 1, 1], [], []>} : vector<1x162xf32>, vector<162x1024xf32>, vector<1x1024xf32> -> vector<1x1024xf32>
    %50 = arith.addf %41, %49 : vector<1x1024xf32>
    %c4 = arith.constant 4 : index
    %c0_17 = arith.constant 0 : index
    %51 = vector.load %arg1[%c4, %c0_17] : memref<12x1024xf32, #tpu.memory_space<vmem>>, vector<1x1024xf32>
    %52 = arith.fptosi %51 : vector<1x1024xf32> to vector<1x1024xi32>
    %53 = tpu.iota {dimensions = array<i32: 0>} : vector<460x1024xi32>
    %54 = vector.broadcast %52 : vector<1x1024xi32> to vector<460x1024xi32>
    %55 = arith.cmpi eq, %53, %54 : vector<460x1024xi32>
    %56 = arith.extui %55 : vector<460x1024xi1> to vector<460x1024xi32>
    %57 = arith.sitofp %56 : vector<460x1024xi32> to vector<460x1024xf32>
    %c0_18 = arith.constant 0 : index
    %c0_19 = arith.constant 0 : index
    %58 = vector.load %arg5[%c0_18, %c0_19] : memref<1x460xf32, #tpu.memory_space<vmem>>, vector<1x460xf32>
    %cst_20 = arith.constant dense<0.000000e+00> : vector<1x1024xf32>
    %59 = tpu.matmul %58, %57, %cst_20 {dimension_numbers = #tpu.dot_dimension_numbers<[1], [0], [0], [1], [0, 0, 1, 1], [], []>} : vector<1x460xf32>, vector<460x1024xf32>, vector<1x1024xf32> -> vector<1x1024xf32>
    %60 = arith.addf %50, %59 : vector<1x1024xf32>
    %c0_21 = arith.constant 0 : index
    %61 = memref.load %arg6[%c0_21] : memref<7xf32, #tpu.memory_space<smem>>
    %c5 = arith.constant 5 : index
    %c0_22 = arith.constant 0 : index
    %62 = vector.load %arg1[%c5, %c0_22] : memref<12x1024xf32, #tpu.memory_space<vmem>>, vector<1x1024xf32>
    %63 = vector.broadcast %61 : f32 to vector<1x1024xf32>
    %64 = arith.mulf %63, %62 : vector<1x1024xf32>
    %65 = arith.addf %60, %64 : vector<1x1024xf32>
    %c1_23 = arith.constant 1 : index
    %66 = memref.load %arg6[%c1_23] : memref<7xf32, #tpu.memory_space<smem>>
    %c6 = arith.constant 6 : index
    %c0_24 = arith.constant 0 : index
    %67 = vector.load %arg1[%c6, %c0_24] : memref<12x1024xf32, #tpu.memory_space<vmem>>, vector<1x1024xf32>
    %68 = vector.broadcast %66 : f32 to vector<1x1024xf32>
    %69 = arith.mulf %68, %67 : vector<1x1024xf32>
    %70 = arith.addf %65, %69 : vector<1x1024xf32>
    %c2_25 = arith.constant 2 : index
    %71 = memref.load %arg6[%c2_25] : memref<7xf32, #tpu.memory_space<smem>>
    %c7 = arith.constant 7 : index
    %c0_26 = arith.constant 0 : index
    %72 = vector.load %arg1[%c7, %c0_26] : memref<12x1024xf32, #tpu.memory_space<vmem>>, vector<1x1024xf32>
    %73 = vector.broadcast %71 : f32 to vector<1x1024xf32>
    %74 = arith.mulf %73, %72 : vector<1x1024xf32>
    %75 = arith.addf %70, %74 : vector<1x1024xf32>
    %c3_27 = arith.constant 3 : index
    %76 = memref.load %arg6[%c3_27] : memref<7xf32, #tpu.memory_space<smem>>
    %c8 = arith.constant 8 : index
    %c0_28 = arith.constant 0 : index
    %77 = vector.load %arg1[%c8, %c0_28] : memref<12x1024xf32, #tpu.memory_space<vmem>>, vector<1x1024xf32>
    %78 = vector.broadcast %76 : f32 to vector<1x1024xf32>
    %79 = arith.mulf %78, %77 : vector<1x1024xf32>
    %80 = arith.addf %75, %79 : vector<1x1024xf32>
    %c4_29 = arith.constant 4 : index
    %81 = memref.load %arg6[%c4_29] : memref<7xf32, #tpu.memory_space<smem>>
    %c9 = arith.constant 9 : index
    %c0_30 = arith.constant 0 : index
    %82 = vector.load %arg1[%c9, %c0_30] : memref<12x1024xf32, #tpu.memory_space<vmem>>, vector<1x1024xf32>
    %83 = vector.broadcast %81 : f32 to vector<1x1024xf32>
    %84 = arith.mulf %83, %82 : vector<1x1024xf32>
    %85 = arith.addf %80, %84 : vector<1x1024xf32>
    %c5_31 = arith.constant 5 : index
    %86 = memref.load %arg6[%c5_31] : memref<7xf32, #tpu.memory_space<smem>>
    %c10 = arith.constant 10 : index
    %c0_32 = arith.constant 0 : index
    %87 = vector.load %arg1[%c10, %c0_32] : memref<12x1024xf32, #tpu.memory_space<vmem>>, vector<1x1024xf32>
    %88 = vector.broadcast %86 : f32 to vector<1x1024xf32>
    %89 = arith.mulf %88, %87 : vector<1x1024xf32>
    %90 = arith.addf %85, %89 : vector<1x1024xf32>
    %c6_33 = arith.constant 6 : index
    %91 = memref.load %arg6[%c6_33] : memref<7xf32, #tpu.memory_space<smem>>
    %c11 = arith.constant 11 : index
    %c0_34 = arith.constant 0 : index
    %92 = vector.load %arg1[%c11, %c0_34] : memref<12x1024xf32, #tpu.memory_space<vmem>>, vector<1x1024xf32>
    %93 = vector.broadcast %91 : f32 to vector<1x1024xf32>
    %94 = arith.mulf %93, %92 : vector<1x1024xf32>
    %95 = arith.addf %90, %94 : vector<1x1024xf32>
    %c0_35 = arith.constant 0 : index
    %c0_36 = arith.constant 0 : index
    %96 = vector.load %arg2[%c0_35, %c0_36] : memref<1x1024xf32, #tpu.memory_space<vmem>>, vector<1x1024xf32>
    %c0_37 = arith.constant 0 : index
    %97 = memref.load %arg7[%c0_37] : memref<1xf32, #tpu.memory_space<smem>>
    %98 = vector.broadcast %97 : f32 to vector<1x1024xf32>
    %99 = arith.mulf %96, %98 : vector<1x1024xf32>
    %100 = arith.addf %95, %99 : vector<1x1024xf32>
    %c0_38 = arith.constant 0 : index
    %101 = memref.load %arg8[%c0_38] : memref<1xf32, #tpu.memory_space<smem>>
    %102 = vector.broadcast %101 : f32 to vector<1x1024xf32>
    %103 = arith.addf %100, %102 : vector<1x1024xf32>
    %c0_39 = arith.constant 0 : index
    %c0_40 = arith.constant 0 : index
    %104 = vector.load %arg9[%c0_39, %c0_40] : memref<1x1024xf32, #tpu.memory_space<vmem>>, vector<1x1024xf32>
    tpu.vector_store %arg9[%c0_39, %c0_40], %103 {strides = array<i32>} : memref<1x1024xf32, #tpu.memory_space<vmem>>, vector<1x1024xf32>,
    return
  }
  func.func @transform_0(%arg0: i32) -> (i32, i32) {
    %c0_i32 = arith.constant 0 : i32
    %c0_i32_0 = arith.constant 0 : i32
    return %c0_i32, %arg0 : i32, i32
  }
  func.func @transform_1(%arg0: i32) -> (i32, i32) {
    %c0_i32 = arith.constant 0 : i32
    %c0_i32_0 = arith.constant 0 : i32
    return %c0_i32, %arg0 : i32, i32
  }
  func.func @transform_2(%arg0: i32) -> i32 {
    %c0_i32 = arith.constant 0 : i32
    %c0_i32_0 = arith.constant 0 : i32
    return %c0_i32 : i32
  }
  func.func @transform_3(%arg0: i32) -> (i32, i32) {
    %c0_i32 = arith.constant 0 : i32
    %c0_i32_0 = arith.constant 0 : i32
    %c0_i32_1 = arith.constant 0 : i32
    return %c0_i32, %c0_i32_0 : i32, i32
  }
  func.func @transform_4(%arg0: i32) -> (i32, i32) {
    %c0_i32 = arith.constant 0 : i32
    %c0_i32_0 = arith.constant 0 : i32
    %c0_i32_1 = arith.constant 0 : i32
    return %c0_i32, %c0_i32_0 : i32, i32
  }
  func.func @transform_5(%arg0: i32) -> i32 {
    %c0_i32 = arith.constant 0 : i32
    %c0_i32_0 = arith.constant 0 : i32
    return %c0_i32 : i32
  }
  func.func @transform_6(%arg0: i32) -> i32 {
    %c0_i32 = arith.constant 0 : i32
    %c0_i32_0 = arith.constant 0 : i32
    return %c0_i32 : i32
  }
  func.func @transform_7(%arg0: i32) -> i32 {
    %c0_i32 = arith.constant 0 : i32
    %c0_i32_0 = arith.constant 0 : i32
    return %c0_i32 : i32
  }
  func.func @transform_8(%arg0: i32) -> (i32, i32) {
    %c0_i32 = arith.constant 0 : i32
    %c0_i32_0 = arith.constant 0 : i32
    return %c0_i32, %arg0 : i32, i32
  }
}

</mosaic_0001>

<bundles_post_ra>
// kernel: tpu_custom_call.1
= control target key start
LH: loop header
LB: loop body
LE: loop exit
PB: predicated region body
PF: predicated region fallthrough
CT: control target
= control target key end

     0   :  { %15 = vsyncpa [#allocation5], 0  ;;  %s10887_s0 = inlined_call_operand.hbm [shape: f32[12,1024], index: 0, kind: input, shape index: {}]   ;;  %s10888_s1 = inlined_call_operand.hbm [shape: f32[1,1024], index: 1, kind: input, shape index: {}]   ;;  %s10889_s2 = inlined_call_operand.vmem [shape: f32[4], index: 2, kind: input, shape index: {}]   ;;  %s10890_s3 = inlined_call_operand.vmem [shape: f32[3,162], index: 3, kind: input, shape index: {}]   ;;  %s10891_s4 = inlined_call_operand.hbm [shape: f32[1,460], index: 4, kind: input, shape index: {}]   ;;  %s10892_s5 = inlined_call_operand.vmem [shape: f32[7], index: 5, kind: input, shape index: {}]   ;;  %s10893_s6 = inlined_call_operand.<no memory space> [shape: f32[1], index: 6, kind: input, shape index: {}]   ;;  %s10894_s7 = inlined_call_operand.<no memory space> [shape: f32[1], index: 7, kind: input, shape index: {}]   ;;  %s10895_s8 = inlined_call_operand.hbm [shape: f32[1,1024], index: 8, kind: output, shape index: {}]  }
   0x1   :  { %16 = vsyncpa [#allocation9], 0 }
   0x2   :  { %17 = vsyncpa [#allocation7], 0 }
   0x3   :  { %18 = vsyncpa [#allocation13], 0 }
   0x4   :  { %19 = vsyncpa [#allocation6], 0  ;;  %s7228_s27 = smov [#allocation8]   ;;  %s7229_s29 = smov [#allocation4]  }
   0x5   :  { %s38_s28 = sshll.u32 %s7228_s27, 4  ;;  %s25_s30 = sshll.u32 %s7229_s29, 4  ;;  %s39_s28 = int_to_ptr.vmem [resolvable:$true] %s38_s28  ;;  %s26_s30 = int_to_ptr.vmem [resolvable:$true] %s25_s30 }
   0x6   :  { %s7120_s9 = scalar_lea.vmem %s39_s28, 128  ;;  %p7125_p1 = scmp.lt.s32.totalorder %s39_s28, %s39_s28 }
   0x7   :  { %p7121_p0 = scmp.ne.s32.totalorder %s39_s28, %s7120_s9  ;;  %p7126_p2 = scmp.lt.s32.totalorder %s7120_s9, %s7120_s9 }
   0x9   :  { %p7127_p3 = por %p7126_p2, %p7125_p1 }
   0xb   :  { %p7128_p4 = pnand %p7127_p3, %p7121_p0 }
   0xd   :  { %7131 = shalt.err (!%p7128_p4)
}
   0xe   :  { %41 = dma.hbm_to_vmem [thread:$0]  %s10888_s1, 128, %s39_s28, [#allocation9]  }
   0xf   :  { %s7140_s12 = scalar_lea.vmem %s26_s30, 2048  ;;  %p7145_p6 = scmp.lt.s32.totalorder %s26_s30, %s26_s30 }
  0x10   :  { %p7141_p5 = scmp.ne.s32.totalorder %s26_s30, %s7140_s12  ;;  %p7146_p7 = scmp.lt.s32.totalorder %s7140_s12, %s7140_s12 }
  0x12   :  { %p7147_p8 = por %p7146_p7, %p7145_p6 }
  0x14   :  { %p7148_p9 = pnand %p7147_p8, %p7141_p5 }
  0x16   :  { %7151 = shalt.err (!%p7148_p9)
}
  0x17   :  { %s7230_s13 = smov 1024   ;;  %s7231_s14 = smov 64  }
  0x18   :  { %31 = dma.hbm_to_vmem [thread:$0]  %s10887_s0, 2048, %s26_s30, [#allocation5], %s7230_s13, %s7230_s13, %s7231_s14  }
  0x19   :  { %s48_s19 = sshll.u32 %s10889_s2, 4  ;;  %s49_s19 = int_to_ptr.vmem [resolvable:$true] %s48_s19 }
  0x1a   :  { %s7152_s20 = scalar_lea.vmem %s49_s19, 16  ;;  %p7157_p11 = scmp.lt.s32.totalorder %s49_s19, %s49_s19 }
  0x1b   :  { %p7153_p10 = scmp.ne.s32.totalorder %s49_s19, %s7152_s20  ;;  %p7158_p12 = scmp.lt.s32.totalorder %s7152_s20, %s7152_s20 }
  0x1d   :  { %p7159_p13 = por %p7158_p12, %p7157_p11 }
  0x1f   :  { %p7160_p0 = pnand %p7159_p13, %p7153_p10 }
  0x21   :  { %7163 = shalt.err (!%p7160_p0)
}
  0x22   :  { %s7232_s1 = smov [#allocation10]   ;;  %s7233_s21 = smov [#allocation11]  }
  0x23   :  { %51 = dma.vmem_to_smem %s49_s19, 16, %s7232_s1, [#allocation7]  }
  0x24   :  { %s60_s22 = sshll.u32 %s7233_s21, 4  ;;  %s70_s0 = sshll.u32 %s10892_s5, 4  ;;  %s61_s22 = int_to_ptr.vmem [resolvable:$true] %s60_s22  ;;  %s71_s0 = int_to_ptr.vmem [resolvable:$true] %s70_s0 }
  0x25   :  { %s7172_s25 = scalar_lea.vmem %s61_s22, 64  ;;  %p7177_p2 = scmp.lt.s32.totalorder %s61_s22, %s61_s22 }
  0x26   :  { %p7173_p1 = scmp.ne.s32.totalorder %s61_s22, %s7172_s25  ;;  %p7178_p3 = scmp.lt.s32.totalorder %s7172_s25, %s7172_s25 }
  0x28   :  { %p7179_p4 = por %p7178_p3, %p7177_p2 }
  0x2a   :  { %p7180_p5 = pnand %p7179_p4, %p7173_p1 }
  0x2c   :  { %7183 = shalt.err (!%p7180_p5)
}
  0x2d   :  { %63 = dma.hbm_to_vmem [thread:$0]  %s10891_s4, 64, %s61_s22, [#allocation9]  }
  0x2e   :  { %s7184_s27 = scalar_lea.vmem %s71_s0, 16  ;;  %p7189_p7 = scmp.lt.s32.totalorder %s71_s0, %s71_s0 }
  0x2f   :  { %p7185_p6 = scmp.ne.s32.totalorder %s71_s0, %s7184_s27  ;;  %p7190_p8 = scmp.lt.s32.totalorder %s7184_s27, %s7184_s27 }
  0x31   :  { %p7191_p9 = por %p7190_p8, %p7189_p7 }
  0x33   :  { %p7192_p10 = pnand %p7191_p9, %p7185_p6 }
  0x35   :  { %7195 = shalt.err (!%p7192_p10)
}
  0x36   :  { %s7234_s5 = smov [#allocation12]  }
  0x37   :  { %73 = dma.vmem_to_smem %s71_s0, 16, %s7234_s5, [#allocation13]  }
  0x38   :  { %7216 = dma.done.wait [#allocation5], 2048  }
  0x39   :  { %7217 = vsyncadd [#allocation5], 4294965248 }
  0x3a   :  { %7218 = dma.done.wait [#allocation9], 128  }
  0x3b   :  { %7219 = vsyncadd [#allocation9], 4294967168 }
  0x3c   :  { %7220 = dma.done.wait [#allocation7], 16  }
  0x3d   :  { %7221 = vsyncadd [#allocation7], 4294967280 }
  0x3e   :  { %7222 = dma.done.wait [#allocation9], 64  }
  0x3f   :  { %7223 = vsyncadd [#allocation9], 4294967232 }
  0x40   :  { %7224 = dma.done.wait [#allocation13], 16  }
  0x41   :  { %7225 = vsyncadd [#allocation13], 4294967280 }
  0x42   :  { %93 = sfence }
  0x43   :  { %v114_v0 = vlaneseq  ;;  %v137_v1 = vld [vmem:[#allocation4 + $0x1] ss:$8 sm:$0xf]  ;;  %v7235_v18 = vmov 1.0   ;;  %v10896_v33 = vmov 0.0   ;;  %s10804_s11 = sld [smem:[#allocation10 + $0x1]] }
  0x44   :  { %v138_v2 = vld [vmem:[#allocation4 + $0x1] ss:$8 sm:$0xf0]  ;;  %v677_v43 = vld [vmem:[%s10890_s3] ss:$4 sm:$0x3] }
  0x45   :  { %v139_v3 = vor.u32 %v138_v2, %v137_v1  ;;  %v7299_v4 = vshrl.u32 %v114_v0, 7  ;;  %v1060_v52 = vld [vmem:[#allocation4 + $0x2] ss:$8 sm:$0xf]  ;;  %s10808_s12 = sld [smem:[#allocation10 + $0x2]]  ;;  %s7238_s24 = smov [#allocation14]  }
  0x46   :  { %v1061_v53 = vld [vmem:[#allocation4 + $0x2] ss:$8 sm:$0xf0]  ;;  %s10818_s13 = sld [smem:[#allocation10 + $0x3]]  ;;  %s5116_s0 = sshll.u32 %s7238_s24, 4  ;;  %s5117_s0 = int_to_ptr.vmem [resolvable:$true] %s5116_s0 }
  0x47   :  { %v7093_v5 = vtrunc.f32 %v139_v3  ;;  %v7302_v6 = vsub.s32 1, %v7299_v4  ;;  %v7305_v7 = vsub.s32 3, %v7299_v4  ;;  %v7308_v8 = vsub.s32 0, %v7299_v4  ;;  %s10852_s14 = sld [smem:[#allocation12]]  ;;  %s7196_s25 = scalar_lea.vmem %s5117_s0, 128 }
  0x48   :  { %v7311_v9 = vadd.s32 120, %v7299_v4  ;;  %v7316_v11 = vsub.s32 2, %v7299_v4  ;;  %v7331_v15 = vadd.s32 112, %v7299_v4  ;;  %v7338_v17 = vadd.s32 104, %v7299_v4  ;;  %s10856_s15 = sld [smem:[#allocation12 + $0x1]]  ;;  %p7197_p11 = scmp.ne.s32.totalorder %s5117_s0, %s7196_s25 }
  0x49   :  { %v7313_v10 = vcvt.f32.s32 %v7093_v5  ;;  %v7351_v19 = vadd.s32 96, %v7299_v4  ;;  %v7360_v20 = vadd.s32 88, %v7299_v4  ;;  %v7379_v21 = vadd.s32 80, %v7299_v4  ;;  %s10862_s16 = sld [smem:[#allocation12 + $0x2]]  ;;  %p7201_p12 = scmp.lt.s32.totalorder %s5117_s0, %s5117_s0 }
  0x4a   :  { %v7398_v22 = vadd.s32 72, %v7299_v4  ;;  %v7413_v23 = vadd.s32 64, %v7299_v4  ;;  %v7428_v24 = vadd.s32 56, %v7299_v4  ;;  %v7443_v25 = vadd.s32 48, %v7299_v4  ;;  %s10867_s17 = sld [smem:[#allocation12 + $0x3]]  ;;  %p7202_p13 = scmp.lt.s32.totalorder %s7196_s25, %s7196_s25 }
  0x4b   :  { %v7320_v12 = vrot.slane %v7313_v10, %v7302_v6  ;;  %v7324_v13 = vrot.slane %v7313_v10, %v7305_v7  ;;  %v7328_v14 = vrot.slane %v7313_v10, %v7308_v8  ;;  %v7335_v16 = vrot.slane %v7313_v10, %v7316_v11  ;;  %s10870_s18 = sld [smem:[#allocation12 + $0x4]] }
  0x4c   :  { %v7458_v26 = vadd.s32 40, %v7299_v4  ;;  %v7473_v27 = vadd.s32 32, %v7299_v4  ;;  %v7488_v28 = vadd.s32 24, %v7299_v4  ;;  %v7503_v29 = vadd.s32 16, %v7299_v4  ;;  %s7089_s19 = sld [smem:[#allocation12 + $0x5]]  ;;  %p7203_p0 = por %p7202_p13, %p7201_p12 }
  0x4d   :  { %vm294_vm0 = vcmp.eq.s32.totalorder %v7311_v9, %v7320_v12  ;;  %vm296_vm1 = vcmp.eq.s32.totalorder %v7311_v9, %v7324_v13  ;;  %vm293_vm2 = vcmp.eq.s32.totalorder %v7311_v9, %v7328_v14  ;;  %vm295_vm3 = vcmp.eq.s32.totalorder %v7311_v9, %v7335_v16  ;;  %s7090_s20 = sld [smem:[#allocation12 + $0x6]] }
  0x4e   :  { %5299 = vmatprep.subr.msk.mxu0 %vm294_vm0, %v7235_v18  ;;  %5342 = vmatprep.subr.msk.mxu1 %vm296_vm1, %v7235_v18  ;;  %vm286_vm4 = vcmp.eq.s32.totalorder %v7331_v15, %v7320_v12  ;;  %vm288_vm5 = vcmp.eq.s32.totalorder %v7331_v15, %v7324_v13  ;;  %vm285_vm6 = vcmp.eq.s32.totalorder %v7331_v15, %v7328_v14  ;;  %v7512_v30 = vadd.s32 8, %v7299_v4  ;;  %p7204_p1 = pnand %p7203_p0, %p7197_p11 }
  0x4f   :  { %5300 = vmatpush1.msk.msra.mxu0 %vm293_vm2, %v7235_v18  ;;  %5343 = vmatpush1.msk.msra.mxu1 %vm295_vm3, %v7235_v18  ;;  %vm287_vm7 = vcmp.eq.s32.totalorder %v7331_v15, %v7335_v16  ;;  %vm278_vm8 = vcmp.eq.s32.totalorder %v7338_v17, %v7320_v12  ;;  %vm280_vm9 = vcmp.eq.s32.totalorder %v7338_v17, %v7324_v13  ;;  %v7527_v31 = vadd.s32 160, %v7299_v4 }
  0x50   :  { %5301 = vmatprep.subr.msk.mxu0 %vm286_vm4, %v7235_v18  ;;  %5344 = vmatprep.subr.msk.mxu1 %vm288_vm5, %v7235_v18  ;;  %vm277_vm10 = vcmp.eq.s32.totalorder %v7338_v17, %v7328_v14  ;;  %vm279_vm11 = vcmp.eq.s32.totalorder %v7338_v17, %v7335_v16  ;;  %vm270_vm12 = vcmp.eq.s32.totalorder %v7351_v19, %v7320_v12  ;;  %v7568_v32 = vadd.s32 152, %v7299_v4 }
  0x51   :  { %5302 = vmatpush1.msk.msra.mxu0 %vm285_vm6, %v7235_v18  ;;  %5345 = vmatpush1.msk.msra.mxu1 %vm287_vm7, %v7235_v18  ;;  %vm272_vm13 = vcmp.eq.s32.totalorder %v7351_v19, %v7324_v13  ;;  %vm269_vm14 = vcmp.eq.s32.totalorder %v7351_v19, %v7328_v14  ;;  %vm271_vm15 = vcmp.eq.s32.totalorder %v7351_v19, %v7335_v16  ;;  %v7593_v36 = vadd.s32 144, %v7299_v4 }
  0x52   :  { %5303 = vmatprep.subr.msk.mxu0 %vm278_vm8, %v7235_v18  ;;  %5346 = vmatprep.subr.msk.mxu1 %vm280_vm9, %v7235_v18  ;;  %vm262_vm0 = vcmp.eq.s32.totalorder %v7360_v20, %v7320_v12  ;;  %vm264_vm1 = vcmp.eq.s32.totalorder %v7360_v20, %v7324_v13  ;;  %vm261_vm2 = vcmp.eq.s32.totalorder %v7360_v20, %v7328_v14  ;;  %v7618_v39 = vadd.s32 136, %v7299_v4 }
  0x53   :  { %5304 = vmatpush1.msk.msra.mxu0 %vm277_vm10, %v7235_v18  ;;  %5347 = vmatpush1.msk.msra.mxu1 %vm279_vm11, %v7235_v18  ;;  %vm263_vm3 = vcmp.eq.s32.totalorder %v7360_v20, %v7335_v16  ;;  %vm254_vm4 = vcmp.eq.s32.totalorder %v7379_v21, %v7320_v12  ;;  %vm256_vm5 = vcmp.eq.s32.totalorder %v7379_v21, %v7324_v13  ;;  %v7627_v40 = vadd.s32 128, %v7299_v4 }
  0x54   :  { %5305 = vmatprep.subr.msk.mxu0 %vm270_vm12, %v7235_v18  ;;  %5348 = vmatprep.subr.msk.mxu1 %vm272_vm13, %v7235_v18  ;;  %vm253_vm6 = vcmp.eq.s32.totalorder %v7379_v21, %v7328_v14  ;;  %vm255_vm7 = vcmp.eq.s32.totalorder %v7379_v21, %v7335_v16  ;;  %vm246_vm8 = vcmp.eq.s32.totalorder %v7398_v22, %v7320_v12  ;;  %v7636_v41 = vsub.s32 5, %v7299_v4 }
  0x55   :  { %5306 = vmatpush1.msk.msra.mxu0 %vm269_vm14, %v7235_v18  ;;  %5349 = vmatpush1.msk.msra.mxu1 %vm271_vm15, %v7235_v18  ;;  %vm248_vm9 = vcmp.eq.s32.totalorder %v7398_v22, %v7324_v13  ;;  %vm245_vm10 = vcmp.eq.s32.totalorder %v7398_v22, %v7328_v14  ;;  %vm247_vm11 = vcmp.eq.s32.totalorder %v7398_v22, %v7335_v16  ;;  %v7639_v42 = vsub.s32 7, %v7299_v4 }
  0x56   :  { %5307 = vmatprep.subr.msk.mxu0 %vm262_vm0, %v7235_v18  ;;  %5350 = vmatprep.subr.msk.mxu1 %vm264_vm1, %v7235_v18  ;;  %vm238_vm12 = vcmp.eq.s32.totalorder %v7413_v23, %v7320_v12  ;;  %vm240_vm13 = vcmp.eq.s32.totalorder %v7413_v23, %v7324_v13  ;;  %vm237_vm14 = vcmp.eq.s32.totalorder %v7413_v23, %v7328_v14  ;;  %v7651_v44 = vsub.s32 4, %v7299_v4 }
  0x57   :  { %5308 = vmatpush1.msk.msra.mxu0 %vm261_vm2, %v7235_v18  ;;  %5351 = vmatpush1.msk.msra.mxu1 %vm263_vm3, %v7235_v18  ;;  %vm239_vm15 = vcmp.eq.s32.totalorder %v7413_v23, %v7335_v16  ;;  %vm230_vm0 = vcmp.eq.s32.totalorder %v7428_v24, %v7320_v12  ;;  %vm232_vm1 = vcmp.eq.s32.totalorder %v7428_v24, %v7324_v13  ;;  %v7654_v45 = vsub.s32 6, %v7299_v4 }
  0x58   :  { %5309 = vmatprep.subr.msk.mxu0 %vm254_vm4, %v7235_v18  ;;  %5352 = vmatprep.subr.msk.mxu1 %vm256_vm5, %v7235_v18  ;;  %vm229_vm2 = vcmp.eq.s32.totalorder %v7428_v24, %v7328_v14  ;;  %vm231_vm3 = vcmp.eq.s32.totalorder %v7428_v24, %v7335_v16  ;;  %vm222_vm4 = vcmp.eq.s32.totalorder %v7443_v25, %v7320_v12 }
  0x59   :  { %5310 = vmatpush1.msk.msra.mxu0 %vm253_vm6, %v7235_v18  ;;  %5353 = vmatpush1.msk.msra.mxu1 %vm255_vm7, %v7235_v18  ;;  %vm224_vm5 = vcmp.eq.s32.totalorder %v7443_v25, %v7324_v13  ;;  %vm221_vm6 = vcmp.eq.s32.totalorder %v7443_v25, %v7328_v14  ;;  %vm223_vm7 = vcmp.eq.s32.totalorder %v7443_v25, %v7335_v16 }
  0x5a   :  { %5311 = vmatprep.subr.msk.mxu0 %vm246_vm8, %v7235_v18  ;;  %5354 = vmatprep.subr.msk.mxu1 %vm248_vm9, %v7235_v18  ;;  %vm214_vm8 = vcmp.eq.s32.totalorder %v7458_v26, %v7320_v12  ;;  %vm216_vm9 = vcmp.eq.s32.totalorder %v7458_v26, %v7324_v13  ;;  %10931 = vst [vmem:[#allocation21_spill] sm:$0xff] %v7527_v31  ;;  %10932 = vst [vmem:[#allocation22_spill] sm:$0xff] %v7568_v32 }
  0x5b   :  { %5312 = vmatpush1.msk.msra.mxu0 %vm245_vm10, %v7235_v18  ;;  %5355 = vmatpush1.msk.msra.mxu1 %vm247_vm11, %v7235_v18  ;;  %vm213_vm10 = vcmp.eq.s32.totalorder %v7458_v26, %v7328_v14  ;;  %vm215_vm11 = vcmp.eq.s32.totalorder %v7458_v26, %v7335_v16  ;;  %10933 = vst [vmem:[#allocation23_spill] sm:$0xff] %v7593_v36  ;;  %10934 = vst [vmem:[#allocation24_spill] sm:$0xff] %v7618_v39 }
  0x5c   :  { %5313 = vmatprep.subr.msk.mxu0 %vm238_vm12, %v7235_v18  ;;  %5356 = vmatprep.subr.msk.mxu1 %vm240_vm13, %v7235_v18  ;;  %vm206_vm12 = vcmp.eq.s32.totalorder %v7473_v27, %v7320_v12  ;;  %vm208_vm13 = vcmp.eq.s32.totalorder %v7473_v27, %v7324_v13  ;;  %10935 = vst [vmem:[#allocation25_spill] sm:$0xff] %v7636_v41  ;;  %10936 = vst [vmem:[#allocation26_spill] sm:$0xff] %v7639_v42 }
  0x5d   :  { %5314 = vmatpush1.msk.msra.mxu0 %vm237_vm14, %v7235_v18  ;;  %5357 = vmatpush1.msk.msra.mxu1 %vm239_vm15, %v7235_v18  ;;  %vm205_vm14 = vcmp.eq.s32.totalorder %v7473_v27, %v7328_v14  ;;  %vm207_vm15 = vcmp.eq.s32.totalorder %v7473_v27, %v7335_v16  ;;  %10937 = vst [vmem:[#allocation27_spill] sm:$0xff] %v7651_v44  ;;  %10938 = vst [vmem:[#allocation28_spill] sm:$0xff] %v7654_v45 }
  0x5e   :  { %5315 = vmatprep.subr.msk.mxu0 %vm230_vm0, %v7235_v18  ;;  %5358 = vmatprep.subr.msk.mxu1 %vm232_vm1, %v7235_v18  ;;  %vm198_vm0 = vcmp.eq.s32.totalorder %v7488_v28, %v7320_v12  ;;  %vm200_vm1 = vcmp.eq.s32.totalorder %v7488_v28, %v7324_v13  ;;  %v7687_v46 = vrot.slane %v677_v43, %v7302_v6 }
  0x5f   :  { %5316 = vmatpush1.msk.msra.mxu0 %vm229_vm2, %v7235_v18  ;;  %5359 = vmatpush1.msk.msra.mxu1 %vm231_vm3, %v7235_v18  ;;  %vm197_vm2 = vcmp.eq.s32.totalorder %v7488_v28, %v7328_v14  ;;  %vm199_vm3 = vcmp.eq.s32.totalorder %v7488_v28, %v7335_v16  ;;  %v7691_v47 = vrot.slane %v7313_v10, %v7636_v41 }
  0x60   :  { %5317 = vmatprep.subr.msk.mxu0 %vm222_vm4, %v7235_v18  ;;  %5360 = vmatprep.subr.msk.mxu1 %vm224_vm5, %v7235_v18  ;;  %vm190_vm4 = vcmp.eq.s32.totalorder %v7503_v29, %v7320_v12  ;;  %vm192_vm5 = vcmp.eq.s32.totalorder %v7503_v29, %v7324_v13  ;;  %v7695_v48 = vrot.slane %v7313_v10, %v7639_v42 }
  0x61   :  { %5318 = vmatpush1.msk.msra.mxu0 %vm221_vm6, %v7235_v18  ;;  %5361 = vmatpush1.msk.msra.mxu1 %vm223_vm7, %v7235_v18  ;;  %vm189_vm6 = vcmp.eq.s32.totalorder %v7503_v29, %v7328_v14  ;;  %vm191_vm7 = vcmp.eq.s32.totalorder %v7503_v29, %v7335_v16  ;;  %v7703_v49 = vrot.slane %v7313_v10, %v7651_v44 }
  0x62   :  { %5319 = vmatprep.subr.msk.mxu0 %vm214_vm8, %v7235_v18  ;;  %5362 = vmatprep.subr.msk.mxu1 %vm216_vm9, %v7235_v18  ;;  %vm182_vm8 = vcmp.eq.s32.totalorder %v7512_v30, %v7320_v12  ;;  %vm184_vm9 = vcmp.eq.s32.totalorder %v7512_v30, %v7324_v13  ;;  %v7707_v50 = vrot.slane %v7313_v10, %v7654_v45  ;;  %v5639_v10 = vld [vmem:[%s10890_s3 + $0x1] ss:$4 sm:$0x3] }
  0x63   :  { %5320 = vmatpush1.msk.msra.mxu0 %vm213_vm10, %v7235_v18  ;;  %5363 = vmatpush1.msk.msra.mxu1 %vm215_vm11, %v7235_v18  ;;  %vm181_vm10 = vcmp.eq.s32.totalorder %v7512_v30, %v7328_v14  ;;  %vm183_vm11 = vcmp.eq.s32.totalorder %v7512_v30, %v7335_v16  ;;  %v7717_v51 = vrot.slane %v677_v43, %v7308_v8 }
  0x64   :  { %5321 = vmatprep.subr.msk.mxu0 %vm206_vm12, %v7235_v18  ;;  %5364 = vmatprep.subr.msk.mxu1 %vm208_vm13, %v7235_v18  ;;  %vm174_vm12 = vcmp.eq.s32.totalorder %v7299_v4, %v7320_v12  ;;  %vm334_vm13 = vcmp.eq.s32.totalorder %v7527_v31, %v7320_v12  ;;  %v1062_v54 = vor.u32 %v1061_v53, %v1060_v52 }
  0x65   :  { %5322 = vmatpush1.msk.msra.mxu0 %vm205_vm14, %v7235_v18  ;;  %5365 = vmatpush1.msk.msra.mxu1 %vm207_vm15, %v7235_v18  ;;  %vm336_vm14 = vcmp.eq.s32.totalorder %v7527_v31, %v7324_v13  ;;  %vm176_vm15 = vcmp.eq.s32.totalorder %v7299_v4, %v7324_v13  ;;  %v5292_v34 = vsel %vm334_vm13, 1.0, %v10896_v33  ;;  %vm310_vm13 = vcmp.eq.s32.totalorder %v7618_v39, %v7320_v12 }
  0x66   :  { %5323 = vmatprep.subr.msk.mxu0 %vm198_vm0, %v7235_v18  ;;  %5366 = vmatprep.subr.msk.mxu1 %vm200_vm1, %v7235_v18  ;;  %vm333_vm0 = vcmp.eq.s32.totalorder %v7527_v31, %v7328_v14  ;;  %vm335_vm1 = vcmp.eq.s32.totalorder %v7527_v31, %v7335_v16  ;;  %v5294_v35 = vsel %vm336_vm14, 1.0, %v10896_v33  ;;  %vm312_vm14 = vcmp.eq.s32.totalorder %v7618_v39, %v7324_v13 }
  0x67   :  { %5324 = vmatpush1.msk.msra.mxu0 %vm197_vm2, %v7235_v18  ;;  %5367 = vmatpush1.msk.msra.mxu1 %vm199_vm3, %v7235_v18  ;;  %vm173_vm2 = vcmp.eq.s32.totalorder %v7299_v4, %v7328_v14  ;;  %vm175_vm3 = vcmp.eq.s32.totalorder %v7299_v4, %v7335_v16  ;;  %v5291_v37 = vsel %vm333_vm0, 1.0, %v10896_v33  ;;  %v5293_v38 = vsel %vm335_vm1, 1.0, %v10896_v33 }
  0x68   :  { %5325 = vmatprep.subr.msk.mxu0 %vm190_vm4, %v7235_v18  ;;  %5368 = vmatprep.subr.msk.mxu1 %vm192_vm5, %v7235_v18  ;;  %vm691_vm4 = vcmask 1041408   ;;  %vm326_vm5 = vcmp.eq.s32.totalorder %v7568_v32, %v7320_v12  ;;  %vm311_vm0 = vcmp.eq.s32.totalorder %v7618_v39, %v7335_v16  ;;  %vm302_vm1 = vcmp.eq.s32.totalorder %v7627_v40, %v7320_v12 }
  0x69   :  { %5326 = vmatpush1.msk.msra.mxu0 %vm189_vm6, %v7235_v18  ;;  %5369 = vmatpush1.msk.msra.mxu1 %vm191_vm7, %v7235_v18  ;;  %vm328_vm6 = vcmp.eq.s32.totalorder %v7568_v32, %v7324_v13  ;;  %vm325_vm7 = vcmp.eq.s32.totalorder %v7568_v32, %v7328_v14  ;;  %v7095_v57 = vtrunc.f32 %v1062_v54 }
  0x6a   :  { %5327 = vmatprep.subr.msk.mxu0 %vm182_vm8, %v7235_v18  ;;  %5370 = vmatprep.subr.msk.mxu1 %vm184_vm9, %v7235_v18  ;;  %vm327_vm8 = vcmp.eq.s32.totalorder %v7568_v32, %v7335_v16  ;;  %vm318_vm9 = vcmp.eq.s32.totalorder %v7593_v36, %v7320_v12  ;;  %v8281_v12 = vrot.slane %v5639_v10, %v7302_v6 }
  0x6b   :  { %5328 = vmatpush1.msk.msra.mxu0 %vm181_vm10, %v7235_v18  ;;  %5371 = vmatpush1.msk.msra.mxu1 %vm183_vm11, %v7235_v18  ;;  %vm320_vm10 = vcmp.eq.s32.totalorder %v7593_v36, %v7324_v13  ;;  %vm317_vm11 = vcmp.eq.s32.totalorder %v7593_v36, %v7328_v14  ;;  %v7973_v60 = vcvt.f32.s32 %v7095_v57 }
  0x6c   :  { %5329 = vmatprep.subr.msk.mxu0 %vm174_vm12, %v7235_v18  ;;  %5372 = vmatprep.subr.msk.mxu1 %vm176_vm15, %v7235_v18  ;;  %vm319_vm12 = vcmp.eq.s32.totalorder %v7593_v36, %v7335_v16  ;;  %vm309_vm15 = vcmp.eq.s32.totalorder %v7618_v39, %v7328_v14 }
  0x6d   :  { %5330 = vmatpush1.msk.msra.mxu0 %vm173_vm2, %v7235_v18  ;;  %5373 = vmatpush1.msk.msra.mxu1 %vm175_vm3, %v7235_v18  ;;  %vm304_vm2 = vcmp.eq.s32.totalorder %v7627_v40, %v7324_v13  ;;  %vm301_vm3 = vcmp.eq.s32.totalorder %v7627_v40, %v7328_v14  ;;  %v8001_v61 = vrot.slane %v7973_v60, %v7302_v6 }
  0x6e   :  { %5331 = vmatprep.subr.msk.mxu0 %vm691_vm4, %v5292_v34  ;;  %5374 = vmatprep.subr.msk.mxu1 %vm691_vm4, %v5294_v35  ;;  %v8005_v62 = vrot.slane %v7973_v60, %v7305_v7  ;;  %v8013_v63 = vrot.slane %v7973_v60, %v7308_v8  ;;  %v8017_v0 = vrot.slane %v7973_v60, %v7316_v11 }
  0x6f   :  { %5332 = vmatpush2.msk.msra.mxu0 %vm691_vm4, %v5291_v37  ;;  %5375 = vmatpush2.msk.msra.mxu1 %vm691_vm4, %v5293_v38  ;;  %v8291_v13 = vrot.slane %v7973_v60, %v7636_v41  ;;  %v8301_v14 = vrot.slane %v7973_v60, %v7639_v42  ;;  %v8313_v34 = vrot.slane %v7973_v60, %v7654_v45  ;;  %v1982_v37 = vld [vmem:[#allocation4 + $0x3] ss:$8 sm:$0xf] }
  0x70   :  { %5333 = vmatprep.subr.msk.mxu0 %vm326_vm5, %v7235_v18  ;;  %5376 = vmatprep.subr.msk.mxu1 %vm328_vm6, %v7235_v18  ;;  %vm688_vm5 = vcmask 277504   ;;  %vm303_vm6 = vcmp.eq.s32.totalorder %v7627_v40, %v7335_v16  ;;  %v8309_v16 = vrot.slane %v7973_v60, %v7651_v44  ;;  %v8320_v35 = vrot.slane %v5639_v10, %v7308_v8  ;;  %v1983_v38 = vld [vmem:[#allocation4 + $0x3] ss:$8 sm:$0xf0] }
  0x71   :  { %5334 = vmatpush2.msk.msra.mxu0 %vm325_vm7, %v7235_v18  ;;  %5377 = vmatpush2.msk.msra.mxu1 %vm327_vm8, %v7235_v18  ;;  %vm298_vm7 = vcmp.eq.s32.totalorder %v7311_v9, %v7691_v47  ;;  %vm300_vm8 = vcmp.eq.s32.totalorder %v7311_v9, %v7695_v48  ;;  %v1984_v43 = vor.u32 %v1983_v38, %v1982_v37  ;;  %v5980_v60 = vld [vmem:[%s10890_s3 + $0x2] ss:$4 sm:$0x3]  ;;  %v9186_v38 = vadd.s32 376, %v7299_v4  ;;  %s10802_s3 = sld [smem:[#allocation10]] }
  0x72   :  { %5335 = vmatprep.subr.msk.mxu0 %vm318_vm9, %v7235_v18  ;;  %5378 = vmatprep.subr.msk.mxu1 %vm320_vm10, %v7235_v18  ;;  %vm297_vm9 = vcmp.eq.s32.totalorder %v7311_v9, %v7703_v49  ;;  %vm299_vm10 = vcmp.eq.s32.totalorder %v7311_v9, %v7707_v50 }
  0x73   :  { %5336 = vmatpush2.msk.msra.mxu0 %vm317_vm11, %v7235_v18  ;;  %5379 = vmatpush2.msk.msra.mxu1 %vm319_vm12, %v7235_v18  ;;  %vm290_vm11 = vcmp.eq.s32.totalorder %v7331_v15, %v7691_v47  ;;  %vm292_vm12 = vcmp.eq.s32.totalorder %v7331_v15, %v7695_v48 }
  0x74   :  { %5337 = vmatprep.subr.msk.mxu0 %vm310_vm13, %v7235_v18  ;;  %5380 = vmatprep.subr.msk.mxu1 %vm312_vm14, %v7235_v18  ;;  %vm289_vm13 = vcmp.eq.s32.totalorder %v7331_v15, %v7703_v49  ;;  %vm291_vm14 = vcmp.eq.s32.totalorder %v7331_v15, %v7707_v50 }
  0x75   :  { %5338 = vmatpush2.msk.msra.mxu0 %vm309_vm15, %v7235_v18  ;;  %5381 = vmatpush2.msk.msra.mxu1 %vm311_vm0, %v7235_v18  ;;  %vm282_vm15 = vcmp.eq.s32.totalorder %v7338_v17, %v7691_v47  ;;  %vm284_vm0 = vcmp.eq.s32.totalorder %v7338_v17, %v7695_v48 }
  0x76   :  { %5339 = vmatprep.subr.msk.mxu0 %vm302_vm1, %v7235_v18  ;;  %5382 = vmatprep.subr.msk.mxu1 %vm304_vm2, %v7235_v18  ;;  %vm281_vm1 = vcmp.eq.s32.totalorder %v7338_v17, %v7703_v49  ;;  %vm283_vm2 = vcmp.eq.s32.totalorder %v7338_v17, %v7707_v50 }
  0x77   :  { %5340 = vmatpush2.msk.msra.mxu0 %vm301_vm3, %v7235_v18  ;;  %5341 = vmatprep.mubr.msk.f32.mxu0 %vm688_vm5, %v7687_v46  ;;  %vm274_vm3 = vcmp.eq.s32.totalorder %v7351_v19, %v7691_v47 }
  0x78   :  { %5383 = vmatpush2.msk.msra.mxu1 %vm303_vm6, %v7235_v18  ;;  %5384 = vmatprep.mubr.msk.f32.mxu1 %vm688_vm5, %v7687_v46  ;;  %vm276_vm6 = vcmp.eq.s32.totalorder %v7351_v19, %v7695_v48 }
  0x79   :  { %781 = vmatmul.mubr.f32.vlgmr.msra.gmra.mxu0 %v7717_v51  ;;  %852 = vmatmul.mubr.f32.vlgmr.msra.gmra.mxu1 %v7717_v51 }
  0x7a   :  { %5385 = vmatprep.subr.msk.mxu0 %vm298_vm7, %v7235_v18  ;;  %5428 = vmatprep.subr.msk.mxu1 %vm300_vm8, %v7235_v18  ;;  %vm273_vm7 = vcmp.eq.s32.totalorder %v7351_v19, %v7703_v49  ;;  %vm275_vm8 = vcmp.eq.s32.totalorder %v7351_v19, %v7707_v50 }
  0x7b   :  { %5386 = vmatpush1.msk.msra.mxu0 %vm297_vm9, %v7235_v18  ;;  %5429 = vmatpush1.msk.msra.mxu1 %vm299_vm10, %v7235_v18  ;;  %vm266_vm9 = vcmp.eq.s32.totalorder %v7360_v20, %v7691_v47  ;;  %vm268_vm10 = vcmp.eq.s32.totalorder %v7360_v20, %v7695_v48 }
  0x7c   :  { %5387 = vmatprep.subr.msk.mxu0 %vm290_vm11, %v7235_v18  ;;  %5430 = vmatprep.subr.msk.mxu1 %vm292_vm12, %v7235_v18  ;;  %vm265_vm11 = vcmp.eq.s32.totalorder %v7360_v20, %v7703_v49  ;;  %vm267_vm12 = vcmp.eq.s32.totalorder %v7360_v20, %v7707_v50 }
  0x7d   :  { %5388 = vmatpush1.msk.msra.mxu0 %vm289_vm13, %v7235_v18  ;;  %5431 = vmatpush1.msk.msra.mxu1 %vm291_vm14, %v7235_v18  ;;  %vm258_vm13 = vcmp.eq.s32.totalorder %v7379_v21, %v7691_v47  ;;  %vm260_vm14 = vcmp.eq.s32.totalorder %v7379_v21, %v7695_v48 }
  0x7e   :  { %5389 = vmatprep.subr.msk.mxu0 %vm282_vm15, %v7235_v18  ;;  %5432 = vmatprep.subr.msk.mxu1 %vm284_vm0, %v7235_v18  ;;  %vm257_vm15 = vcmp.eq.s32.totalorder %v7379_v21, %v7703_v49  ;;  %vm259_vm0 = vcmp.eq.s32.totalorder %v7379_v21, %v7707_v50 }
  0x7f   :  { %5390 = vmatpush1.msk.msra.mxu0 %vm281_vm1, %v7235_v18  ;;  %5433 = vmatpush1.msk.msra.mxu1 %vm283_vm2, %v7235_v18  ;;  %vm250_vm1 = vcmp.eq.s32.totalorder %v7398_v22, %v7691_v47  ;;  %vm252_vm2 = vcmp.eq.s32.totalorder %v7398_v22, %v7695_v48 }
  0x80   :  { %5391 = vmatprep.subr.msk.mxu0 %vm274_vm3, %v7235_v18  ;;  %5434 = vmatprep.subr.msk.mxu1 %vm276_vm6, %v7235_v18  ;;  %vm249_vm3 = vcmp.eq.s32.totalorder %v7398_v22, %v7703_v49  ;;  %vm251_vm6 = vcmp.eq.s32.totalorder %v7398_v22, %v7707_v50 }
  0x81   :  { %5392 = vmatpush1.msk.msra.mxu0 %vm273_vm7, %v7235_v18  ;;  %5435 = vmatpush1.msk.msra.mxu1 %vm275_vm8, %v7235_v18  ;;  %vm242_vm7 = vcmp.eq.s32.totalorder %v7413_v23, %v7691_v47  ;;  %vm244_vm8 = vcmp.eq.s32.totalorder %v7413_v23, %v7695_v48 }
  0x82   :  { %5393 = vmatprep.subr.msk.mxu0 %vm266_vm9, %v7235_v18  ;;  %5436 = vmatprep.subr.msk.mxu1 %vm268_vm10, %v7235_v18  ;;  %vm241_vm9 = vcmp.eq.s32.totalorder %v7413_v23, %v7703_v49  ;;  %vm243_vm10 = vcmp.eq.s32.totalorder %v7413_v23, %v7707_v50 }
  0x83   :  { %5394 = vmatpush1.msk.msra.mxu0 %vm265_vm11, %v7235_v18  ;;  %5437 = vmatpush1.msk.msra.mxu1 %vm267_vm12, %v7235_v18  ;;  %vm234_vm11 = vcmp.eq.s32.totalorder %v7428_v24, %v7691_v47  ;;  %vm236_vm12 = vcmp.eq.s32.totalorder %v7428_v24, %v7695_v48 }
  0x84   :  { %5395 = vmatprep.subr.msk.mxu0 %vm258_vm13, %v7235_v18  ;;  %5438 = vmatprep.subr.msk.mxu1 %vm260_vm14, %v7235_v18  ;;  %vm233_vm13 = vcmp.eq.s32.totalorder %v7428_v24, %v7703_v49  ;;  %vm235_vm14 = vcmp.eq.s32.totalorder %v7428_v24, %v7707_v50 }
  0x85   :  { %5396 = vmatpush1.msk.msra.mxu0 %vm257_vm15, %v7235_v18  ;;  %5439 = vmatpush1.msk.msra.mxu1 %vm259_vm0, %v7235_v18  ;;  %vm226_vm15 = vcmp.eq.s32.totalorder %v7443_v25, %v7691_v47  ;;  %vm228_vm0 = vcmp.eq.s32.totalorder %v7443_v25, %v7695_v48 }
  0x86   :  { %5397 = vmatprep.subr.msk.mxu0 %vm250_vm1, %v7235_v18  ;;  %5440 = vmatprep.subr.msk.mxu1 %vm252_vm2, %v7235_v18  ;;  %vm225_vm1 = vcmp.eq.s32.totalorder %v7443_v25, %v7703_v49  ;;  %vm227_vm2 = vcmp.eq.s32.totalorder %v7443_v25, %v7707_v50 }
  0x87   :  { %5398 = vmatpush1.msk.msra.mxu0 %vm249_vm3, %v7235_v18  ;;  %5441 = vmatpush1.msk.msra.mxu1 %vm251_vm6, %v7235_v18  ;;  %vm218_vm3 = vcmp.eq.s32.totalorder %v7458_v26, %v7691_v47  ;;  %vm220_vm6 = vcmp.eq.s32.totalorder %v7458_v26, %v7695_v48 }
  0x88   :  { %5399 = vmatprep.subr.msk.mxu0 %vm242_vm7, %v7235_v18  ;;  %5442 = vmatprep.subr.msk.mxu1 %vm244_vm8, %v7235_v18  ;;  %vm217_vm7 = vcmp.eq.s32.totalorder %v7458_v26, %v7703_v49  ;;  %vm219_vm8 = vcmp.eq.s32.totalorder %v7458_v26, %v7707_v50 }
  0x89   :  { %5400 = vmatpush1.msk.msra.mxu0 %vm241_vm9, %v7235_v18  ;;  %5443 = vmatpush1.msk.msra.mxu1 %vm243_vm10, %v7235_v18  ;;  %vm210_vm9 = vcmp.eq.s32.totalorder %v7473_v27, %v7691_v47  ;;  %vm212_vm10 = vcmp.eq.s32.totalorder %v7473_v27, %v7695_v48 }
  0x8a   :  { %5401 = vmatprep.subr.msk.mxu0 %vm234_vm11, %v7235_v18  ;;  %5444 = vmatprep.subr.msk.mxu1 %vm236_vm12, %v7235_v18  ;;  %vm209_vm11 = vcmp.eq.s32.totalorder %v7473_v27, %v7703_v49  ;;  %vm211_vm12 = vcmp.eq.s32.totalorder %v7473_v27, %v7707_v50 }
  0x8b   :  { %5402 = vmatpush1.msk.msra.mxu0 %vm233_vm13, %v7235_v18  ;;  %5445 = vmatpush1.msk.msra.mxu1 %vm235_vm14, %v7235_v18  ;;  %vm202_vm13 = vcmp.eq.s32.totalorder %v7488_v28, %v7691_v47  ;;  %vm204_vm14 = vcmp.eq.s32.totalorder %v7488_v28, %v7695_v48 }
  0x8c   :  { %5403 = vmatprep.subr.msk.mxu0 %vm226_vm15, %v7235_v18  ;;  %5446 = vmatprep.subr.msk.mxu1 %vm228_vm0, %v7235_v18  ;;  %vm201_vm15 = vcmp.eq.s32.totalorder %v7488_v28, %v7703_v49  ;;  %vm203_vm0 = vcmp.eq.s32.totalorder %v7488_v28, %v7707_v50 }
  0x8d   :  { %5404 = vmatpush1.msk.msra.mxu0 %vm225_vm1, %v7235_v18  ;;  %5447 = vmatpush1.msk.msra.mxu1 %vm227_vm2, %v7235_v18  ;;  %vm194_vm1 = vcmp.eq.s32.totalorder %v7503_v29, %v7691_v47  ;;  %vm196_vm2 = vcmp.eq.s32.totalorder %v7503_v29, %v7695_v48 }
  0x8e   :  { %5405 = vmatprep.subr.msk.mxu0 %vm218_vm3, %v7235_v18  ;;  %5448 = vmatprep.subr.msk.mxu1 %vm220_vm6, %v7235_v18  ;;  %vm193_vm3 = vcmp.eq.s32.totalorder %v7503_v29, %v7703_v49  ;;  %vm195_vm6 = vcmp.eq.s32.totalorder %v7503_v29, %v7707_v50 }
  0x8f   :  { %5406 = vmatpush1.msk.msra.mxu0 %vm217_vm7, %v7235_v18  ;;  %5449 = vmatpush1.msk.msra.mxu1 %vm219_vm8, %v7235_v18  ;;  %vm186_vm7 = vcmp.eq.s32.totalorder %v7512_v30, %v7691_v47  ;;  %vm188_vm8 = vcmp.eq.s32.totalorder %v7512_v30, %v7695_v48 }
  0x90   :  { %5407 = vmatprep.subr.msk.mxu0 %vm210_vm9, %v7235_v18  ;;  %5450 = vmatprep.subr.msk.mxu1 %vm212_vm10, %v7235_v18  ;;  %vm185_vm9 = vcmp.eq.s32.totalorder %v7512_v30, %v7703_v49  ;;  %vm187_vm10 = vcmp.eq.s32.totalorder %v7512_v30, %v7707_v50 }
  0x91   :  { %5408 = vmatpush1.msk.msra.mxu0 %vm209_vm11, %v7235_v18  ;;  %5451 = vmatpush1.msk.msra.mxu1 %vm211_vm12, %v7235_v18  ;;  %vm178_vm11 = vcmp.eq.s32.totalorder %v7299_v4, %v7691_v47  ;;  %vm338_vm12 = vcmp.eq.s32.totalorder %v7527_v31, %v7691_v47 }
  0x92   :  { %5409 = vmatprep.subr.msk.mxu0 %vm202_vm13, %v7235_v18  ;;  %5452 = vmatprep.subr.msk.mxu1 %vm204_vm14, %v7235_v18  ;;  %vm340_vm13 = vcmp.eq.s32.totalorder %v7527_v31, %v7695_v48  ;;  %vm180_vm14 = vcmp.eq.s32.totalorder %v7299_v4, %v7695_v48  ;;  %v5296_v55 = vsel %vm338_vm12, 1.0, %v10896_v33  ;;  %vm323_vm12 = vcmp.eq.s32.totalorder %v7593_v36, %v7707_v50 }
  0x93   :  { %5410 = vmatpush1.msk.msra.mxu0 %vm201_vm15, %v7235_v18  ;;  %5453 = vmatpush1.msk.msra.mxu1 %vm203_vm0, %v7235_v18  ;;  %vm337_vm15 = vcmp.eq.s32.totalorder %v7527_v31, %v7703_v49  ;;  %vm339_vm0 = vcmp.eq.s32.totalorder %v7527_v31, %v7707_v50  ;;  %v5298_v56 = vsel %vm340_vm13, 1.0, %v10896_v33  ;;  %vm314_vm13 = vcmp.eq.s32.totalorder %v7618_v39, %v7691_v47 }
  0x94   :  { %5411 = vmatprep.subr.msk.mxu0 %vm194_vm1, %v7235_v18  ;;  %5454 = vmatprep.subr.msk.mxu1 %vm196_vm2, %v7235_v18  ;;  %vm177_vm1 = vcmp.eq.s32.totalorder %v7299_v4, %v7703_v49  ;;  %vm179_vm2 = vcmp.eq.s32.totalorder %v7299_v4, %v7707_v50  ;;  %v5295_v58 = vsel %vm337_vm15, 1.0, %v10896_v33  ;;  %v5297_v59 = vsel %vm339_vm0, 1.0, %v10896_v33 }
  0x95   :  { %5412 = vmatpush1.msk.msra.mxu0 %vm193_vm3, %v7235_v18  ;;  %5455 = vmatpush1.msk.msra.mxu1 %vm195_vm6, %v7235_v18  ;;  %vm330_vm3 = vcmp.eq.s32.totalorder %v7568_v32, %v7691_v47  ;;  %vm332_vm6 = vcmp.eq.s32.totalorder %v7568_v32, %v7695_v48  ;;  %vm313_vm15 = vcmp.eq.s32.totalorder %v7618_v39, %v7703_v49 }
  0x96   :  { %5413 = vmatprep.subr.msk.mxu0 %vm186_vm7, %v7235_v18  ;;  %5456 = vmatprep.subr.msk.mxu1 %vm188_vm8, %v7235_v18  ;;  %vm329_vm7 = vcmp.eq.s32.totalorder %v7568_v32, %v7703_v49  ;;  %vm331_vm8 = vcmp.eq.s32.totalorder %v7568_v32, %v7707_v50  ;;  %vm315_vm0 = vcmp.eq.s32.totalorder %v7618_v39, %v7707_v50 }
  0x97   :  { %5414 = vmatpush1.msk.msra.mxu0 %vm185_vm9, %v7235_v18  ;;  %5457 = vmatpush1.msk.msra.mxu1 %vm187_vm10, %v7235_v18  ;;  %vm322_vm9 = vcmp.eq.s32.totalorder %v7593_v36, %v7691_v47  ;;  %vm324_vm10 = vcmp.eq.s32.totalorder %v7593_v36, %v7695_v48 }
  0x98   :  { %5415 = vmatprep.subr.msk.mxu0 %vm178_vm11, %v7235_v18  ;;  %5458 = vmatprep.subr.msk.mxu1 %vm180_vm14, %v7235_v18  ;;  %vm321_vm11 = vcmp.eq.s32.totalorder %v7593_v36, %v7703_v49  ;;  %vm316_vm14 = vcmp.eq.s32.totalorder %v7618_v39, %v7695_v48 }
  0x99   :  { %5416 = vmatpush1.msk.msra.mxu0 %vm177_vm1, %v7235_v18  ;;  %5459 = vmatpush1.msk.msra.mxu1 %vm179_vm2, %v7235_v18  ;;  %vm306_vm1 = vcmp.eq.s32.totalorder %v7627_v40, %v7691_v47  ;;  %vm308_vm2 = vcmp.eq.s32.totalorder %v7627_v40, %v7695_v48  ;;  %v7097_v48 = vtrunc.f32 %v1984_v43 }
  0x9a   :  { %5417 = vmatprep.subr.msk.mxu0 %vm691_vm4, %v5296_v55  ;;  %5460 = vmatprep.subr.msk.mxu1 %vm691_vm4, %v5298_v56 }
  0x9b   :  { %5418 = vmatpush2.msk.msra.mxu0 %vm691_vm4, %v5295_v58  ;;  %5461 = vmatpush2.msk.msra.mxu1 %vm691_vm4, %v5297_v59 }
  0x9c   :  { %5419 = vmatprep.subr.msk.mxu0 %vm330_vm3, %v7235_v18  ;;  %5462 = vmatprep.subr.msk.mxu1 %vm332_vm6, %v7235_v18  ;;  %vm305_vm3 = vcmp.eq.s32.totalorder %v7627_v40, %v7703_v49  ;;  %vm307_vm6 = vcmp.eq.s32.totalorder %v7627_v40, %v7707_v50 }
  0x9d   :  { %5420 = vmatpush2.msk.msra.mxu0 %vm329_vm7, %v7235_v18  ;;  %5463 = vmatpush2.msk.msra.mxu1 %vm331_vm8, %v7235_v18  ;;  %vm1217_vm7 = vcmp.eq.s32.totalorder %v7311_v9, %v8001_v61  ;;  %vm1219_vm8 = vcmp.eq.s32.totalorder %v7311_v9, %v8005_v62 }
  0x9e   :  { %5421 = vmatprep.subr.msk.mxu0 %vm322_vm9, %v7235_v18  ;;  %5464 = vmatprep.subr.msk.mxu1 %vm324_vm10, %v7235_v18  ;;  %vm1216_vm9 = vcmp.eq.s32.totalorder %v7311_v9, %v8013_v63  ;;  %vm1218_vm10 = vcmp.eq.s32.totalorder %v7311_v9, %v8017_v0 }
  0x9f   :  { %5422 = vmatpush2.msk.msra.mxu0 %vm321_vm11, %v7235_v18  ;;  %5465 = vmatpush2.msk.msra.mxu1 %vm323_vm12, %v7235_v18  ;;  %vm1209_vm11 = vcmp.eq.s32.totalorder %v7331_v15, %v8001_v61  ;;  %vm1211_vm12 = vcmp.eq.s32.totalorder %v7331_v15, %v8005_v62 }
  0xa0   :  { %5423 = vmatprep.subr.msk.mxu0 %vm314_vm13, %v7235_v18  ;;  %5466 = vmatprep.subr.msk.mxu1 %vm316_vm14, %v7235_v18  ;;  %vm1208_vm13 = vcmp.eq.s32.totalorder %v7331_v15, %v8013_v63  ;;  %vm1210_vm14 = vcmp.eq.s32.totalorder %v7331_v15, %v8017_v0 }
  0xa1   :  { %5424 = vmatpush2.msk.msra.mxu0 %vm313_vm15, %v7235_v18  ;;  %5467 = vmatpush2.msk.msra.mxu1 %vm315_vm0, %v7235_v18  ;;  %vm1201_vm15 = vcmp.eq.s32.totalorder %v7338_v17, %v8001_v61  ;;  %vm1203_vm0 = vcmp.eq.s32.totalorder %v7338_v17, %v8005_v62 }
  0xa2   :  { %5425 = vmatprep.subr.msk.mxu0 %vm306_vm1, %v7235_v18  ;;  %5468 = vmatprep.subr.msk.mxu1 %vm308_vm2, %v7235_v18  ;;  %vm1200_vm1 = vcmp.eq.s32.totalorder %v7338_v17, %v8013_v63  ;;  %vm1202_vm2 = vcmp.eq.s32.totalorder %v7338_v17, %v8017_v0 }
  0xa3   :  { %5426 = vmatpush2.msk.msra.mxu0 %vm305_vm3, %v7235_v18  ;;  %5427 = vmatprep.mubr.msk.f32.mxu0 %vm688_vm5, %v7687_v46  ;;  %vm1193_vm3 = vcmp.eq.s32.totalorder %v7351_v19, %v8001_v61 }
  0xa4   :  { %5469 = vmatpush2.msk.msra.mxu1 %vm307_vm6, %v7235_v18  ;;  %5470 = vmatprep.mubr.msk.f32.mxu1 %vm688_vm5, %v7687_v46  ;;  %vm1195_vm6 = vcmp.eq.s32.totalorder %v7351_v19, %v8005_v62 }
  0xa5   :  { %923 = vmatmul.mubr.f32.vlgmr.msra.gmra.mxu0 %v7717_v51  ;;  %994 = vmatmul.mubr.f32.vlgmr.msra.gmra.mxu1 %v7717_v51  ;;  %v8564_v51 = vcvt.f32.s32 %v7097_v48  ;;  %v9229_v48 = vadd.s32 352, %v7299_v4 }
  0xa6   :  { %5640 = vmatprep.subr.msk.mxu0 %vm1217_vm7, %v7235_v18  ;;  %5683 = vmatprep.subr.msk.mxu1 %vm1219_vm8, %v7235_v18  ;;  %vm1192_vm7 = vcmp.eq.s32.totalorder %v7351_v19, %v8013_v63  ;;  %vm1194_vm8 = vcmp.eq.s32.totalorder %v7351_v19, %v8017_v0 }
  0xa7   :  { %5641 = vmatpush1.msk.msra.mxu0 %vm1216_vm9, %v7235_v18  ;;  %5684 = vmatpush1.msk.msra.mxu1 %vm1218_vm10, %v7235_v18  ;;  %vm1185_vm9 = vcmp.eq.s32.totalorder %v7360_v20, %v8001_v61  ;;  %vm1187_vm10 = vcmp.eq.s32.totalorder %v7360_v20, %v8005_v62  ;;  %v8592_v52 = vrot.slane %v8564_v51, %v7302_v6 }
  0xa8   :  { %5642 = vmatprep.subr.msk.mxu0 %vm1209_vm11, %v7235_v18  ;;  %5685 = vmatprep.subr.msk.mxu1 %vm1211_vm12, %v7235_v18  ;;  %vm1184_vm11 = vcmp.eq.s32.totalorder %v7360_v20, %v8013_v63  ;;  %vm1186_vm12 = vcmp.eq.s32.totalorder %v7360_v20, %v8017_v0  ;;  %v8596_v53 = vrot.slane %v8564_v51, %v7305_v7 }
  0xa9   :  { %5643 = vmatpush1.msk.msra.mxu0 %vm1208_vm13, %v7235_v18  ;;  %5686 = vmatpush1.msk.msra.mxu1 %vm1210_vm14, %v7235_v18  ;;  %vm1177_vm13 = vcmp.eq.s32.totalorder %v7379_v21, %v8001_v61  ;;  %vm1179_vm14 = vcmp.eq.s32.totalorder %v7379_v21, %v8005_v62  ;;  %v8604_v54 = vrot.slane %v8564_v51, %v7308_v8 }
  0xaa   :  { %5644 = vmatprep.subr.msk.mxu0 %vm1201_vm15, %v7235_v18  ;;  %5687 = vmatprep.subr.msk.mxu1 %vm1203_vm0, %v7235_v18  ;;  %vm1176_vm15 = vcmp.eq.s32.totalorder %v7379_v21, %v8013_v63  ;;  %vm1178_vm0 = vcmp.eq.s32.totalorder %v7379_v21, %v8017_v0  ;;  %v8608_v55 = vrot.slane %v8564_v51, %v7316_v11 }
  0xab   :  { %5645 = vmatpush1.msk.msra.mxu0 %vm1200_vm1, %v7235_v18  ;;  %5688 = vmatpush1.msk.msra.mxu1 %vm1202_vm2, %v7235_v18  ;;  %vm1169_vm1 = vcmp.eq.s32.totalorder %v7398_v22, %v8001_v61  ;;  %vm1171_vm2 = vcmp.eq.s32.totalorder %v7398_v22, %v8005_v62 }
  0xac   :  { %5646 = vmatprep.subr.msk.mxu0 %vm1193_vm3, %v7235_v18  ;;  %5689 = vmatprep.subr.msk.mxu1 %vm1195_vm6, %v7235_v18  ;;  %vm1168_vm3 = vcmp.eq.s32.totalorder %v7398_v22, %v8013_v63  ;;  %vm1170_vm6 = vcmp.eq.s32.totalorder %v7398_v22, %v8017_v0 }
  0xad   :  { %5647 = vmatpush1.msk.msra.mxu0 %vm1192_vm7, %v7235_v18  ;;  %5690 = vmatpush1.msk.msra.mxu1 %vm1194_vm8, %v7235_v18  ;;  %vm1161_vm7 = vcmp.eq.s32.totalorder %v7413_v23, %v8001_v61  ;;  %vm1163_vm8 = vcmp.eq.s32.totalorder %v7413_v23, %v8005_v62 }
  0xae   :  { %5648 = vmatprep.subr.msk.mxu0 %vm1185_vm9, %v7235_v18  ;;  %5691 = vmatprep.subr.msk.mxu1 %vm1187_vm10, %v7235_v18  ;;  %vm1160_vm9 = vcmp.eq.s32.totalorder %v7413_v23, %v8013_v63  ;;  %vm1162_vm10 = vcmp.eq.s32.totalorder %v7413_v23, %v8017_v0 }
  0xaf   :  { %5649 = vmatpush1.msk.msra.mxu0 %vm1184_vm11, %v7235_v18  ;;  %5692 = vmatpush1.msk.msra.mxu1 %vm1186_vm12, %v7235_v18  ;;  %vm1153_vm11 = vcmp.eq.s32.totalorder %v7428_v24, %v8001_v61  ;;  %vm1155_vm12 = vcmp.eq.s32.totalorder %v7428_v24, %v8005_v62 }
  0xb0   :  { %5650 = vmatprep.subr.msk.mxu0 %vm1177_vm13, %v7235_v18  ;;  %5693 = vmatprep.subr.msk.mxu1 %vm1179_vm14, %v7235_v18  ;;  %vm1152_vm13 = vcmp.eq.s32.totalorder %v7428_v24, %v8013_v63  ;;  %vm1154_vm14 = vcmp.eq.s32.totalorder %v7428_v24, %v8017_v0 }
  0xb1   :  { %5651 = vmatpush1.msk.msra.mxu0 %vm1176_vm15, %v7235_v18  ;;  %5694 = vmatpush1.msk.msra.mxu1 %vm1178_vm0, %v7235_v18  ;;  %vm1145_vm15 = vcmp.eq.s32.totalorder %v7443_v25, %v8001_v61  ;;  %vm1147_vm0 = vcmp.eq.s32.totalorder %v7443_v25, %v8005_v62 }
  0xb2   :  { %5652 = vmatprep.subr.msk.mxu0 %vm1169_vm1, %v7235_v18  ;;  %5695 = vmatprep.subr.msk.mxu1 %vm1171_vm2, %v7235_v18  ;;  %vm1144_vm1 = vcmp.eq.s32.totalorder %v7443_v25, %v8013_v63  ;;  %vm1146_vm2 = vcmp.eq.s32.totalorder %v7443_v25, %v8017_v0 }
  0xb3   :  { %5653 = vmatpush1.msk.msra.mxu0 %vm1168_vm3, %v7235_v18  ;;  %5696 = vmatpush1.msk.msra.mxu1 %vm1170_vm6, %v7235_v18  ;;  %vm1137_vm3 = vcmp.eq.s32.totalorder %v7458_v26, %v8001_v61  ;;  %vm1139_vm6 = vcmp.eq.s32.totalorder %v7458_v26, %v8005_v62 }
  0xb4   :  { %5654 = vmatprep.subr.msk.mxu0 %vm1161_vm7, %v7235_v18  ;;  %5697 = vmatprep.subr.msk.mxu1 %vm1163_vm8, %v7235_v18  ;;  %vm1136_vm7 = vcmp.eq.s32.totalorder %v7458_v26, %v8013_v63  ;;  %vm1138_vm8 = vcmp.eq.s32.totalorder %v7458_v26, %v8017_v0 }
  0xb5   :  { %5655 = vmatpush1.msk.msra.mxu0 %vm1160_vm9, %v7235_v18  ;;  %5698 = vmatpush1.msk.msra.mxu1 %vm1162_vm10, %v7235_v18  ;;  %vm1129_vm9 = vcmp.eq.s32.totalorder %v7473_v27, %v8001_v61  ;;  %vm1131_vm10 = vcmp.eq.s32.totalorder %v7473_v27, %v8005_v62 }
  0xb6   :  { %5656 = vmatprep.subr.msk.mxu0 %vm1153_vm11, %v7235_v18  ;;  %5699 = vmatprep.subr.msk.mxu1 %vm1155_vm12, %v7235_v18  ;;  %vm1128_vm11 = vcmp.eq.s32.totalorder %v7473_v27, %v8013_v63  ;;  %vm1130_vm12 = vcmp.eq.s32.totalorder %v7473_v27, %v8017_v0 }
  0xb7   :  { %5657 = vmatpush1.msk.msra.mxu0 %vm1152_vm13, %v7235_v18  ;;  %5700 = vmatpush1.msk.msra.mxu1 %vm1154_vm14, %v7235_v18  ;;  %vm1121_vm13 = vcmp.eq.s32.totalorder %v7488_v28, %v8001_v61  ;;  %vm1123_vm14 = vcmp.eq.s32.totalorder %v7488_v28, %v8005_v62 }
  0xb8   :  { %5658 = vmatprep.subr.msk.mxu0 %vm1145_vm15, %v7235_v18  ;;  %5701 = vmatprep.subr.msk.mxu1 %vm1147_vm0, %v7235_v18  ;;  %vm1120_vm15 = vcmp.eq.s32.totalorder %v7488_v28, %v8013_v63  ;;  %vm1122_vm0 = vcmp.eq.s32.totalorder %v7488_v28, %v8017_v0 }
  0xb9   :  { %5659 = vmatpush1.msk.msra.mxu0 %vm1144_vm1, %v7235_v18  ;;  %5702 = vmatpush1.msk.msra.mxu1 %vm1146_vm2, %v7235_v18  ;;  %vm1113_vm1 = vcmp.eq.s32.totalorder %v7503_v29, %v8001_v61  ;;  %vm1115_vm2 = vcmp.eq.s32.totalorder %v7503_v29, %v8005_v62 }
  0xba   :  { %5660 = vmatprep.subr.msk.mxu0 %vm1137_vm3, %v7235_v18  ;;  %5703 = vmatprep.subr.msk.mxu1 %vm1139_vm6, %v7235_v18  ;;  %vm1112_vm3 = vcmp.eq.s32.totalorder %v7503_v29, %v8013_v63  ;;  %vm1114_vm6 = vcmp.eq.s32.totalorder %v7503_v29, %v8017_v0 }
  0xbb   :  { %5661 = vmatpush1.msk.msra.mxu0 %vm1136_vm7, %v7235_v18  ;;  %5704 = vmatpush1.msk.msra.mxu1 %vm1138_vm8, %v7235_v18  ;;  %vm1105_vm7 = vcmp.eq.s32.totalorder %v7512_v30, %v8001_v61  ;;  %vm1107_vm8 = vcmp.eq.s32.totalorder %v7512_v30, %v8005_v62 }
  0xbc   :  { %5662 = vmatprep.subr.msk.mxu0 %vm1129_vm9, %v7235_v18  ;;  %5705 = vmatprep.subr.msk.mxu1 %vm1131_vm10, %v7235_v18  ;;  %vm1104_vm9 = vcmp.eq.s32.totalorder %v7512_v30, %v8013_v63  ;;  %vm1106_vm10 = vcmp.eq.s32.totalorder %v7512_v30, %v8017_v0 }
  0xbd   :  { %5663 = vmatpush1.msk.msra.mxu0 %vm1128_vm11, %v7235_v18  ;;  %5706 = vmatpush1.msk.msra.mxu1 %vm1130_vm12, %v7235_v18  ;;  %vm1097_vm11 = vcmp.eq.s32.totalorder %v7299_v4, %v8001_v61  ;;  %vm1257_vm12 = vcmp.eq.s32.totalorder %v7527_v31, %v8001_v61 }
  0xbe   :  { %5664 = vmatprep.subr.msk.mxu0 %vm1121_vm13, %v7235_v18  ;;  %5707 = vmatprep.subr.msk.mxu1 %vm1123_vm14, %v7235_v18  ;;  %vm1259_vm13 = vcmp.eq.s32.totalorder %v7527_v31, %v8005_v62  ;;  %vm1099_vm14 = vcmp.eq.s32.totalorder %v7299_v4, %v8005_v62  ;;  %v5632_v1 = vsel %vm1257_vm12, 1.0, %v10896_v33  ;;  %vm1242_vm12 = vcmp.eq.s32.totalorder %v7593_v36, %v8017_v0 }
  0xbf   :  { %5665 = vmatpush1.msk.msra.mxu0 %vm1120_vm15, %v7235_v18  ;;  %5708 = vmatpush1.msk.msra.mxu1 %vm1122_vm0, %v7235_v18  ;;  %vm1256_vm15 = vcmp.eq.s32.totalorder %v7527_v31, %v8013_v63  ;;  %vm1258_vm0 = vcmp.eq.s32.totalorder %v7527_v31, %v8017_v0  ;;  %v5634_v2 = vsel %vm1259_vm13, 1.0, %v10896_v33  ;;  %vm1233_vm13 = vcmp.eq.s32.totalorder %v7618_v39, %v8001_v61 }
  0xc0   :  { %5666 = vmatprep.subr.msk.mxu0 %vm1113_vm1, %v7235_v18  ;;  %5709 = vmatprep.subr.msk.mxu1 %vm1115_vm2, %v7235_v18  ;;  %vm1096_vm1 = vcmp.eq.s32.totalorder %v7299_v4, %v8013_v63  ;;  %vm1098_vm2 = vcmp.eq.s32.totalorder %v7299_v4, %v8017_v0  ;;  %v5631_v3 = vsel %vm1256_vm15, 1.0, %v10896_v33  ;;  %v5633_v5 = vsel %vm1258_vm0, 1.0, %v10896_v33 }
  0xc1   :  { %5667 = vmatpush1.msk.msra.mxu0 %vm1112_vm3, %v7235_v18  ;;  %5710 = vmatpush1.msk.msra.mxu1 %vm1114_vm6, %v7235_v18  ;;  %vm1249_vm3 = vcmp.eq.s32.totalorder %v7568_v32, %v8001_v61  ;;  %vm1251_vm6 = vcmp.eq.s32.totalorder %v7568_v32, %v8005_v62  ;;  %vm1232_vm15 = vcmp.eq.s32.totalorder %v7618_v39, %v8013_v63 }
  0xc2   :  { %5668 = vmatprep.subr.msk.mxu0 %vm1105_vm7, %v7235_v18  ;;  %5711 = vmatprep.subr.msk.mxu1 %vm1107_vm8, %v7235_v18  ;;  %vm1248_vm7 = vcmp.eq.s32.totalorder %v7568_v32, %v8013_v63  ;;  %vm1250_vm8 = vcmp.eq.s32.totalorder %v7568_v32, %v8017_v0  ;;  %vm1234_vm0 = vcmp.eq.s32.totalorder %v7618_v39, %v8017_v0 }
  0xc3   :  { %5669 = vmatpush1.msk.msra.mxu0 %vm1104_vm9, %v7235_v18  ;;  %5712 = vmatpush1.msk.msra.mxu1 %vm1106_vm10, %v7235_v18  ;;  %vm1241_vm9 = vcmp.eq.s32.totalorder %v7593_v36, %v8001_v61  ;;  %vm1243_vm10 = vcmp.eq.s32.totalorder %v7593_v36, %v8005_v62 }
  0xc4   :  { %5670 = vmatprep.subr.msk.mxu0 %vm1097_vm11, %v7235_v18  ;;  %5713 = vmatprep.subr.msk.mxu1 %vm1099_vm14, %v7235_v18  ;;  %vm1240_vm11 = vcmp.eq.s32.totalorder %v7593_v36, %v8013_v63  ;;  %vm1235_vm14 = vcmp.eq.s32.totalorder %v7618_v39, %v8005_v62 }
  0xc5   :  { %5671 = vmatpush1.msk.msra.mxu0 %vm1096_vm1, %v7235_v18  ;;  %5714 = vmatpush1.msk.msra.mxu1 %vm1098_vm2, %v7235_v18  ;;  %vm1225_vm1 = vcmp.eq.s32.totalorder %v7627_v40, %v8001_v61  ;;  %vm1227_vm2 = vcmp.eq.s32.totalorder %v7627_v40, %v8005_v62  ;;  %v8872_v61 = vrot.slane %v5980_v60, %v7302_v6 }
  0xc6   :  { %5672 = vmatprep.subr.msk.mxu0 %vm691_vm4, %v5632_v1  ;;  %5715 = vmatprep.subr.msk.mxu1 %vm691_vm4, %v5634_v2  ;;  %v8888_v62 = vrot.slane %v8564_v51, %v7636_v41  ;;  %v8904_v1 = vrot.slane %v8564_v51, %v7654_v45  ;;  %v8911_v2 = vrot.slane %v5980_v60, %v7308_v8  ;;  %v9403_v60 = vadd.s32 456, %v7299_v4 }
  0xc7   :  { %5673 = vmatpush2.msk.msra.mxu0 %vm691_vm4, %v5631_v3  ;;  %5716 = vmatpush2.msk.msra.mxu1 %vm691_vm4, %v5633_v5  ;;  %v2904_v3 = vld [vmem:[#allocation4 + $0x4] ss:$8 sm:$0xf]  ;;  %v9561_v45 = vadd.s32 400, %v7299_v4  ;;  %v9594_v41 = vadd.s32 176, %v7299_v4 }
  0xc8   :  { %5674 = vmatprep.subr.msk.mxu0 %vm1249_vm3, %v7235_v18  ;;  %5717 = vmatprep.subr.msk.mxu1 %vm1251_vm6, %v7235_v18  ;;  %vm1224_vm3 = vcmp.eq.s32.totalorder %v7627_v40, %v8013_v63  ;;  %vm1226_vm6 = vcmp.eq.s32.totalorder %v7627_v40, %v8017_v0  ;;  %v8892_v63 = vrot.slane %v8564_v51, %v7639_v42  ;;  %v2905_v5 = vld [vmem:[#allocation4 + $0x4] ss:$8 sm:$0xf0]  ;;  %v9576_v42 = vadd.s32 184, %v7299_v4 }
  0xc9   :  { %5675 = vmatpush2.msk.msra.mxu0 %vm1248_vm7, %v7235_v18  ;;  %5718 = vmatpush2.msk.msra.mxu1 %vm1250_vm8, %v7235_v18  ;;  %vm1221_vm7 = vcmp.eq.s32.totalorder %v7311_v9, %v8291_v13  ;;  %vm1223_vm8 = vcmp.eq.s32.totalorder %v7311_v9, %v8301_v14  ;;  %v8900_v0 = vrot.slane %v8564_v51, %v7651_v44  ;;  %v9274_v51 = vadd.s32 328, %v7299_v4 }
  0xca   :  { %5676 = vmatprep.subr.msk.mxu0 %vm1241_vm9, %v7235_v18  ;;  %5719 = vmatprep.subr.msk.mxu1 %vm1243_vm10, %v7235_v18  ;;  %vm1220_vm9 = vcmp.eq.s32.totalorder %v7311_v9, %v8309_v16  ;;  %vm1222_vm10 = vcmp.eq.s32.totalorder %v7311_v9, %v8313_v34  ;;  %v2906_v10 = vor.u32 %v2905_v5, %v2904_v3  ;;  %v9469_v3 = vadd.s32 440, %v7299_v4 }
  0xcb   :  { %5677 = vmatpush2.msk.msra.mxu0 %vm1240_vm11, %v7235_v18  ;;  %5720 = vmatpush2.msk.msra.mxu1 %vm1242_vm12, %v7235_v18  ;;  %vm1213_vm11 = vcmp.eq.s32.totalorder %v7331_v15, %v8291_v13  ;;  %vm1215_vm12 = vcmp.eq.s32.totalorder %v7331_v15, %v8301_v14  ;;  %10944 = vst [vmem:[#allocation34_spill] sm:$0xff] %v9561_v45  ;;  %10945 = vst [vmem:[#allocation35_spill] sm:$0xff] %v9576_v42  ;;  %v9579_v44 = vadd.s32 392, %v7299_v4 }
  0xcc   :  { %5678 = vmatprep.subr.msk.mxu0 %vm1233_vm13, %v7235_v18  ;;  %5721 = vmatprep.subr.msk.mxu1 %vm1235_vm14, %v7235_v18  ;;  %vm1212_vm13 = vcmp.eq.s32.totalorder %v7331_v15, %v8309_v16  ;;  %vm1214_vm14 = vcmp.eq.s32.totalorder %v7331_v15, %v8313_v34  ;;  %10947 = vst [vmem:[#allocation37_spill] sm:$0xff] %v9594_v41 }
  0xcd   :  { %5679 = vmatpush2.msk.msra.mxu0 %vm1232_vm15, %v7235_v18  ;;  %5722 = vmatpush2.msk.msra.mxu1 %vm1234_vm0, %v7235_v18  ;;  %vm1205_vm15 = vcmp.eq.s32.totalorder %v7338_v17, %v8291_v13  ;;  %vm1207_vm0 = vcmp.eq.s32.totalorder %v7338_v17, %v8301_v14  ;;  %10946 = vst [vmem:[#allocation36_spill] sm:$0xff] %v9579_v44 }
  0xce   :  { %5680 = vmatprep.subr.msk.mxu0 %vm1225_vm1, %v7235_v18  ;;  %5723 = vmatprep.subr.msk.mxu1 %vm1227_vm2, %v7235_v18  ;;  %vm1204_vm1 = vcmp.eq.s32.totalorder %v7338_v17, %v8309_v16  ;;  %vm1206_vm2 = vcmp.eq.s32.totalorder %v7338_v17, %v8313_v34 }
  0xcf   :  { %5681 = vmatpush2.msk.msra.mxu0 %vm1224_vm3, %v7235_v18  ;;  %5682 = vmatprep.mubr.msk.f32.mxu0 %vm688_vm5, %v8281_v12  ;;  %vm1197_vm3 = vcmp.eq.s32.totalorder %v7351_v19, %v8291_v13 }
  0xd0   :  { %5724 = vmatpush2.msk.msra.mxu1 %vm1226_vm6, %v7235_v18  ;;  %5725 = vmatprep.mubr.msk.f32.mxu1 %vm688_vm5, %v8281_v12  ;;  %vm1199_vm6 = vcmp.eq.s32.totalorder %v7351_v19, %v8301_v14 }
  0xd1   :  { %1703 = vmatmul.mubr.f32.vlgmr.msra.gmra.mxu0 %v8320_v35  ;;  %1774 = vmatmul.mubr.f32.vlgmr.msra.gmra.mxu1 %v8320_v35 }
  0xd2   :  { %5726 = vmatprep.subr.msk.mxu0 %vm1221_vm7, %v7235_v18  ;;  %5769 = vmatprep.subr.msk.mxu1 %vm1223_vm8, %v7235_v18  ;;  %vm1196_vm7 = vcmp.eq.s32.totalorder %v7351_v19, %v8309_v16  ;;  %vm1198_vm8 = vcmp.eq.s32.totalorder %v7351_v19, %v8313_v34 }
  0xd3   :  { %5727 = vmatpush1.msk.msra.mxu0 %vm1220_vm9, %v7235_v18  ;;  %5770 = vmatpush1.msk.msra.mxu1 %vm1222_vm10, %v7235_v18  ;;  %vm1189_vm9 = vcmp.eq.s32.totalorder %v7360_v20, %v8291_v13  ;;  %vm1191_vm10 = vcmp.eq.s32.totalorder %v7360_v20, %v8301_v14 }
  0xd4   :  { %5728 = vmatprep.subr.msk.mxu0 %vm1213_vm11, %v7235_v18  ;;  %5771 = vmatprep.subr.msk.mxu1 %vm1215_vm12, %v7235_v18  ;;  %vm1188_vm11 = vcmp.eq.s32.totalorder %v7360_v20, %v8309_v16  ;;  %vm1190_vm12 = vcmp.eq.s32.totalorder %v7360_v20, %v8313_v34 }
  0xd5   :  { %5729 = vmatpush1.msk.msra.mxu0 %vm1212_vm13, %v7235_v18  ;;  %5772 = vmatpush1.msk.msra.mxu1 %vm1214_vm14, %v7235_v18  ;;  %vm1181_vm13 = vcmp.eq.s32.totalorder %v7379_v21, %v8291_v13  ;;  %vm1183_vm14 = vcmp.eq.s32.totalorder %v7379_v21, %v8301_v14 }
  0xd6   :  { %5730 = vmatprep.subr.msk.mxu0 %vm1205_vm15, %v7235_v18  ;;  %5773 = vmatprep.subr.msk.mxu1 %vm1207_vm0, %v7235_v18  ;;  %vm1180_vm15 = vcmp.eq.s32.totalorder %v7379_v21, %v8309_v16  ;;  %vm1182_vm0 = vcmp.eq.s32.totalorder %v7379_v21, %v8313_v34 }
  0xd7   :  { %5731 = vmatpush1.msk.msra.mxu0 %vm1204_vm1, %v7235_v18  ;;  %5774 = vmatpush1.msk.msra.mxu1 %vm1206_vm2, %v7235_v18  ;;  %vm1173_vm1 = vcmp.eq.s32.totalorder %v7398_v22, %v8291_v13  ;;  %vm1175_vm2 = vcmp.eq.s32.totalorder %v7398_v22, %v8301_v14 }
  0xd8   :  { %5732 = vmatprep.subr.msk.mxu0 %vm1197_vm3, %v7235_v18  ;;  %5775 = vmatprep.subr.msk.mxu1 %vm1199_vm6, %v7235_v18  ;;  %vm1172_vm3 = vcmp.eq.s32.totalorder %v7398_v22, %v8309_v16  ;;  %vm1174_vm6 = vcmp.eq.s32.totalorder %v7398_v22, %v8313_v34 }
  0xd9   :  { %5733 = vmatpush1.msk.msra.mxu0 %vm1196_vm7, %v7235_v18  ;;  %5776 = vmatpush1.msk.msra.mxu1 %vm1198_vm8, %v7235_v18  ;;  %vm1165_vm7 = vcmp.eq.s32.totalorder %v7413_v23, %v8291_v13  ;;  %vm1167_vm8 = vcmp.eq.s32.totalorder %v7413_v23, %v8301_v14 }
  0xda   :  { %5734 = vmatprep.subr.msk.mxu0 %vm1189_vm9, %v7235_v18  ;;  %5777 = vmatprep.subr.msk.mxu1 %vm1191_vm10, %v7235_v18  ;;  %vm1164_vm9 = vcmp.eq.s32.totalorder %v7413_v23, %v8309_v16  ;;  %vm1166_vm10 = vcmp.eq.s32.totalorder %v7413_v23, %v8313_v34 }
  0xdb   :  { %5735 = vmatpush1.msk.msra.mxu0 %vm1188_vm11, %v7235_v18  ;;  %5778 = vmatpush1.msk.msra.mxu1 %vm1190_vm12, %v7235_v18  ;;  %vm1157_vm11 = vcmp.eq.s32.totalorder %v7428_v24, %v8291_v13  ;;  %vm1159_vm12 = vcmp.eq.s32.totalorder %v7428_v24, %v8301_v14 }
  0xdc   :  { %5736 = vmatprep.subr.msk.mxu0 %vm1181_vm13, %v7235_v18  ;;  %5779 = vmatprep.subr.msk.mxu1 %vm1183_vm14, %v7235_v18  ;;  %vm1156_vm13 = vcmp.eq.s32.totalorder %v7428_v24, %v8309_v16  ;;  %vm1158_vm14 = vcmp.eq.s32.totalorder %v7428_v24, %v8313_v34 }
  0xdd   :  { %5737 = vmatpush1.msk.msra.mxu0 %vm1180_vm15, %v7235_v18  ;;  %5780 = vmatpush1.msk.msra.mxu1 %vm1182_vm0, %v7235_v18  ;;  %vm1149_vm15 = vcmp.eq.s32.totalorder %v7443_v25, %v8291_v13  ;;  %vm1151_vm0 = vcmp.eq.s32.totalorder %v7443_v25, %v8301_v14 }
  0xde   :  { %5738 = vmatprep.subr.msk.mxu0 %vm1173_vm1, %v7235_v18  ;;  %5781 = vmatprep.subr.msk.mxu1 %vm1175_vm2, %v7235_v18  ;;  %vm1148_vm1 = vcmp.eq.s32.totalorder %v7443_v25, %v8309_v16  ;;  %vm1150_vm2 = vcmp.eq.s32.totalorder %v7443_v25, %v8313_v34 }
  0xdf   :  { %5739 = vmatpush1.msk.msra.mxu0 %vm1172_vm3, %v7235_v18  ;;  %5782 = vmatpush1.msk.msra.mxu1 %vm1174_vm6, %v7235_v18  ;;  %vm1141_vm3 = vcmp.eq.s32.totalorder %v7458_v26, %v8291_v13  ;;  %vm1143_vm6 = vcmp.eq.s32.totalorder %v7458_v26, %v8301_v14 }
  0xe0   :  { %5740 = vmatprep.subr.msk.mxu0 %vm1165_vm7, %v7235_v18  ;;  %5783 = vmatprep.subr.msk.mxu1 %vm1167_vm8, %v7235_v18  ;;  %vm1140_vm7 = vcmp.eq.s32.totalorder %v7458_v26, %v8309_v16  ;;  %vm1142_vm8 = vcmp.eq.s32.totalorder %v7458_v26, %v8313_v34 }
  0xe1   :  { %5741 = vmatpush1.msk.msra.mxu0 %vm1164_vm9, %v7235_v18  ;;  %5784 = vmatpush1.msk.msra.mxu1 %vm1166_vm10, %v7235_v18  ;;  %vm1133_vm9 = vcmp.eq.s32.totalorder %v7473_v27, %v8291_v13  ;;  %vm1135_vm10 = vcmp.eq.s32.totalorder %v7473_v27, %v8301_v14 }
  0xe2   :  { %5742 = vmatprep.subr.msk.mxu0 %vm1157_vm11, %v7235_v18  ;;  %5785 = vmatprep.subr.msk.mxu1 %vm1159_vm12, %v7235_v18  ;;  %vm1132_vm11 = vcmp.eq.s32.totalorder %v7473_v27, %v8309_v16  ;;  %vm1134_vm12 = vcmp.eq.s32.totalorder %v7473_v27, %v8313_v34 }
  0xe3   :  { %5743 = vmatpush1.msk.msra.mxu0 %vm1156_vm13, %v7235_v18  ;;  %5786 = vmatpush1.msk.msra.mxu1 %vm1158_vm14, %v7235_v18  ;;  %vm1125_vm13 = vcmp.eq.s32.totalorder %v7488_v28, %v8291_v13  ;;  %vm1127_vm14 = vcmp.eq.s32.totalorder %v7488_v28, %v8301_v14 }
  0xe4   :  { %5744 = vmatprep.subr.msk.mxu0 %vm1149_vm15, %v7235_v18  ;;  %5787 = vmatprep.subr.msk.mxu1 %vm1151_vm0, %v7235_v18  ;;  %vm1124_vm15 = vcmp.eq.s32.totalorder %v7488_v28, %v8309_v16  ;;  %vm1126_vm0 = vcmp.eq.s32.totalorder %v7488_v28, %v8313_v34 }
  0xe5   :  { %5745 = vmatpush1.msk.msra.mxu0 %vm1148_vm1, %v7235_v18  ;;  %5788 = vmatpush1.msk.msra.mxu1 %vm1150_vm2, %v7235_v18  ;;  %vm1117_vm1 = vcmp.eq.s32.totalorder %v7503_v29, %v8291_v13  ;;  %vm1119_vm2 = vcmp.eq.s32.totalorder %v7503_v29, %v8301_v14 }
  0xe6   :  { %5746 = vmatprep.subr.msk.mxu0 %vm1141_vm3, %v7235_v18  ;;  %5789 = vmatprep.subr.msk.mxu1 %vm1143_vm6, %v7235_v18  ;;  %vm1116_vm3 = vcmp.eq.s32.totalorder %v7503_v29, %v8309_v16  ;;  %vm1118_vm6 = vcmp.eq.s32.totalorder %v7503_v29, %v8313_v34 }
  0xe7   :  { %5747 = vmatpush1.msk.msra.mxu0 %vm1140_vm7, %v7235_v18  ;;  %5790 = vmatpush1.msk.msra.mxu1 %vm1142_vm8, %v7235_v18  ;;  %vm1109_vm7 = vcmp.eq.s32.totalorder %v7512_v30, %v8291_v13  ;;  %vm1111_vm8 = vcmp.eq.s32.totalorder %v7512_v30, %v8301_v14 }
  0xe8   :  { %5748 = vmatprep.subr.msk.mxu0 %vm1133_vm9, %v7235_v18  ;;  %5791 = vmatprep.subr.msk.mxu1 %vm1135_vm10, %v7235_v18  ;;  %vm1108_vm9 = vcmp.eq.s32.totalorder %v7512_v30, %v8309_v16  ;;  %vm1110_vm10 = vcmp.eq.s32.totalorder %v7512_v30, %v8313_v34 }
  0xe9   :  { %5749 = vmatpush1.msk.msra.mxu0 %vm1132_vm11, %v7235_v18  ;;  %5792 = vmatpush1.msk.msra.mxu1 %vm1134_vm12, %v7235_v18  ;;  %vm1101_vm11 = vcmp.eq.s32.totalorder %v7299_v4, %v8291_v13  ;;  %vm1261_vm12 = vcmp.eq.s32.totalorder %v7527_v31, %v8291_v13 }
  0xea   :  { %5750 = vmatprep.subr.msk.mxu0 %vm1125_vm13, %v7235_v18  ;;  %5793 = vmatprep.subr.msk.mxu1 %vm1127_vm14, %v7235_v18  ;;  %vm1263_vm13 = vcmp.eq.s32.totalorder %v7527_v31, %v8301_v14  ;;  %vm1103_vm14 = vcmp.eq.s32.totalorder %v7299_v4, %v8301_v14  ;;  %v5636_v46 = vsel %vm1261_vm12, 1.0, %v10896_v33  ;;  %vm1246_vm12 = vcmp.eq.s32.totalorder %v7593_v36, %v8313_v34 }
  0xeb   :  { %5751 = vmatpush1.msk.msra.mxu0 %vm1124_vm15, %v7235_v18  ;;  %5794 = vmatpush1.msk.msra.mxu1 %vm1126_vm0, %v7235_v18  ;;  %vm1260_vm15 = vcmp.eq.s32.totalorder %v7527_v31, %v8309_v16  ;;  %vm1262_vm0 = vcmp.eq.s32.totalorder %v7527_v31, %v8313_v34  ;;  %v5638_v47 = vsel %vm1263_vm13, 1.0, %v10896_v33  ;;  %vm1237_vm13 = vcmp.eq.s32.totalorder %v7618_v39, %v8291_v13 }
  0xec   :  { %5752 = vmatprep.subr.msk.mxu0 %vm1117_vm1, %v7235_v18  ;;  %5795 = vmatprep.subr.msk.mxu1 %vm1119_vm2, %v7235_v18  ;;  %vm1100_vm1 = vcmp.eq.s32.totalorder %v7299_v4, %v8309_v16  ;;  %vm1102_vm2 = vcmp.eq.s32.totalorder %v7299_v4, %v8313_v34  ;;  %v5635_v49 = vsel %vm1260_vm15, 1.0, %v10896_v33  ;;  %v5637_v50 = vsel %vm1262_vm0, 1.0, %v10896_v33 }
  0xed   :  { %5753 = vmatpush1.msk.msra.mxu0 %vm1116_vm3, %v7235_v18  ;;  %5796 = vmatpush1.msk.msra.mxu1 %vm1118_vm6, %v7235_v18  ;;  %vm1253_vm3 = vcmp.eq.s32.totalorder %v7568_v32, %v8291_v13  ;;  %vm1255_vm6 = vcmp.eq.s32.totalorder %v7568_v32, %v8301_v14  ;;  %vm1236_vm15 = vcmp.eq.s32.totalorder %v7618_v39, %v8309_v16 }
  0xee   :  { %5754 = vmatprep.subr.msk.mxu0 %vm1109_vm7, %v7235_v18  ;;  %5797 = vmatprep.subr.msk.mxu1 %vm1111_vm8, %v7235_v18  ;;  %vm1252_vm7 = vcmp.eq.s32.totalorder %v7568_v32, %v8309_v16  ;;  %vm1254_vm8 = vcmp.eq.s32.totalorder %v7568_v32, %v8313_v34  ;;  %vm1238_vm0 = vcmp.eq.s32.totalorder %v7618_v39, %v8313_v34 }
  0xef   :  { %5755 = vmatpush1.msk.msra.mxu0 %vm1108_vm9, %v7235_v18  ;;  %5798 = vmatpush1.msk.msra.mxu1 %vm1110_vm10, %v7235_v18  ;;  %vm1245_vm9 = vcmp.eq.s32.totalorder %v7593_v36, %v8291_v13  ;;  %vm1247_vm10 = vcmp.eq.s32.totalorder %v7593_v36, %v8301_v14 }
  0xf0   :  { %5756 = vmatprep.subr.msk.mxu0 %vm1101_vm11, %v7235_v18  ;;  %5799 = vmatprep.subr.msk.mxu1 %vm1103_vm14, %v7235_v18  ;;  %vm1244_vm11 = vcmp.eq.s32.totalorder %v7593_v36, %v8309_v16  ;;  %vm1239_vm14 = vcmp.eq.s32.totalorder %v7618_v39, %v8301_v14 }
  0xf1   :  { %5757 = vmatpush1.msk.msra.mxu0 %vm1100_vm1, %v7235_v18  ;;  %5800 = vmatpush1.msk.msra.mxu1 %vm1102_vm2, %v7235_v18  ;;  %vm1229_vm1 = vcmp.eq.s32.totalorder %v7627_v40, %v8291_v13  ;;  %vm1231_vm2 = vcmp.eq.s32.totalorder %v7627_v40, %v8301_v14 }
  0xf2   :  { %5758 = vmatprep.subr.msk.mxu0 %vm691_vm4, %v5636_v46  ;;  %5801 = vmatprep.subr.msk.mxu1 %vm691_vm4, %v5638_v47  ;;  %v9201_v46 = vadd.s32 368, %v7299_v4  ;;  %v9213_v47 = vadd.s32 360, %v7299_v4 }
  0xf3   :  { %5759 = vmatpush2.msk.msra.mxu0 %vm691_vm4, %v5635_v49  ;;  %5802 = vmatpush2.msk.msra.mxu1 %vm691_vm4, %v5637_v50  ;;  %v9244_v49 = vadd.s32 344, %v7299_v4  ;;  %v9259_v50 = vadd.s32 336, %v7299_v4 }
  0xf4   :  { %5760 = vmatprep.subr.msk.mxu0 %vm1253_vm3, %v7235_v18  ;;  %5803 = vmatprep.subr.msk.mxu1 %vm1255_vm6, %v7235_v18  ;;  %vm1228_vm3 = vcmp.eq.s32.totalorder %v7627_v40, %v8309_v16  ;;  %vm1230_vm6 = vcmp.eq.s32.totalorder %v7627_v40, %v8313_v34 }
  0xf5   :  { %5761 = vmatpush2.msk.msra.mxu0 %vm1252_vm7, %v7235_v18  ;;  %5804 = vmatpush2.msk.msra.mxu1 %vm1254_vm8, %v7235_v18  ;;  %vm2139_vm7 = vcmp.eq.s32.totalorder %v7311_v9, %v8592_v52  ;;  %vm2141_vm8 = vcmp.eq.s32.totalorder %v7311_v9, %v8596_v53 }
  0xf6   :  { %5762 = vmatprep.subr.msk.mxu0 %vm1245_vm9, %v7235_v18  ;;  %5805 = vmatprep.subr.msk.mxu1 %vm1247_vm10, %v7235_v18  ;;  %vm2138_vm9 = vcmp.eq.s32.totalorder %v7311_v9, %v8604_v54  ;;  %vm2140_vm10 = vcmp.eq.s32.totalorder %v7311_v9, %v8608_v55 }
  0xf7   :  { %5763 = vmatpush2.msk.msra.mxu0 %vm1244_vm11, %v7235_v18  ;;  %5806 = vmatpush2.msk.msra.mxu1 %vm1246_vm12, %v7235_v18  ;;  %vm2131_vm11 = vcmp.eq.s32.totalorder %v7331_v15, %v8592_v52  ;;  %vm2133_vm12 = vcmp.eq.s32.totalorder %v7331_v15, %v8596_v53 }
  0xf8   :  { %5764 = vmatprep.subr.msk.mxu0 %vm1237_vm13, %v7235_v18  ;;  %5807 = vmatprep.subr.msk.mxu1 %vm1239_vm14, %v7235_v18  ;;  %vm2130_vm13 = vcmp.eq.s32.totalorder %v7331_v15, %v8604_v54  ;;  %vm2132_vm14 = vcmp.eq.s32.totalorder %v7331_v15, %v8608_v55 }
  0xf9   :  { %5765 = vmatpush2.msk.msra.mxu0 %vm1236_vm15, %v7235_v18  ;;  %5808 = vmatpush2.msk.msra.mxu1 %vm1238_vm0, %v7235_v18  ;;  %vm2123_vm15 = vcmp.eq.s32.totalorder %v7338_v17, %v8592_v52  ;;  %vm2125_vm0 = vcmp.eq.s32.totalorder %v7338_v17, %v8596_v53 }
  0xfa   :  { %5766 = vmatprep.subr.msk.mxu0 %vm1229_vm1, %v7235_v18  ;;  %5809 = vmatprep.subr.msk.mxu1 %vm1231_vm2, %v7235_v18  ;;  %vm2122_vm1 = vcmp.eq.s32.totalorder %v7338_v17, %v8604_v54  ;;  %vm2124_vm2 = vcmp.eq.s32.totalorder %v7338_v17, %v8608_v55 }
  0xfb   :  { %5767 = vmatpush2.msk.msra.mxu0 %vm1228_vm3, %v7235_v18  ;;  %5768 = vmatprep.mubr.msk.f32.mxu0 %vm688_vm5, %v8281_v12  ;;  %vm2115_vm3 = vcmp.eq.s32.totalorder %v7351_v19, %v8592_v52 }
  0xfc   :  { %5810 = vmatpush2.msk.msra.mxu1 %vm1230_vm6, %v7235_v18  ;;  %5811 = vmatprep.mubr.msk.f32.mxu1 %vm688_vm5, %v8281_v12  ;;  %vm2117_vm6 = vcmp.eq.s32.totalorder %v7351_v19, %v8596_v53  ;;  %v7099_v12 = vtrunc.f32 %v2906_v10  ;;  %v9486_v10 = vadd.s32 224, %v7299_v4 }
  0xfd   :  { %1845 = vmatmul.mubr.f32.vlgmr.msra.gmra.mxu0 %v8320_v35  ;;  %1916 = vmatmul.mubr.f32.vlgmr.msra.gmra.mxu1 %v8320_v35 }
  0xfe   :  { %5981 = vmatprep.subr.msk.mxu0 %vm2139_vm7, %v7235_v18  ;;  %6024 = vmatprep.subr.msk.mxu1 %vm2141_vm8, %v7235_v18  ;;  %vm2114_vm7 = vcmp.eq.s32.totalorder %v7351_v19, %v8604_v54  ;;  %vm2116_vm8 = vcmp.eq.s32.totalorder %v7351_v19, %v8608_v55  ;;  %v9149_v35 = vcvt.f32.s32 %v7099_v12  ;;  %v9489_v12 = vadd.s32 432, %v7299_v4 }
  0xff   :  { %5982 = vmatpush1.msk.msra.mxu0 %vm2138_vm9, %v7235_v18  ;;  %6025 = vmatpush1.msk.msra.mxu1 %vm2140_vm10, %v7235_v18  ;;  %vm2107_vm9 = vcmp.eq.s32.totalorder %v7360_v20, %v8592_v52  ;;  %vm2109_vm10 = vcmp.eq.s32.totalorder %v7360_v20, %v8596_v53 }
 0x100   :  { %5983 = vmatprep.subr.msk.mxu0 %vm2131_vm11, %v7235_v18  ;;  %6026 = vmatprep.subr.msk.mxu1 %vm2133_vm12, %v7235_v18  ;;  %vm2106_vm11 = vcmp.eq.s32.totalorder %v7360_v20, %v8604_v54  ;;  %vm2108_vm12 = vcmp.eq.s32.totalorder %v7360_v20, %v8608_v55  ;;  %10939 = vst [vmem:[#allocation29_spill] sm:$0xff] %v9149_v35  ;;  %10940 = vst [vmem:[#allocation30_spill] sm:$0xff] %v9489_v12 }
 0x101   :  { %5984 = vmatpush1.msk.msra.mxu0 %vm2130_vm13, %v7235_v18  ;;  %6027 = vmatpush1.msk.msra.mxu1 %vm2132_vm14, %v7235_v18  ;;  %vm2099_vm13 = vcmp.eq.s32.totalorder %v7379_v21, %v8592_v52  ;;  %vm2101_vm14 = vcmp.eq.s32.totalorder %v7379_v21, %v8596_v53  ;;  %v9177_v37 = vrot.slane %v9149_v35, %v7302_v6 }
 0x102   :  { %5985 = vmatprep.subr.msk.mxu0 %vm2123_vm15, %v7235_v18  ;;  %6028 = vmatprep.subr.msk.mxu1 %vm2125_vm0, %v7235_v18  ;;  %vm2098_vm15 = vcmp.eq.s32.totalorder %v7379_v21, %v8604_v54  ;;  %vm2100_vm0 = vcmp.eq.s32.totalorder %v7379_v21, %v8608_v55  ;;  %v9190_v43 = vrot.slane %v9149_v35, %v7308_v8 }
 0x103   :  { %5986 = vmatpush1.msk.msra.mxu0 %vm2122_vm1, %v7235_v18  ;;  %6029 = vmatpush1.msk.msra.mxu1 %vm2124_vm2, %v7235_v18  ;;  %vm2091_vm1 = vcmp.eq.s32.totalorder %v7398_v22, %v8592_v52  ;;  %vm2093_vm2 = vcmp.eq.s32.totalorder %v7398_v22, %v8596_v53 }
 0x104   :  { %5987 = vmatprep.subr.msk.mxu0 %vm2115_vm3, %v7235_v18  ;;  %6030 = vmatprep.subr.msk.mxu1 %vm2117_vm6, %v7235_v18  ;;  %vm2090_vm3 = vcmp.eq.s32.totalorder %v7398_v22, %v8604_v54  ;;  %vm2092_vm6 = vcmp.eq.s32.totalorder %v7398_v22, %v8608_v55 }
 0x105   :  { %5988 = vmatpush1.msk.msra.mxu0 %vm2114_vm7, %v7235_v18  ;;  %6031 = vmatpush1.msk.msra.mxu1 %vm2116_vm8, %v7235_v18  ;;  %vm2083_vm7 = vcmp.eq.s32.totalorder %v7413_v23, %v8592_v52  ;;  %vm2085_vm8 = vcmp.eq.s32.totalorder %v7413_v23, %v8596_v53 }
 0x106   :  { %5989 = vmatprep.subr.msk.mxu0 %vm2107_vm9, %v7235_v18  ;;  %6032 = vmatprep.subr.msk.mxu1 %vm2109_vm10, %v7235_v18  ;;  %vm2082_vm9 = vcmp.eq.s32.totalorder %v7413_v23, %v8604_v54  ;;  %vm2084_vm10 = vcmp.eq.s32.totalorder %v7413_v23, %v8608_v55 }
 0x107   :  { %5990 = vmatpush1.msk.msra.mxu0 %vm2106_vm11, %v7235_v18  ;;  %6033 = vmatpush1.msk.msra.mxu1 %vm2108_vm12, %v7235_v18  ;;  %vm2075_vm11 = vcmp.eq.s32.totalorder %v7428_v24, %v8592_v52  ;;  %vm2077_vm12 = vcmp.eq.s32.totalorder %v7428_v24, %v8596_v53 }
 0x108   :  { %5991 = vmatprep.subr.msk.mxu0 %vm2099_vm13, %v7235_v18  ;;  %6034 = vmatprep.subr.msk.mxu1 %vm2101_vm14, %v7235_v18  ;;  %vm2074_vm13 = vcmp.eq.s32.totalorder %v7428_v24, %v8604_v54  ;;  %vm2076_vm14 = vcmp.eq.s32.totalorder %v7428_v24, %v8608_v55 }
 0x109   :  { %5992 = vmatpush1.msk.msra.mxu0 %vm2098_vm15, %v7235_v18  ;;  %6035 = vmatpush1.msk.msra.mxu1 %vm2100_vm0, %v7235_v18  ;;  %vm2067_vm15 = vcmp.eq.s32.totalorder %v7443_v25, %v8592_v52  ;;  %vm2069_vm0 = vcmp.eq.s32.totalorder %v7443_v25, %v8596_v53 }
 0x10a   :  { %5993 = vmatprep.subr.msk.mxu0 %vm2091_vm1, %v7235_v18  ;;  %6036 = vmatprep.subr.msk.mxu1 %vm2093_vm2, %v7235_v18  ;;  %vm2066_vm1 = vcmp.eq.s32.totalorder %v7443_v25, %v8604_v54  ;;  %vm2068_vm2 = vcmp.eq.s32.totalorder %v7443_v25, %v8608_v55 }
 0x10b   :  { %5994 = vmatpush1.msk.msra.mxu0 %vm2090_vm3, %v7235_v18  ;;  %6037 = vmatpush1.msk.msra.mxu1 %vm2092_vm6, %v7235_v18  ;;  %vm2059_vm3 = vcmp.eq.s32.totalorder %v7458_v26, %v8592_v52  ;;  %vm2061_vm6 = vcmp.eq.s32.totalorder %v7458_v26, %v8596_v53 }
 0x10c   :  { %5995 = vmatprep.subr.msk.mxu0 %vm2083_vm7, %v7235_v18  ;;  %6038 = vmatprep.subr.msk.mxu1 %vm2085_vm8, %v7235_v18  ;;  %vm2058_vm7 = vcmp.eq.s32.totalorder %v7458_v26, %v8604_v54  ;;  %vm2060_vm8 = vcmp.eq.s32.totalorder %v7458_v26, %v8608_v55 }
 0x10d   :  { %5996 = vmatpush1.msk.msra.mxu0 %vm2082_vm9, %v7235_v18  ;;  %6039 = vmatpush1.msk.msra.mxu1 %vm2084_vm10, %v7235_v18  ;;  %vm2051_vm9 = vcmp.eq.s32.totalorder %v7473_v27, %v8592_v52  ;;  %vm2053_vm10 = vcmp.eq.s32.totalorder %v7473_v27, %v8596_v53 }
 0x10e   :  { %5997 = vmatprep.subr.msk.mxu0 %vm2075_vm11, %v7235_v18  ;;  %6040 = vmatprep.subr.msk.mxu1 %vm2077_vm12, %v7235_v18  ;;  %vm2050_vm11 = vcmp.eq.s32.totalorder %v7473_v27, %v8604_v54  ;;  %vm2052_vm12 = vcmp.eq.s32.totalorder %v7473_v27, %v8608_v55 }
 0x10f   :  { %5998 = vmatpush1.msk.msra.mxu0 %vm2074_vm13, %v7235_v18  ;;  %6041 = vmatpush1.msk.msra.mxu1 %vm2076_vm14, %v7235_v18  ;;  %vm2043_vm13 = vcmp.eq.s32.totalorder %v7488_v28, %v8592_v52  ;;  %vm2045_vm14 = vcmp.eq.s32.totalorder %v7488_v28, %v8596_v53 }
 0x110   :  { %5999 = vmatprep.subr.msk.mxu0 %vm2067_vm15, %v7235_v18  ;;  %6042 = vmatprep.subr.msk.mxu1 %vm2069_vm0, %v7235_v18  ;;  %vm2042_vm15 = vcmp.eq.s32.totalorder %v7488_v28, %v8604_v54  ;;  %vm2044_vm0 = vcmp.eq.s32.totalorder %v7488_v28, %v8608_v55 }
 0x111   :  { %6000 = vmatpush1.msk.msra.mxu0 %vm2066_vm1, %v7235_v18  ;;  %6043 = vmatpush1.msk.msra.mxu1 %vm2068_vm2, %v7235_v18  ;;  %vm2035_vm1 = vcmp.eq.s32.totalorder %v7503_v29, %v8592_v52  ;;  %vm2037_vm2 = vcmp.eq.s32.totalorder %v7503_v29, %v8596_v53 }
 0x112   :  { %6001 = vmatprep.subr.msk.mxu0 %vm2059_vm3, %v7235_v18  ;;  %6044 = vmatprep.subr.msk.mxu1 %vm2061_vm6, %v7235_v18  ;;  %vm2034_vm3 = vcmp.eq.s32.totalorder %v7503_v29, %v8604_v54  ;;  %vm2036_vm6 = vcmp.eq.s32.totalorder %v7503_v29, %v8608_v55 }
 0x113   :  { %6002 = vmatpush1.msk.msra.mxu0 %vm2058_vm7, %v7235_v18  ;;  %6045 = vmatpush1.msk.msra.mxu1 %vm2060_vm8, %v7235_v18  ;;  %vm2027_vm7 = vcmp.eq.s32.totalorder %v7512_v30, %v8592_v52  ;;  %vm2029_vm8 = vcmp.eq.s32.totalorder %v7512_v30, %v8596_v53 }
 0x114   :  { %6003 = vmatprep.subr.msk.mxu0 %vm2051_vm9, %v7235_v18  ;;  %6046 = vmatprep.subr.msk.mxu1 %vm2053_vm10, %v7235_v18  ;;  %vm2026_vm9 = vcmp.eq.s32.totalorder %v7512_v30, %v8604_v54  ;;  %vm2028_vm10 = vcmp.eq.s32.totalorder %v7512_v30, %v8608_v55 }
 0x115   :  { %6004 = vmatpush1.msk.msra.mxu0 %vm2050_vm11, %v7235_v18  ;;  %6047 = vmatpush1.msk.msra.mxu1 %vm2052_vm12, %v7235_v18  ;;  %vm2019_vm11 = vcmp.eq.s32.totalorder %v7299_v4, %v8592_v52  ;;  %vm2179_vm12 = vcmp.eq.s32.totalorder %v7527_v31, %v8592_v52 }
 0x116   :  { %6005 = vmatprep.subr.msk.mxu0 %vm2043_vm13, %v7235_v18  ;;  %6048 = vmatprep.subr.msk.mxu1 %vm2045_vm14, %v7235_v18  ;;  %vm2181_vm13 = vcmp.eq.s32.totalorder %v7527_v31, %v8596_v53  ;;  %vm2021_vm14 = vcmp.eq.s32.totalorder %v7299_v4, %v8596_v53  ;;  %v5973_v56 = vsel %vm2179_vm12, 1.0, %v10896_v33  ;;  %vm2164_vm12 = vcmp.eq.s32.totalorder %v7593_v36, %v8608_v55 }
 0x117   :  { %6006 = vmatpush1.msk.msra.mxu0 %vm2042_vm15, %v7235_v18  ;;  %6049 = vmatpush1.msk.msra.mxu1 %vm2044_vm0, %v7235_v18  ;;  %vm2178_vm15 = vcmp.eq.s32.totalorder %v7527_v31, %v8604_v54  ;;  %vm2180_vm0 = vcmp.eq.s32.totalorder %v7527_v31, %v8608_v55  ;;  %v5975_v57 = vsel %vm2181_vm13, 1.0, %v10896_v33  ;;  %vm2155_vm13 = vcmp.eq.s32.totalorder %v7618_v39, %v8592_v52 }
 0x118   :  { %6007 = vmatprep.subr.msk.mxu0 %vm2035_vm1, %v7235_v18  ;;  %6050 = vmatprep.subr.msk.mxu1 %vm2037_vm2, %v7235_v18  ;;  %vm2018_vm1 = vcmp.eq.s32.totalorder %v7299_v4, %v8604_v54  ;;  %vm2020_vm2 = vcmp.eq.s32.totalorder %v7299_v4, %v8608_v55  ;;  %v5972_v58 = vsel %vm2178_vm15, 1.0, %v10896_v33  ;;  %v5974_v59 = vsel %vm2180_vm0, 1.0, %v10896_v33 }
 0x119   :  { %6008 = vmatpush1.msk.msra.mxu0 %vm2034_vm3, %v7235_v18  ;;  %6051 = vmatpush1.msk.msra.mxu1 %vm2036_vm6, %v7235_v18  ;;  %vm2171_vm3 = vcmp.eq.s32.totalorder %v7568_v32, %v8592_v52  ;;  %vm2173_vm6 = vcmp.eq.s32.totalorder %v7568_v32, %v8596_v53  ;;  %vm2154_vm15 = vcmp.eq.s32.totalorder %v7618_v39, %v8604_v54 }
 0x11a   :  { %6009 = vmatprep.subr.msk.mxu0 %vm2027_vm7, %v7235_v18  ;;  %6052 = vmatprep.subr.msk.mxu1 %vm2029_vm8, %v7235_v18  ;;  %vm2170_vm7 = vcmp.eq.s32.totalorder %v7568_v32, %v8604_v54  ;;  %vm2172_vm8 = vcmp.eq.s32.totalorder %v7568_v32, %v8608_v55  ;;  %vm2156_vm0 = vcmp.eq.s32.totalorder %v7618_v39, %v8608_v55 }
 0x11b   :  { %6010 = vmatpush1.msk.msra.mxu0 %vm2026_vm9, %v7235_v18  ;;  %6053 = vmatpush1.msk.msra.mxu1 %vm2028_vm10, %v7235_v18  ;;  %vm2163_vm9 = vcmp.eq.s32.totalorder %v7593_v36, %v8592_v52  ;;  %vm2165_vm10 = vcmp.eq.s32.totalorder %v7593_v36, %v8596_v53 }
 0x11c   :  { %6011 = vmatprep.subr.msk.mxu0 %vm2019_vm11, %v7235_v18  ;;  %6054 = vmatprep.subr.msk.mxu1 %vm2021_vm14, %v7235_v18  ;;  %vm2162_vm11 = vcmp.eq.s32.totalorder %v7593_v36, %v8604_v54  ;;  %vm2157_vm14 = vcmp.eq.s32.totalorder %v7618_v39, %v8596_v53 }
 0x11d   :  { %6012 = vmatpush1.msk.msra.mxu0 %vm2018_vm1, %v7235_v18  ;;  %6055 = vmatpush1.msk.msra.mxu1 %vm2020_vm2, %v7235_v18  ;;  %vm2147_vm1 = vcmp.eq.s32.totalorder %v7627_v40, %v8592_v52  ;;  %vm2149_vm2 = vcmp.eq.s32.totalorder %v7627_v40, %v8596_v53  ;;  %v9289_v52 = vadd.s32 320, %v7299_v4  ;;  %v9304_v53 = vadd.s32 312, %v7299_v4 }
 0x11e   :  { %6013 = vmatprep.subr.msk.mxu0 %vm691_vm4, %v5973_v56  ;;  %6056 = vmatprep.subr.msk.mxu1 %vm691_vm4, %v5975_v57  ;;  %v9349_v56 = vadd.s32 288, %v7299_v4  ;;  %v9364_v57 = vadd.s32 280, %v7299_v4 }
 0x11f   :  { %6014 = vmatpush2.msk.msra.mxu0 %vm691_vm4, %v5972_v58  ;;  %6057 = vmatpush2.msk.msra.mxu1 %vm691_vm4, %v5974_v59  ;;  %v9379_v58 = vadd.s32 272, %v7299_v4  ;;  %v9394_v59 = vadd.s32 264, %v7299_v4 }
 0x120   :  { %6015 = vmatprep.subr.msk.mxu0 %vm2171_vm3, %v7235_v18  ;;  %6058 = vmatprep.subr.msk.mxu1 %vm2173_vm6, %v7235_v18  ;;  %vm2146_vm3 = vcmp.eq.s32.totalorder %v7627_v40, %v8604_v54  ;;  %vm2148_vm6 = vcmp.eq.s32.totalorder %v7627_v40, %v8608_v55  ;;  %v9319_v54 = vadd.s32 304, %v7299_v4  ;;  %v9334_v55 = vadd.s32 296, %v7299_v4 }
 0x121   :  { %6016 = vmatpush2.msk.msra.mxu0 %vm2170_vm7, %v7235_v18  ;;  %6059 = vmatpush2.msk.msra.mxu1 %vm2172_vm8, %v7235_v18  ;;  %vm2143_vm7 = vcmp.eq.s32.totalorder %v7311_v9, %v8888_v62  ;;  %vm2145_vm8 = vcmp.eq.s32.totalorder %v7311_v9, %v8892_v63 }
 0x122   :  { %6017 = vmatprep.subr.msk.mxu0 %vm2163_vm9, %v7235_v18  ;;  %6060 = vmatprep.subr.msk.mxu1 %vm2165_vm10, %v7235_v18  ;;  %vm2142_vm9 = vcmp.eq.s32.totalorder %v7311_v9, %v8900_v0  ;;  %vm2144_vm10 = vcmp.eq.s32.totalorder %v7311_v9, %v8904_v1 }
 0x123   :  { %6018 = vmatpush2.msk.msra.mxu0 %vm2162_vm11, %v7235_v18  ;;  %6061 = vmatpush2.msk.msra.mxu1 %vm2164_vm12, %v7235_v18  ;;  %vm2135_vm11 = vcmp.eq.s32.totalorder %v7331_v15, %v8888_v62  ;;  %vm2137_vm12 = vcmp.eq.s32.totalorder %v7331_v15, %v8892_v63 }
 0x124   :  { %6019 = vmatprep.subr.msk.mxu0 %vm2155_vm13, %v7235_v18  ;;  %6062 = vmatprep.subr.msk.mxu1 %vm2157_vm14, %v7235_v18  ;;  %vm2134_vm13 = vcmp.eq.s32.totalorder %v7331_v15, %v8900_v0  ;;  %vm2136_vm14 = vcmp.eq.s32.totalorder %v7331_v15, %v8904_v1 }
 0x125   :  { %6020 = vmatpush2.msk.msra.mxu0 %vm2154_vm15, %v7235_v18  ;;  %6063 = vmatpush2.msk.msra.mxu1 %vm2156_vm0, %v7235_v18  ;;  %vm2127_vm15 = vcmp.eq.s32.totalorder %v7338_v17, %v8888_v62  ;;  %vm2129_vm0 = vcmp.eq.s32.totalorder %v7338_v17, %v8892_v63 }
 0x126   :  { %6021 = vmatprep.subr.msk.mxu0 %vm2147_vm1, %v7235_v18  ;;  %6064 = vmatprep.subr.msk.mxu1 %vm2149_vm2, %v7235_v18  ;;  %vm2126_vm1 = vcmp.eq.s32.totalorder %v7338_v17, %v8900_v0  ;;  %vm2128_vm2 = vcmp.eq.s32.totalorder %v7338_v17, %v8904_v1 }
 0x127   :  { %6022 = vmatpush2.msk.msra.mxu0 %vm2146_vm3, %v7235_v18  ;;  %6023 = vmatprep.mubr.msk.f32.mxu0 %vm688_vm5, %v8872_v61  ;;  %vm2119_vm3 = vcmp.eq.s32.totalorder %v7351_v19, %v8888_v62 }
 0x128   :  { %6065 = vmatpush2.msk.msra.mxu1 %vm2148_vm6, %v7235_v18  ;;  %6066 = vmatprep.mubr.msk.f32.mxu1 %vm688_vm5, %v8872_v61  ;;  %vm2121_vm6 = vcmp.eq.s32.totalorder %v7351_v19, %v8892_v63 }
 0x129   :  { %2625 = vmatmul.mubr.f32.vlgmr.msra.gmra.mxu0 %v8911_v2  ;;  %2696 = vmatmul.mubr.f32.vlgmr.msra.gmra.mxu1 %v8911_v2 }
 0x12a   :  { %6067 = vmatprep.subr.msk.mxu0 %vm2143_vm7, %v7235_v18  ;;  %6110 = vmatprep.subr.msk.mxu1 %vm2145_vm8, %v7235_v18  ;;  %vm2118_vm7 = vcmp.eq.s32.totalorder %v7351_v19, %v8900_v0  ;;  %vm2120_vm8 = vcmp.eq.s32.totalorder %v7351_v19, %v8904_v1 }
 0x12b   :  { %6068 = vmatpush1.msk.msra.mxu0 %vm2142_vm9, %v7235_v18  ;;  %6111 = vmatpush1.msk.msra.mxu1 %vm2144_vm10, %v7235_v18  ;;  %vm2111_vm9 = vcmp.eq.s32.totalorder %v7360_v20, %v8888_v62  ;;  %vm2113_vm10 = vcmp.eq.s32.totalorder %v7360_v20, %v8892_v63 }
 0x12c   :  { %6069 = vmatprep.subr.msk.mxu0 %vm2135_vm11, %v7235_v18  ;;  %6112 = vmatprep.subr.msk.mxu1 %vm2137_vm12, %v7235_v18  ;;  %vm2110_vm11 = vcmp.eq.s32.totalorder %v7360_v20, %v8900_v0  ;;  %vm2112_vm12 = vcmp.eq.s32.totalorder %v7360_v20, %v8904_v1 }
 0x12d   :  { %6070 = vmatpush1.msk.msra.mxu0 %vm2134_vm13, %v7235_v18  ;;  %6113 = vmatpush1.msk.msra.mxu1 %vm2136_vm14, %v7235_v18  ;;  %vm2103_vm13 = vcmp.eq.s32.totalorder %v7379_v21, %v8888_v62  ;;  %vm2105_vm14 = vcmp.eq.s32.totalorder %v7379_v21, %v8892_v63 }
 0x12e   :  { %6071 = vmatprep.subr.msk.mxu0 %vm2127_vm15, %v7235_v18  ;;  %6114 = vmatprep.subr.msk.mxu1 %vm2129_vm0, %v7235_v18  ;;  %vm2102_vm15 = vcmp.eq.s32.totalorder %v7379_v21, %v8900_v0  ;;  %vm2104_vm0 = vcmp.eq.s32.totalorder %v7379_v21, %v8904_v1 }
 0x12f   :  { %6072 = vmatpush1.msk.msra.mxu0 %vm2126_vm1, %v7235_v18  ;;  %6115 = vmatpush1.msk.msra.mxu1 %vm2128_vm2, %v7235_v18  ;;  %vm2095_vm1 = vcmp.eq.s32.totalorder %v7398_v22, %v8888_v62  ;;  %vm2097_vm2 = vcmp.eq.s32.totalorder %v7398_v22, %v8892_v63 }
 0x130   :  { %6073 = vmatprep.subr.msk.mxu0 %vm2119_vm3, %v7235_v18  ;;  %6116 = vmatprep.subr.msk.mxu1 %vm2121_vm6, %v7235_v18  ;;  %vm2094_vm3 = vcmp.eq.s32.totalorder %v7398_v22, %v8900_v0  ;;  %vm2096_vm6 = vcmp.eq.s32.totalorder %v7398_v22, %v8904_v1 }
 0x131   :  { %6074 = vmatpush1.msk.msra.mxu0 %vm2118_vm7, %v7235_v18  ;;  %6117 = vmatpush1.msk.msra.mxu1 %vm2120_vm8, %v7235_v18  ;;  %vm2087_vm7 = vcmp.eq.s32.totalorder %v7413_v23, %v8888_v62  ;;  %vm2089_vm8 = vcmp.eq.s32.totalorder %v7413_v23, %v8892_v63 }
 0x132   :  { %6075 = vmatprep.subr.msk.mxu0 %vm2111_vm9, %v7235_v18  ;;  %6118 = vmatprep.subr.msk.mxu1 %vm2113_vm10, %v7235_v18  ;;  %vm2086_vm9 = vcmp.eq.s32.totalorder %v7413_v23, %v8900_v0  ;;  %vm2088_vm10 = vcmp.eq.s32.totalorder %v7413_v23, %v8904_v1 }
 0x133   :  { %6076 = vmatpush1.msk.msra.mxu0 %vm2110_vm11, %v7235_v18  ;;  %6119 = vmatpush1.msk.msra.mxu1 %vm2112_vm12, %v7235_v18  ;;  %vm2079_vm11 = vcmp.eq.s32.totalorder %v7428_v24, %v8888_v62  ;;  %vm2081_vm12 = vcmp.eq.s32.totalorder %v7428_v24, %v8892_v63 }
 0x134   :  { %6077 = vmatprep.subr.msk.mxu0 %vm2103_vm13, %v7235_v18  ;;  %6120 = vmatprep.subr.msk.mxu1 %vm2105_vm14, %v7235_v18  ;;  %vm2078_vm13 = vcmp.eq.s32.totalorder %v7428_v24, %v8900_v0  ;;  %vm2080_vm14 = vcmp.eq.s32.totalorder %v7428_v24, %v8904_v1 }
 0x135   :  { %6078 = vmatpush1.msk.msra.mxu0 %vm2102_vm15, %v7235_v18  ;;  %6121 = vmatpush1.msk.msra.mxu1 %vm2104_vm0, %v7235_v18  ;;  %vm2071_vm15 = vcmp.eq.s32.totalorder %v7443_v25, %v8888_v62  ;;  %vm2073_vm0 = vcmp.eq.s32.totalorder %v7443_v25, %v8892_v63 }
 0x136   :  { %6079 = vmatprep.subr.msk.mxu0 %vm2095_vm1, %v7235_v18  ;;  %6122 = vmatprep.subr.msk.mxu1 %vm2097_vm2, %v7235_v18  ;;  %vm2070_vm1 = vcmp.eq.s32.totalorder %v7443_v25, %v8900_v0  ;;  %vm2072_vm2 = vcmp.eq.s32.totalorder %v7443_v25, %v8904_v1 }
 0x137   :  { %6080 = vmatpush1.msk.msra.mxu0 %vm2094_vm3, %v7235_v18  ;;  %6123 = vmatpush1.msk.msra.mxu1 %vm2096_vm6, %v7235_v18  ;;  %vm2063_vm3 = vcmp.eq.s32.totalorder %v7458_v26, %v8888_v62  ;;  %vm2065_vm6 = vcmp.eq.s32.totalorder %v7458_v26, %v8892_v63 }
 0x138   :  { %6081 = vmatprep.subr.msk.mxu0 %vm2087_vm7, %v7235_v18  ;;  %6124 = vmatprep.subr.msk.mxu1 %vm2089_vm8, %v7235_v18  ;;  %vm2062_vm7 = vcmp.eq.s32.totalorder %v7458_v26, %v8900_v0  ;;  %vm2064_vm8 = vcmp.eq.s32.totalorder %v7458_v26, %v8904_v1 }
 0x139   :  { %6082 = vmatpush1.msk.msra.mxu0 %vm2086_vm9, %v7235_v18  ;;  %6125 = vmatpush1.msk.msra.mxu1 %vm2088_vm10, %v7235_v18  ;;  %vm2055_vm9 = vcmp.eq.s32.totalorder %v7473_v27, %v8888_v62  ;;  %vm2057_vm10 = vcmp.eq.s32.totalorder %v7473_v27, %v8892_v63 }
 0x13a   :  { %6083 = vmatprep.subr.msk.mxu0 %vm2079_vm11, %v7235_v18  ;;  %6126 = vmatprep.subr.msk.mxu1 %vm2081_vm12, %v7235_v18  ;;  %vm2054_vm11 = vcmp.eq.s32.totalorder %v7473_v27, %v8900_v0  ;;  %vm2056_vm12 = vcmp.eq.s32.totalorder %v7473_v27, %v8904_v1 }
 0x13b   :  { %6084 = vmatpush1.msk.msra.mxu0 %vm2078_vm13, %v7235_v18  ;;  %6127 = vmatpush1.msk.msra.mxu1 %vm2080_vm14, %v7235_v18  ;;  %vm2047_vm13 = vcmp.eq.s32.totalorder %v7488_v28, %v8888_v62  ;;  %vm2049_vm14 = vcmp.eq.s32.totalorder %v7488_v28, %v8892_v63 }
 0x13c   :  { %6085 = vmatprep.subr.msk.mxu0 %vm2071_vm15, %v7235_v18  ;;  %6128 = vmatprep.subr.msk.mxu1 %vm2073_vm0, %v7235_v18  ;;  %vm2046_vm15 = vcmp.eq.s32.totalorder %v7488_v28, %v8900_v0  ;;  %vm2048_vm0 = vcmp.eq.s32.totalorder %v7488_v28, %v8904_v1 }
 0x13d   :  { %6086 = vmatpush1.msk.msra.mxu0 %vm2070_vm1, %v7235_v18  ;;  %6129 = vmatpush1.msk.msra.mxu1 %vm2072_vm2, %v7235_v18  ;;  %vm2039_vm1 = vcmp.eq.s32.totalorder %v7503_v29, %v8888_v62  ;;  %vm2041_vm2 = vcmp.eq.s32.totalorder %v7503_v29, %v8892_v63 }
 0x13e   :  { %6087 = vmatprep.subr.msk.mxu0 %vm2063_vm3, %v7235_v18  ;;  %6130 = vmatprep.subr.msk.mxu1 %vm2065_vm6, %v7235_v18  ;;  %vm2038_vm3 = vcmp.eq.s32.totalorder %v7503_v29, %v8900_v0  ;;  %vm2040_vm6 = vcmp.eq.s32.totalorder %v7503_v29, %v8904_v1 }
 0x13f   :  { %6088 = vmatpush1.msk.msra.mxu0 %vm2062_vm7, %v7235_v18  ;;  %6131 = vmatpush1.msk.msra.mxu1 %vm2064_vm8, %v7235_v18  ;;  %vm2031_vm7 = vcmp.eq.s32.totalorder %v7512_v30, %v8888_v62  ;;  %vm2033_vm8 = vcmp.eq.s32.totalorder %v7512_v30, %v8892_v63 }
 0x140   :  { %6089 = vmatprep.subr.msk.mxu0 %vm2055_vm9, %v7235_v18  ;;  %6132 = vmatprep.subr.msk.mxu1 %vm2057_vm10, %v7235_v18  ;;  %vm2030_vm9 = vcmp.eq.s32.totalorder %v7512_v30, %v8900_v0  ;;  %vm2032_vm10 = vcmp.eq.s32.totalorder %v7512_v30, %v8904_v1 }
 0x141   :  { %6090 = vmatpush1.msk.msra.mxu0 %vm2054_vm11, %v7235_v18  ;;  %6133 = vmatpush1.msk.msra.mxu1 %vm2056_vm12, %v7235_v18  ;;  %vm2023_vm11 = vcmp.eq.s32.totalorder %v7299_v4, %v8888_v62  ;;  %vm2183_vm12 = vcmp.eq.s32.totalorder %v7527_v31, %v8888_v62 }
 0x142   :  { %6091 = vmatprep.subr.msk.mxu0 %vm2047_vm13, %v7235_v18  ;;  %6134 = vmatprep.subr.msk.mxu1 %vm2049_vm14, %v7235_v18  ;;  %vm2185_vm13 = vcmp.eq.s32.totalorder %v7527_v31, %v8892_v63  ;;  %vm2025_vm14 = vcmp.eq.s32.totalorder %v7299_v4, %v8892_v63  ;;  %v5977_v13 = vsel %vm2183_vm12, 1.0, %v10896_v33  ;;  %vm2168_vm12 = vcmp.eq.s32.totalorder %v7593_v36, %v8904_v1 }
 0x143   :  { %6092 = vmatpush1.msk.msra.mxu0 %vm2046_vm15, %v7235_v18  ;;  %6135 = vmatpush1.msk.msra.mxu1 %vm2048_vm0, %v7235_v18  ;;  %vm2182_vm15 = vcmp.eq.s32.totalorder %v7527_v31, %v8900_v0  ;;  %vm2184_vm0 = vcmp.eq.s32.totalorder %v7527_v31, %v8904_v1  ;;  %v5979_v14 = vsel %vm2185_vm13, 1.0, %v10896_v33  ;;  %vm2161_vm13 = vcmp.eq.s32.totalorder %v7618_v39, %v8892_v63 }
 0x144   :  { %6093 = vmatprep.subr.msk.mxu0 %vm2039_vm1, %v7235_v18  ;;  %6136 = vmatprep.subr.msk.mxu1 %vm2041_vm2, %v7235_v18  ;;  %vm2022_vm1 = vcmp.eq.s32.totalorder %v7299_v4, %v8900_v0  ;;  %vm2024_vm2 = vcmp.eq.s32.totalorder %v7299_v4, %v8904_v1  ;;  %v5976_v16 = vsel %vm2182_vm15, 1.0, %v10896_v33  ;;  %v5978_v34 = vsel %vm2184_vm0, 1.0, %v10896_v33 }
 0x145   :  { %6094 = vmatpush1.msk.msra.mxu0 %vm2038_vm3, %v7235_v18  ;;  %6137 = vmatpush1.msk.msra.mxu1 %vm2040_vm6, %v7235_v18  ;;  %vm2175_vm3 = vcmp.eq.s32.totalorder %v7568_v32, %v8888_v62  ;;  %vm2177_vm6 = vcmp.eq.s32.totalorder %v7568_v32, %v8892_v63  ;;  %vm2160_vm15 = vcmp.eq.s32.totalorder %v7618_v39, %v8904_v1 }
 0x146   :  { %6095 = vmatprep.subr.msk.mxu0 %vm2031_vm7, %v7235_v18  ;;  %6138 = vmatprep.subr.msk.mxu1 %vm2033_vm8, %v7235_v18  ;;  %vm2174_vm7 = vcmp.eq.s32.totalorder %v7568_v32, %v8900_v0  ;;  %vm2176_vm8 = vcmp.eq.s32.totalorder %v7568_v32, %v8904_v1  ;;  %vm2151_vm0 = vcmp.eq.s32.totalorder %v7627_v40, %v8888_v62 }
 0x147   :  { %6096 = vmatpush1.msk.msra.mxu0 %vm2030_vm9, %v7235_v18  ;;  %6139 = vmatpush1.msk.msra.mxu1 %vm2032_vm10, %v7235_v18  ;;  %vm2167_vm9 = vcmp.eq.s32.totalorder %v7593_v36, %v8888_v62  ;;  %vm2169_vm10 = vcmp.eq.s32.totalorder %v7593_v36, %v8892_v63 }
 0x148   :  { %6097 = vmatprep.subr.msk.mxu0 %vm2023_vm11, %v7235_v18  ;;  %6140 = vmatprep.subr.msk.mxu1 %vm2025_vm14, %v7235_v18  ;;  %vm2166_vm11 = vcmp.eq.s32.totalorder %v7593_v36, %v8900_v0  ;;  %vm2158_vm14 = vcmp.eq.s32.totalorder %v7618_v39, %v8900_v0 }
 0x149   :  { %6098 = vmatpush1.msk.msra.mxu0 %vm2022_vm1, %v7235_v18  ;;  %6141 = vmatpush1.msk.msra.mxu1 %vm2024_vm2, %v7235_v18  ;;  %vm2153_vm1 = vcmp.eq.s32.totalorder %v7627_v40, %v8892_v63  ;;  %vm2150_vm2 = vcmp.eq.s32.totalorder %v7627_v40, %v8900_v0  ;;  %v9438_v63 = vadd.s32 240, %v7299_v4  ;;  %v9449_v0 = vadd.s32 448, %v7299_v4 }
 0x14a   :  { %6099 = vmatprep.subr.msk.mxu0 %vm691_vm4, %v5977_v13  ;;  %6142 = vmatprep.subr.msk.mxu1 %vm691_vm4, %v5979_v14  ;;  %v9504_v13 = vadd.s32 216, %v7299_v4  ;;  %v9507_v14 = vadd.s32 424, %v7299_v4 }
 0x14b   :  { %6100 = vmatpush2.msk.msra.mxu0 %vm691_vm4, %v5976_v16  ;;  %6143 = vmatpush2.msk.msra.mxu1 %vm691_vm4, %v5978_v34  ;;  %vm2159_vm4 = vcmp.eq.s32.totalorder %v7618_v39, %v8888_v62  ;;  %v9427_v62 = vadd.s32 248, %v7299_v4  ;;  %v9522_v16 = vadd.s32 208, %v7299_v4  ;;  %v9525_v34 = vadd.s32 416, %v7299_v4 }
 0x14c   :  { %6101 = vmatprep.subr.msk.mxu0 %vm2175_vm3, %v7235_v18  ;;  %6144 = vmatprep.subr.msk.mxu1 %vm2177_vm6, %v7235_v18  ;;  %vm2152_vm3 = vcmp.eq.s32.totalorder %v7627_v40, %v8904_v1  ;;  %vm3098_vm6 = vcmp.eq.s32.totalorder %v7311_v9, %v9177_v37  ;;  %10941 = vst [vmem:[#allocation31_spill] sm:$0xff] %v9507_v14 }
 0x14d   :  { %6102 = vmatpush2.msk.msra.mxu0 %vm2174_vm7, %v7235_v18  ;;  %6145 = vmatpush2.msk.msra.mxu1 %vm2176_vm8, %v7235_v18  ;;  %vm3354_vm7 = vcmp.eq.s32.totalorder %v9186_v38, %v9177_v37  ;;  %vm3097_vm8 = vcmp.eq.s32.totalorder %v7311_v9, %v9190_v43  ;;  %10942 = vst [vmem:[#allocation32_spill] sm:$0xff] %v9525_v34 }
 0x14e   :  { %6103 = vmatprep.subr.msk.mxu0 %vm2167_vm9, %v7235_v18  ;;  %6146 = vmatprep.subr.msk.mxu1 %vm2169_vm10, %v7235_v18  ;;  %vm3353_vm9 = vcmp.eq.s32.totalorder %v9186_v38, %v9190_v43  ;;  %vm3090_vm10 = vcmp.eq.s32.totalorder %v7331_v15, %v9177_v37 }
 0x14f   :  { %6104 = vmatpush2.msk.msra.mxu0 %vm2166_vm11, %v7235_v18  ;;  %6147 = vmatpush2.msk.msra.mxu1 %vm2168_vm12, %v7235_v18  ;;  %vm3346_vm11 = vcmp.eq.s32.totalorder %v9201_v46, %v9177_v37  ;;  %vm3345_vm12 = vcmp.eq.s32.totalorder %v9201_v46, %v9190_v43 }
 0x150   :  { %6105 = vmatprep.subr.msk.mxu0 %vm2159_vm4, %v7235_v18  ;;  %6148 = vmatprep.subr.msk.mxu1 %vm2161_vm13, %v7235_v18  ;;  %vm3082_vm4 = vcmp.eq.s32.totalorder %v7338_v17, %v9177_v37  ;;  %vm3338_vm13 = vcmp.eq.s32.totalorder %v9213_v47, %v9177_v37 }
 0x151   :  { %6106 = vmatpush2.msk.msra.mxu0 %vm2158_vm14, %v7235_v18  ;;  %6149 = vmatpush2.msk.msra.mxu1 %vm2160_vm15, %v7235_v18  ;;  %vm3081_vm14 = vcmp.eq.s32.totalorder %v7338_v17, %v9190_v43  ;;  %vm3337_vm15 = vcmp.eq.s32.totalorder %v9213_v47, %v9190_v43 }
 0x152   :  { %6107 = vmatprep.subr.msk.mxu0 %vm2151_vm0, %v7235_v18  ;;  %6150 = vmatprep.subr.msk.mxu1 %vm2153_vm1, %v7235_v18  ;;  %vm3074_vm0 = vcmp.eq.s32.totalorder %v7351_v19, %v9177_v37  ;;  %vm3330_vm1 = vcmp.eq.s32.totalorder %v9229_v48, %v9177_v37 }
 0x153   :  { %6108 = vmatpush2.msk.msra.mxu0 %vm2150_vm2, %v7235_v18  ;;  %6109 = vmatprep.mubr.msk.f32.mxu0 %vm688_vm5, %v8872_v61  ;;  %vm3073_vm2 = vcmp.eq.s32.totalorder %v7351_v19, %v9190_v43 }
 0x154   :  { %6151 = vmatpush2.msk.msra.mxu1 %vm2152_vm3, %v7235_v18  ;;  %6152 = vmatprep.mubr.msk.f32.mxu1 %vm688_vm5, %v8872_v61  ;;  %vm3089_vm5 = vcmp.eq.s32.totalorder %v7331_v15, %v9190_v43  ;;  %vm3329_vm3 = vcmp.eq.s32.totalorder %v9229_v48, %v9190_v43  ;;  %v9412_v61 = vadd.s32 256, %v7299_v4 }
 0x155   :  { %2767 = vmatmul.mubr.f32.vlgmr.msra.gmra.mxu0 %v8911_v2  ;;  %2838 = vmatmul.mubr.f32.vlgmr.msra.gmra.mxu1 %v8911_v2  ;;  %v9466_v2 = vadd.s32 232, %v7299_v4 }
 0x156   :  { %6617 = vmatprep.subr.msk.mxu0 %vm3098_vm6, %v7235_v18  ;;  %6681 = vmatprep.subr.msk.mxu1 %vm3354_vm7, %v7235_v18  ;;  %vm3066_vm6 = vcmp.eq.s32.totalorder %v7360_v20, %v9177_v37  ;;  %vm3322_vm7 = vcmp.eq.s32.totalorder %v9244_v49, %v9177_v37 }
 0x157   :  { %6618 = vmatpush1.msk.msra.mxu0 %vm3097_vm8, %v7235_v18  ;;  %6682 = vmatpush1.msk.msra.mxu1 %vm3353_vm9, %v7235_v18  ;;  %vm3065_vm8 = vcmp.eq.s32.totalorder %v7360_v20, %v9190_v43  ;;  %vm3321_vm9 = vcmp.eq.s32.totalorder %v9244_v49, %v9190_v43 }
 0x158   :  { %6619 = vmatprep.subr.msk.mxu0 %vm3090_vm10, %v7235_v18  ;;  %6683 = vmatprep.subr.msk.mxu1 %vm3346_vm11, %v7235_v18  ;;  %vm3058_vm10 = vcmp.eq.s32.totalorder %v7379_v21, %v9177_v37  ;;  %vm3314_vm11 = vcmp.eq.s32.totalorder %v9259_v50, %v9177_v37 }
 0x159   :  { %6620 = vmatpush1.msk.msra.mxu0 %vm3089_vm5, %v7235_v18  ;;  %6684 = vmatpush1.msk.msra.mxu1 %vm3345_vm12, %v7235_v18  ;;  %vm3057_vm5 = vcmp.eq.s32.totalorder %v7379_v21, %v9190_v43  ;;  %vm3313_vm12 = vcmp.eq.s32.totalorder %v9259_v50, %v9190_v43 }
 0x15a   :  { %6621 = vmatprep.subr.msk.mxu0 %vm3082_vm4, %v7235_v18  ;;  %6685 = vmatprep.subr.msk.mxu1 %vm3338_vm13, %v7235_v18  ;;  %vm3050_vm4 = vcmp.eq.s32.totalorder %v7398_v22, %v9177_v37  ;;  %vm3306_vm13 = vcmp.eq.s32.totalorder %v9274_v51, %v9177_v37 }
 0x15b   :  { %6622 = vmatpush1.msk.msra.mxu0 %vm3081_vm14, %v7235_v18  ;;  %6686 = vmatpush1.msk.msra.mxu1 %vm3337_vm15, %v7235_v18  ;;  %vm3049_vm14 = vcmp.eq.s32.totalorder %v7398_v22, %v9190_v43  ;;  %vm3305_vm15 = vcmp.eq.s32.totalorder %v9274_v51, %v9190_v43 }
 0x15c   :  { %6623 = vmatprep.subr.msk.mxu0 %vm3074_vm0, %v7235_v18  ;;  %6687 = vmatprep.subr.msk.mxu1 %vm3330_vm1, %v7235_v18  ;;  %vm3042_vm0 = vcmp.eq.s32.totalorder %v7413_v23, %v9177_v37  ;;  %vm3298_vm1 = vcmp.eq.s32.totalorder %v9289_v52, %v9177_v37 }
 0x15d   :  { %6624 = vmatpush1.msk.msra.mxu0 %vm3073_vm2, %v7235_v18  ;;  %6688 = vmatpush1.msk.msra.mxu1 %vm3329_vm3, %v7235_v18  ;;  %vm3041_vm2 = vcmp.eq.s32.totalorder %v7413_v23, %v9190_v43  ;;  %vm3297_vm3 = vcmp.eq.s32.totalorder %v9289_v52, %v9190_v43 }
 0x15e   :  { %6625 = vmatprep.subr.msk.mxu0 %vm3066_vm6, %v7235_v18  ;;  %6689 = vmatprep.subr.msk.mxu1 %vm3322_vm7, %v7235_v18  ;;  %vm3034_vm6 = vcmp.eq.s32.totalorder %v7428_v24, %v9177_v37  ;;  %vm3290_vm7 = vcmp.eq.s32.totalorder %v9304_v53, %v9177_v37 }
 0x15f   :  { %6626 = vmatpush1.msk.msra.mxu0 %vm3065_vm8, %v7235_v18  ;;  %6690 = vmatpush1.msk.msra.mxu1 %vm3321_vm9, %v7235_v18  ;;  %vm3033_vm8 = vcmp.eq.s32.totalorder %v7428_v24, %v9190_v43  ;;  %vm3289_vm9 = vcmp.eq.s32.totalorder %v9304_v53, %v9190_v43 }
 0x160   :  { %6627 = vmatprep.subr.msk.mxu0 %vm3058_vm10, %v7235_v18  ;;  %6691 = vmatprep.subr.msk.mxu1 %vm3314_vm11, %v7235_v18  ;;  %vm3026_vm10 = vcmp.eq.s32.totalorder %v7443_v25, %v9177_v37  ;;  %vm3282_vm11 = vcmp.eq.s32.totalorder %v9319_v54, %v9177_v37 }
 0x161   :  { %6628 = vmatpush1.msk.msra.mxu0 %vm3057_vm5, %v7235_v18  ;;  %6692 = vmatpush1.msk.msra.mxu1 %vm3313_vm12, %v7235_v18  ;;  %vm3025_vm5 = vcmp.eq.s32.totalorder %v7443_v25, %v9190_v43  ;;  %vm3281_vm12 = vcmp.eq.s32.totalorder %v9319_v54, %v9190_v43 }
 0x162   :  { %6629 = vmatprep.subr.msk.mxu0 %vm3050_vm4, %v7235_v18  ;;  %6693 = vmatprep.subr.msk.mxu1 %vm3306_vm13, %v7235_v18  ;;  %vm3018_vm4 = vcmp.eq.s32.totalorder %v7458_v26, %v9177_v37  ;;  %vm3274_vm13 = vcmp.eq.s32.totalorder %v9334_v55, %v9177_v37 }
 0x163   :  { %6630 = vmatpush1.msk.msra.mxu0 %vm3049_vm14, %v7235_v18  ;;  %6694 = vmatpush1.msk.msra.mxu1 %vm3305_vm15, %v7235_v18  ;;  %vm3017_vm14 = vcmp.eq.s32.totalorder %v7458_v26, %v9190_v43  ;;  %vm3273_vm15 = vcmp.eq.s32.totalorder %v9334_v55, %v9190_v43 }
 0x164   :  { %6631 = vmatprep.subr.msk.mxu0 %vm3042_vm0, %v7235_v18  ;;  %6695 = vmatprep.subr.msk.mxu1 %vm3298_vm1, %v7235_v18  ;;  %vm3010_vm0 = vcmp.eq.s32.totalorder %v7473_v27, %v9177_v37  ;;  %vm3266_vm1 = vcmp.eq.s32.totalorder %v9349_v56, %v9177_v37 }
 0x165   :  { %6632 = vmatpush1.msk.msra.mxu0 %vm3041_vm2, %v7235_v18  ;;  %6696 = vmatpush1.msk.msra.mxu1 %vm3297_vm3, %v7235_v18  ;;  %vm3009_vm2 = vcmp.eq.s32.totalorder %v7473_v27, %v9190_v43  ;;  %vm3265_vm3 = vcmp.eq.s32.totalorder %v9349_v56, %v9190_v43 }
 0x166   :  { %6633 = vmatprep.subr.msk.mxu0 %vm3034_vm6, %v7235_v18  ;;  %6697 = vmatprep.subr.msk.mxu1 %vm3290_vm7, %v7235_v18  ;;  %vm3002_vm6 = vcmp.eq.s32.totalorder %v7488_v28, %v9177_v37  ;;  %vm3258_vm7 = vcmp.eq.s32.totalorder %v9364_v57, %v9177_v37 }
 0x167   :  { %6634 = vmatpush1.msk.msra.mxu0 %vm3033_vm8, %v7235_v18  ;;  %6698 = vmatpush1.msk.msra.mxu1 %vm3289_vm9, %v7235_v18  ;;  %vm3001_vm8 = vcmp.eq.s32.totalorder %v7488_v28, %v9190_v43  ;;  %vm3257_vm9 = vcmp.eq.s32.totalorder %v9364_v57, %v9190_v43 }
 0x168   :  { %6635 = vmatprep.subr.msk.mxu0 %vm3026_vm10, %v7235_v18  ;;  %6699 = vmatprep.subr.msk.mxu1 %vm3282_vm11, %v7235_v18  ;;  %vm2994_vm10 = vcmp.eq.s32.totalorder %v7503_v29, %v9177_v37  ;;  %vm3250_vm11 = vcmp.eq.s32.totalorder %v9379_v58, %v9177_v37 }
 0x169   :  { %6636 = vmatpush1.msk.msra.mxu0 %vm3025_vm5, %v7235_v18  ;;  %6700 = vmatpush1.msk.msra.mxu1 %vm3281_vm12, %v7235_v18  ;;  %vm2993_vm5 = vcmp.eq.s32.totalorder %v7503_v29, %v9190_v43  ;;  %vm3249_vm12 = vcmp.eq.s32.totalorder %v9379_v58, %v9190_v43 }
 0x16a   :  { %6637 = vmatprep.subr.msk.mxu0 %vm3018_vm4, %v7235_v18  ;;  %6701 = vmatprep.subr.msk.mxu1 %vm3274_vm13, %v7235_v18  ;;  %vm2986_vm4 = vcmp.eq.s32.totalorder %v7512_v30, %v9177_v37  ;;  %vm3242_vm13 = vcmp.eq.s32.totalorder %v9394_v59, %v9177_v37 }
 0x16b   :  { %6638 = vmatpush1.msk.msra.mxu0 %vm3017_vm14, %v7235_v18  ;;  %6702 = vmatpush1.msk.msra.mxu1 %vm3273_vm15, %v7235_v18  ;;  %vm2985_vm14 = vcmp.eq.s32.totalorder %v7512_v30, %v9190_v43  ;;  %vm3241_vm15 = vcmp.eq.s32.totalorder %v9394_v59, %v9190_v43 }
 0x16c   :  { %6639 = vmatprep.subr.msk.mxu0 %vm3010_vm0, %v7235_v18  ;;  %6703 = vmatprep.subr.msk.mxu1 %vm3266_vm1, %v7235_v18  ;;  %vm3434_vm0 = vcmp.eq.s32.totalorder %v9403_v60, %v9177_v37  ;;  %vm2978_vm1 = vcmp.eq.s32.totalorder %v7299_v4, %v9177_v37 }
 0x16d   :  { %6640 = vmatpush1.msk.msra.mxu0 %vm3009_vm2, %v7235_v18  ;;  %6704 = vmatpush1.msk.msra.mxu1 %vm3265_vm3, %v7235_v18  ;;  %vm3234_vm2 = vcmp.eq.s32.totalorder %v9412_v61, %v9177_v37  ;;  %vm3433_vm3 = vcmp.eq.s32.totalorder %v9403_v60, %v9190_v43  ;;  %v6610_v1 = vsel %vm3434_vm0, 1.0, %v10896_v33  ;;  %vm3417_vm0 = vcmp.eq.s32.totalorder %v9469_v3, %v9190_v43 }
 0x16e   :  { %6641 = vmatprep.subr.msk.mxu0 %vm3002_vm6, %v7235_v18  ;;  %6705 = vmatprep.subr.msk.mxu1 %vm3258_vm7, %v7235_v18  ;;  %vm2977_vm6 = vcmp.eq.s32.totalorder %v7299_v4, %v9190_v43  ;;  %vm3233_vm7 = vcmp.eq.s32.totalorder %v9412_v61, %v9190_v43  ;;  %v6609_v5 = vsel %vm3433_vm3, 1.0, %v10896_v33  ;;  %vm3201_vm3 = vcmp.eq.s32.totalorder %v9486_v10, %v9190_v43 }
 0x16f   :  { %6642 = vmatpush1.msk.msra.mxu0 %vm3001_vm8, %v7235_v18  ;;  %6706 = vmatpush1.msk.msra.mxu1 %vm3257_vm9, %v7235_v18  ;;  %vm4393_vm8 = vcmask 1043456   ;;  %vm3226_vm9 = vcmp.eq.s32.totalorder %v9427_v62, %v9177_v37  ;;  %v9558_v33 = vadd.s32 192, %v7299_v4 }
 0x170   :  { %6643 = vmatprep.subr.msk.mxu0 %vm2994_vm10, %v7235_v18  ;;  %6707 = vmatprep.subr.msk.mxu1 %vm3250_vm11, %v7235_v18  ;;  %vm3225_vm10 = vcmp.eq.s32.totalorder %v9427_v62, %v9190_v43  ;;  %vm3218_vm11 = vcmp.eq.s32.totalorder %v9438_v63, %v9177_v37 }
 0x171   :  { %6644 = vmatpush1.msk.msra.mxu0 %vm2993_vm5, %v7235_v18  ;;  %6708 = vmatpush1.msk.msra.mxu1 %vm3249_vm12, %v7235_v18  ;;  %vm3426_vm5 = vcmp.eq.s32.totalorder %v9449_v0, %v9177_v37  ;;  %vm3217_vm12 = vcmp.eq.s32.totalorder %v9438_v63, %v9190_v43 }
 0x172   :  { %6645 = vmatprep.subr.msk.mxu0 %vm2986_vm4, %v7235_v18  ;;  %6709 = vmatprep.subr.msk.mxu1 %vm3242_vm13, %v7235_v18  ;;  %vm3425_vm4 = vcmp.eq.s32.totalorder %v9449_v0, %v9190_v43  ;;  %vm3210_vm13 = vcmp.eq.s32.totalorder %v9466_v2, %v9177_v37 }
 0x173   :  { %6646 = vmatpush1.msk.msra.mxu0 %vm2985_vm14, %v7235_v18  ;;  %6710 = vmatpush1.msk.msra.mxu1 %vm3241_vm15, %v7235_v18  ;;  %vm3418_vm14 = vcmp.eq.s32.totalorder %v9469_v3, %v9177_v37  ;;  %vm3209_vm15 = vcmp.eq.s32.totalorder %v9466_v2, %v9190_v43 }
 0x174   :  { %6647 = vmatprep.subr.msk.mxu0 %vm2978_vm1, %v7235_v18  ;;  %6711 = vmatprep.subr.msk.mxu1 %vm3234_vm2, %v7235_v18  ;;  %vm3202_vm1 = vcmp.eq.s32.totalorder %v9486_v10, %v9177_v37  ;;  %vm3410_vm2 = vcmp.eq.s32.totalorder %v9489_v12, %v9177_v37 }
 0x175   :  { %6648 = vmatpush1.msk.msra.mxu0 %vm2977_vm6, %v7235_v18  ;;  %6712 = vmatpush1.msk.msra.mxu1 %vm3233_vm7, %v7235_v18  ;;  %vm3409_vm6 = vcmp.eq.s32.totalorder %v9489_v12, %v9190_v43  ;;  %vm3194_vm7 = vcmp.eq.s32.totalorder %v9504_v13, %v9177_v37  ;;  %v9618_v12 = vrot.slane %v9149_v35, %v7305_v7 }
 0x176   :  { %6649 = vmatprep.subr.msk.mxu0 %vm3226_vm9, %v7235_v18  ;;  %6713 = vmatprep.subr.msk.mxu1 %vm4393_vm8, %v6610_v1  ;;  %vm3402_vm9 = vcmp.eq.s32.totalorder %v9507_v14, %v9177_v37  ;;  %v9540_v1 = vadd.s32 200, %v7299_v4 }
 0x177   :  { %6650 = vmatpush2.msk.msra.mxu0 %vm3225_vm10, %v7235_v18  ;;  %6714 = vmatpush2.msk.msra.mxu1 %vm4393_vm8, %v6609_v5  ;;  %v9543_v5 = vadd.s32 408, %v7299_v4  ;;  %vm3193_vm10 = vcmp.eq.s32.totalorder %v9504_v13, %v9190_v43 }
 0x178   :  { %6651 = vmatprep.subr.msk.mxu0 %vm3218_vm11, %v7235_v18  ;;  %6715 = vmatprep.subr.msk.mxu1 %vm3426_vm5, %v7235_v18  ;;  %vm3401_vm11 = vcmp.eq.s32.totalorder %v9507_v14, %v9190_v43  ;;  %vm3186_vm5 = vcmp.eq.s32.totalorder %v9522_v16, %v9177_v37  ;;  %v9614_v14 = vadd.s32 168, %v7299_v4 }
 0x179   :  { %6652 = vmatpush2.msk.msra.mxu0 %vm3217_vm12, %v7235_v18  ;;  %6716 = vmatpush2.msk.msra.mxu1 %vm3425_vm4, %v7235_v18  ;;  %10943 = vst [vmem:[#allocation33_spill] sm:$0xff] %v9543_v5  ;;  %vm3394_vm12 = vcmp.eq.s32.totalorder %v9525_v34, %v9177_v37  ;;  %vm3185_vm4 = vcmp.eq.s32.totalorder %v9522_v16, %v9190_v43 }
 0x17a   :  { %6653 = vmatprep.subr.msk.mxu0 %vm3210_vm13, %v7235_v18  ;;  %6717 = vmatprep.subr.msk.mxu1 %vm3418_vm14, %v7235_v18  ;;  %vm3393_vm13 = vcmp.eq.s32.totalorder %v9525_v34, %v9190_v43  ;;  %vm3178_vm14 = vcmp.eq.s32.totalorder %v9540_v1, %v9177_v37  ;;  %v9597_v34 = vadd.s32 384, %v7299_v4  ;;  %10948 = vst [vmem:[#allocation38_spill] sm:$0xff] %v9614_v14 }
 0x17b   :  { %6654 = vmatpush2.msk.msra.mxu0 %vm3209_vm15, %v7235_v18  ;;  %6718 = vmatpush2.msk.msra.mxu1 %vm3417_vm0, %v7235_v18  ;;  %vm3386_vm15 = vcmp.eq.s32.totalorder %v9543_v5, %v9177_v37  ;;  %vm3177_vm0 = vcmp.eq.s32.totalorder %v9540_v1, %v9190_v43 }
 0x17c   :  { %6655 = vmatprep.subr.msk.mxu0 %vm3202_vm1, %v7235_v18  ;;  %6719 = vmatprep.subr.msk.mxu1 %vm3410_vm2, %v7235_v18  ;;  %vm3385_vm1 = vcmp.eq.s32.totalorder %v9543_v5, %v9190_v43  ;;  %vm3170_vm2 = vcmp.eq.s32.totalorder %v9558_v33, %v9177_v37  ;;  %v9611_v5 = vld [vmem:[#allocation11] sm:$0xf] }
 0x17d   :  { %6656 = vmatpush2.msk.msra.mxu0 %vm3201_vm3, %v7235_v18  ;;  %6720 = vmatpush2.msk.msra.mxu1 %vm3409_vm6, %v7235_v18  ;;  %vm3378_vm3 = vcmp.eq.s32.totalorder %v9561_v45, %v9177_v37  ;;  %vm3169_vm6 = vcmp.eq.s32.totalorder %v9558_v33, %v9190_v43 }
 0x17e   :  { %6657 = vmatprep.subr.msk.mxu0 %vm3194_vm7, %v7235_v18  ;;  %6721 = vmatprep.subr.msk.mxu1 %vm3402_vm9, %v7235_v18  ;;  %vm3377_vm7 = vcmp.eq.s32.totalorder %v9561_v45, %v9190_v43  ;;  %vm3162_vm9 = vcmp.eq.s32.totalorder %v9576_v42, %v9177_v37  ;;  %v9628_v45 = vrot.slane %v9149_v35, %v7316_v11 }
 0x17f   :  { %6658 = vmatpush2.msk.msra.mxu0 %vm3193_vm10, %v7235_v18  ;;  %6722 = vmatpush2.msk.msra.mxu1 %vm3401_vm11, %v7235_v18  ;;  %vm3370_vm10 = vcmp.eq.s32.totalorder %v9579_v44, %v9177_v37  ;;  %vm3161_vm11 = vcmp.eq.s32.totalorder %v9576_v42, %v9190_v43  ;;  %v9644_v35 = vrot.slane %v9611_v5, %v7305_v7 }
 0x180   :  { %6659 = vmatprep.subr.msk.mxu0 %vm3186_vm5, %v7235_v18  ;;  %6723 = vmatprep.subr.msk.mxu1 %vm3394_vm12, %v7235_v18  ;;  %vm3369_vm5 = vcmp.eq.s32.totalorder %v9579_v44, %v9190_v43  ;;  %vm3154_vm12 = vcmp.eq.s32.totalorder %v9594_v41, %v9177_v37  ;;  %v9652_v44 = vrot.slane %v9611_v5, %v7316_v11 }
 0x181   :  { %6660 = vmatpush2.msk.msra.mxu0 %vm3185_vm4, %v7235_v18  ;;  %6724 = vmatpush2.msk.msra.mxu1 %vm3393_vm13, %v7235_v18  ;;  %vm3362_vm4 = vcmp.eq.s32.totalorder %v9597_v34, %v9177_v37  ;;  %vm3153_vm13 = vcmp.eq.s32.totalorder %v9594_v41, %v9190_v43  ;;  %v9721_v7 = vrot.slane %v9611_v5, %v7302_v6  ;;  %v10949_v6 = vmov 0.0  }
 0x182   :  { %6661 = vmatprep.subr.msk.mxu0 %vm3178_vm14, %v7235_v18  ;;  %6725 = vmatprep.subr.msk.mxu1 %vm3386_vm15, %v7235_v18  ;;  %vm3361_vm14 = vcmp.eq.s32.totalorder %v9597_v34, %v9190_v43  ;;  %vm4390_vm15 = vcmask 621568   ;;  %v9729_v11 = vrot.slane %v9611_v5, %v7308_v8  ;;  %v10951_v5 = vld [vmem:[#allocation31_spill] sm:$0xff] }
 0x183   :  { %6662 = vmatpush2.msk.msra.mxu0 %vm3177_vm0, %v7235_v18  ;;  %6726 = vmatpush2.msk.msra.mxu1 %vm3385_vm1, %v7235_v18  ;;  %vm3146_vm0 = vcmp.eq.s32.totalorder %v9614_v14, %v9177_v37  ;;  %vm3100_vm1 = vcmp.eq.s32.totalorder %v7311_v9, %v9618_v12 }
 0x184   :  { %6663 = vmatprep.subr.msk.mxu0 %vm3170_vm2, %v7235_v18  ;;  %6727 = vmatprep.subr.msk.mxu1 %vm3378_vm3, %v7235_v18  ;;  %vm3145_vm2 = vcmp.eq.s32.totalorder %v9614_v14, %v9190_v43  ;;  %vm3099_vm3 = vcmp.eq.s32.totalorder %v7311_v9, %v9628_v45 }
 0x185   :  { %6664 = vmatpush2.msk.msra.mxu0 %vm3169_vm6, %v7235_v18  ;;  %6728 = vmatpush2.msk.msra.mxu1 %vm3377_vm7, %v7235_v18  ;;  %vm3138_vm6 = vcmp.eq.s32.totalorder %v7527_v31, %v9177_v37  ;;  %vm3092_vm7 = vcmp.eq.s32.totalorder %v7331_v15, %v9618_v12 }
 0x186   :  { %6665 = vmatprep.subr.msk.mxu0 %vm3162_vm9, %v7235_v18  ;;  %6729 = vmatprep.subr.msk.mxu1 %vm3370_vm10, %v7235_v18  ;;  %vm3137_vm9 = vcmp.eq.s32.totalorder %v7527_v31, %v9190_v43  ;;  %vm3091_vm10 = vcmp.eq.s32.totalorder %v7331_v15, %v9628_v45 }
 0x187   :  { %6666 = vmatpush2.msk.msra.mxu0 %vm3161_vm11, %v7235_v18  ;;  %6730 = vmatpush2.msk.msra.mxu1 %vm3369_vm5, %v7235_v18  ;;  %vm3130_vm11 = vcmp.eq.s32.totalorder %v7568_v32, %v9177_v37  ;;  %vm3084_vm5 = vcmp.eq.s32.totalorder %v7338_v17, %v9618_v12 }
 0x188   :  { %6667 = vmatprep.subr.msk.mxu0 %vm3154_vm12, %v7235_v18  ;;  %6731 = vmatprep.subr.msk.mxu1 %vm3362_vm4, %v7235_v18  ;;  %vm3129_vm12 = vcmp.eq.s32.totalorder %v7568_v32, %v9190_v43  ;;  %vm3083_vm4 = vcmp.eq.s32.totalorder %v7338_v17, %v9628_v45 }
 0x189   :  { %6668 = vmatpush2.msk.msra.mxu0 %vm3153_vm13, %v7235_v18  ;;  %6732 = vmatpush2.msk.msra.mxu1 %vm3361_vm14, %v7235_v18  ;;  %vm3122_vm13 = vcmp.eq.s32.totalorder %v7593_v36, %v9177_v37  ;;  %vm3076_vm14 = vcmp.eq.s32.totalorder %v7351_v19, %v9618_v12 }
 0x18a   :  { %6733 = vmatprep.mubr.msk.f32.mxu1 %vm4390_vm15, %v9644_v35  ;;  %6669 = vmatprep.subr.msk.mxu0 %vm3146_vm0, %v7235_v18  ;;  %vm3121_vm0 = vcmp.eq.s32.totalorder %v7593_v36, %v9190_v43 }
 0x18b   :  { %4554 = vmatmul.mubr.f32.vlgmr.msra.gmra.mxu1 %v9652_v44  ;;  %6734 = vmatprep.subr.msk.mxu1 %vm3100_vm1, %v7235_v18  ;;  %vm3075_vm1 = vcmp.eq.s32.totalorder %v7351_v19, %v9628_v45 }
 0x18c   :  { %6670 = vmatpush2.msk.msra.mxu0 %vm3145_vm2, %v7235_v18  ;;  %6735 = vmatpush1.msk.msra.mxu1 %vm3099_vm3, %v7235_v18  ;;  %vm3114_vm2 = vcmp.eq.s32.totalorder %v7618_v39, %v9177_v37  ;;  %vm3068_vm3 = vcmp.eq.s32.totalorder %v7360_v20, %v9618_v12 }
 0x18d   :  { %6671 = vmatprep.subr.msk.mxu0 %vm3138_vm6, %v7235_v18  ;;  %6736 = vmatprep.subr.msk.mxu1 %vm3092_vm7, %v7235_v18  ;;  %vm3113_vm6 = vcmp.eq.s32.totalorder %v7618_v39, %v9190_v43  ;;  %vm3067_vm7 = vcmp.eq.s32.totalorder %v7360_v20, %v9628_v45 }
 0x18e   :  { %6672 = vmatpush2.msk.msra.mxu0 %vm3137_vm9, %v7235_v18  ;;  %6737 = vmatpush1.msk.msra.mxu1 %vm3091_vm10, %v7235_v18  ;;  %vm3106_vm9 = vcmp.eq.s32.totalorder %v7627_v40, %v9177_v37  ;;  %vm3060_vm10 = vcmp.eq.s32.totalorder %v7379_v21, %v9618_v12 }
 0x18f   :  { %6673 = vmatprep.subr.msk.mxu0 %vm3130_vm11, %v7235_v18  ;;  %6738 = vmatprep.subr.msk.mxu1 %vm3084_vm5, %v7235_v18  ;;  %vm3105_vm11 = vcmp.eq.s32.totalorder %v7627_v40, %v9190_v43  ;;  %vm3059_vm5 = vcmp.eq.s32.totalorder %v7379_v21, %v9628_v45  ;;  %v10950_v43 = vld [vmem:[#allocation30_spill] sm:$0xff] }
 0x190   :  { %6674 = vmatpush2.msk.msra.mxu0 %vm3129_vm12, %v7235_v18  ;;  %6739 = vmatpush1.msk.msra.mxu1 %vm3083_vm4, %v7235_v18  ;;  %vm3052_vm12 = vcmp.eq.s32.totalorder %v7398_v22, %v9618_v12  ;;  %vm3356_vm4 = vcmp.eq.s32.totalorder %v9186_v38, %v9618_v12 }
 0x191   :  { %6675 = vmatprep.subr.msk.mxu0 %vm3122_vm13, %v7235_v18  ;;  %6740 = vmatprep.subr.msk.mxu1 %vm3076_vm14, %v7235_v18  ;;  %vm3051_vm13 = vcmp.eq.s32.totalorder %v7398_v22, %v9628_v45  ;;  %vm3355_vm14 = vcmp.eq.s32.totalorder %v9186_v38, %v9628_v45 }
 0x192   :  { %6676 = vmatpush2.msk.msra.mxu0 %vm3121_vm0, %v7235_v18  ;;  %6741 = vmatpush1.msk.msra.mxu1 %vm3075_vm1, %v7235_v18  ;;  %vm3044_vm0 = vcmp.eq.s32.totalorder %v7413_v23, %v9618_v12  ;;  %vm3348_vm1 = vcmp.eq.s32.totalorder %v9201_v46, %v9618_v12 }
 0x193   :  { %6677 = vmatprep.subr.msk.mxu0 %vm3114_vm2, %v7235_v18  ;;  %6742 = vmatprep.subr.msk.mxu1 %vm3068_vm3, %v7235_v18  ;;  %vm3043_vm2 = vcmp.eq.s32.totalorder %v7413_v23, %v9628_v45  ;;  %vm3347_vm3 = vcmp.eq.s32.totalorder %v9201_v46, %v9628_v45 }
 0x194   :  { %6678 = vmatpush2.msk.msra.mxu0 %vm3113_vm6, %v7235_v18  ;;  %6743 = vmatpush1.msk.msra.mxu1 %vm3067_vm7, %v7235_v18  ;;  %vm3036_vm6 = vcmp.eq.s32.totalorder %v7428_v24, %v9618_v12  ;;  %vm3340_vm7 = vcmp.eq.s32.totalorder %v9213_v47, %v9618_v12 }
 0x195   :  { %6679 = vmatprep.subr.msk.mxu0 %vm3106_vm9, %v7235_v18  ;;  %6744 = vmatprep.subr.msk.mxu1 %vm3060_vm10, %v7235_v18  ;;  %vm3035_vm9 = vcmp.eq.s32.totalorder %v7428_v24, %v9628_v45  ;;  %vm3339_vm10 = vcmp.eq.s32.totalorder %v9213_v47, %v9628_v45 }
 0x196   :  { %6680 = vmatpush2.msk.msra.mxu0 %vm3105_vm11, %v7235_v18  ;;  %4482 = vmatprep.mubr.f32.mxu0 %v9721_v7  ;;  %vm3028_vm11 = vcmp.eq.s32.totalorder %v7443_v25, %v9618_v12 }
 0x197   :  { %6745 = vmatpush1.msk.msra.mxu1 %vm3059_vm5, %v7235_v18  ;;  %4483 = vmatmul.mubr.f32.vlgmr.msra.gmra.mxu0 %v9729_v11  ;;  %vm3332_vm5 = vcmp.eq.s32.totalorder %v9229_v48, %v9618_v12 }
 0x198   :  { %6746 = vmatprep.subr.msk.mxu1 %vm3052_vm12, %v7235_v18  ;;  %6798 = vmatprep.subr.msk.mxu0 %vm3356_vm4, %v7235_v18  ;;  %vm3027_vm12 = vcmp.eq.s32.totalorder %v7443_v25, %v9628_v45  ;;  %vm3331_vm4 = vcmp.eq.s32.totalorder %v9229_v48, %v9628_v45 }
 0x199   :  { %6747 = vmatpush1.msk.msra.mxu1 %vm3051_vm13, %v7235_v18  ;;  %6799 = vmatpush1.msk.msra.mxu0 %vm3355_vm14, %v7235_v18  ;;  %vm3020_vm13 = vcmp.eq.s32.totalorder %v7458_v26, %v9618_v12  ;;  %vm3324_vm14 = vcmp.eq.s32.totalorder %v9244_v49, %v9618_v12 }
 0x19a   :  { %6748 = vmatprep.subr.msk.mxu1 %vm3044_vm0, %v7235_v18  ;;  %6800 = vmatprep.subr.msk.mxu0 %vm3348_vm1, %v7235_v18  ;;  %vm3019_vm0 = vcmp.eq.s32.totalorder %v7458_v26, %v9628_v45  ;;  %vm3323_vm1 = vcmp.eq.s32.totalorder %v9244_v49, %v9628_v45 }
 0x19b   :  { %6749 = vmatpush1.msk.msra.mxu1 %vm3043_vm2, %v7235_v18  ;;  %6801 = vmatpush1.msk.msra.mxu0 %vm3347_vm3, %v7235_v18  ;;  %vm3012_vm2 = vcmp.eq.s32.totalorder %v7473_v27, %v9618_v12  ;;  %vm3316_vm3 = vcmp.eq.s32.totalorder %v9259_v50, %v9618_v12 }
 0x19c   :  { %6750 = vmatprep.subr.msk.mxu1 %vm3036_vm6, %v7235_v18  ;;  %6802 = vmatprep.subr.msk.mxu0 %vm3340_vm7, %v7235_v18  ;;  %vm3011_vm6 = vcmp.eq.s32.totalorder %v7473_v27, %v9628_v45  ;;  %vm3315_vm7 = vcmp.eq.s32.totalorder %v9259_v50, %v9628_v45 }
 0x19d   :  { %6751 = vmatpush1.msk.msra.mxu1 %vm3035_vm9, %v7235_v18  ;;  %6803 = vmatpush1.msk.msra.mxu0 %vm3339_vm10, %v7235_v18  ;;  %vm3004_vm9 = vcmp.eq.s32.totalorder %v7488_v28, %v9618_v12  ;;  %vm3308_vm10 = vcmp.eq.s32.totalorder %v9274_v51, %v9618_v12 }
 0x19e   :  { %6752 = vmatprep.subr.msk.mxu1 %vm3028_vm11, %v7235_v18  ;;  %6804 = vmatprep.subr.msk.mxu0 %vm3332_vm5, %v7235_v18  ;;  %vm3003_vm11 = vcmp.eq.s32.totalorder %v7488_v28, %v9628_v45  ;;  %vm3307_vm5 = vcmp.eq.s32.totalorder %v9274_v51, %v9628_v45 }
 0x19f   :  { %6753 = vmatpush1.msk.msra.mxu1 %vm3027_vm12, %v7235_v18  ;;  %6805 = vmatpush1.msk.msra.mxu0 %vm3331_vm4, %v7235_v18  ;;  %vm2996_vm12 = vcmp.eq.s32.totalorder %v7503_v29, %v9618_v12  ;;  %vm3300_vm4 = vcmp.eq.s32.totalorder %v9289_v52, %v9618_v12 }
 0x1a0   :  { %6754 = vmatprep.subr.msk.mxu1 %vm3020_vm13, %v7235_v18  ;;  %6806 = vmatprep.subr.msk.mxu0 %vm3324_vm14, %v7235_v18  ;;  %vm2995_vm13 = vcmp.eq.s32.totalorder %v7503_v29, %v9628_v45  ;;  %vm3299_vm14 = vcmp.eq.s32.totalorder %v9289_v52, %v9628_v45 }
 0x1a1   :  { %6755 = vmatpush1.msk.msra.mxu1 %vm3019_vm0, %v7235_v18  ;;  %6807 = vmatpush1.msk.msra.mxu0 %vm3323_vm1, %v7235_v18  ;;  %vm2988_vm0 = vcmp.eq.s32.totalorder %v7512_v30, %v9618_v12  ;;  %vm3292_vm1 = vcmp.eq.s32.totalorder %v9304_v53, %v9618_v12 }
 0x1a2   :  { %6756 = vmatprep.subr.msk.mxu1 %vm3012_vm2, %v7235_v18  ;;  %6808 = vmatprep.subr.msk.mxu0 %vm3316_vm3, %v7235_v18  ;;  %vm2987_vm2 = vcmp.eq.s32.totalorder %v7512_v30, %v9628_v45  ;;  %vm3291_vm3 = vcmp.eq.s32.totalorder %v9304_v53, %v9628_v45 }
 0x1a3   :  { %6757 = vmatpush1.msk.msra.mxu1 %vm3011_vm6, %v7235_v18  ;;  %6809 = vmatpush1.msk.msra.mxu0 %vm3315_vm7, %v7235_v18  ;;  %vm2980_vm6 = vcmp.eq.s32.totalorder %v7299_v4, %v9618_v12  ;;  %vm3284_vm7 = vcmp.eq.s32.totalorder %v9319_v54, %v9618_v12 }
 0x1a4   :  { %6758 = vmatprep.subr.msk.mxu1 %vm3004_vm9, %v7235_v18  ;;  %6810 = vmatprep.subr.msk.mxu0 %vm3308_vm10, %v7235_v18  ;;  %vm2979_vm9 = vcmp.eq.s32.totalorder %v7299_v4, %v9628_v45  ;;  %vm3283_vm10 = vcmp.eq.s32.totalorder %v9319_v54, %v9628_v45 }
 0x1a5   :  { %6759 = vmatpush1.msk.msra.mxu1 %vm3003_vm11, %v7235_v18  ;;  %6811 = vmatpush1.msk.msra.mxu0 %vm3307_vm5, %v7235_v18  ;;  %vm3228_vm11 = vcmp.eq.s32.totalorder %v9427_v62, %v9618_v12  ;;  %vm3276_vm5 = vcmp.eq.s32.totalorder %v9334_v55, %v9618_v12 }
 0x1a6   :  { %6760 = vmatprep.subr.msk.mxu1 %vm2996_vm12, %v7235_v18  ;;  %6812 = vmatprep.subr.msk.mxu0 %vm3300_vm4, %v7235_v18  ;;  %vm3227_vm12 = vcmp.eq.s32.totalorder %v9427_v62, %v9628_v45  ;;  %vm3275_vm4 = vcmp.eq.s32.totalorder %v9334_v55, %v9628_v45 }
 0x1a7   :  { %6761 = vmatpush1.msk.msra.mxu1 %vm2995_vm13, %v7235_v18  ;;  %6813 = vmatpush1.msk.msra.mxu0 %vm3299_vm14, %v7235_v18  ;;  %vm3220_vm13 = vcmp.eq.s32.totalorder %v9438_v63, %v9618_v12  ;;  %vm3268_vm14 = vcmp.eq.s32.totalorder %v9349_v56, %v9618_v12 }
 0x1a8   :  { %6762 = vmatprep.subr.msk.mxu1 %vm2988_vm0, %v7235_v18  ;;  %6814 = vmatprep.subr.msk.mxu0 %vm3292_vm1, %v7235_v18  ;;  %vm3219_vm0 = vcmp.eq.s32.totalorder %v9438_v63, %v9628_v45  ;;  %vm3267_vm1 = vcmp.eq.s32.totalorder %v9349_v56, %v9628_v45 }
 0x1a9   :  { %6763 = vmatpush1.msk.msra.mxu1 %vm2987_vm2, %v7235_v18  ;;  %6815 = vmatpush1.msk.msra.mxu0 %vm3291_vm3, %v7235_v18  ;;  %vm3212_vm2 = vcmp.eq.s32.totalorder %v9466_v2, %v9618_v12  ;;  %vm3260_vm3 = vcmp.eq.s32.totalorder %v9364_v57, %v9618_v12 }
 0x1aa   :  { %6764 = vmatprep.subr.msk.mxu1 %vm2980_vm6, %v7235_v18  ;;  %6816 = vmatprep.subr.msk.mxu0 %vm3284_vm7, %v7235_v18  ;;  %vm3211_vm6 = vcmp.eq.s32.totalorder %v9466_v2, %v9628_v45  ;;  %vm3259_vm7 = vcmp.eq.s32.totalorder %v9364_v57, %v9628_v45 }
 0x1ab   :  { %6765 = vmatpush1.msk.msra.mxu1 %vm2979_vm9, %v7235_v18  ;;  %6817 = vmatpush1.msk.msra.mxu0 %vm3283_vm10, %v7235_v18  ;;  %vm3204_vm9 = vcmp.eq.s32.totalorder %v9486_v10, %v9618_v12  ;;  %vm3252_vm10 = vcmp.eq.s32.totalorder %v9379_v58, %v9618_v12 }
 0x1ac   :  { %6766 = vmatprep.subr.msk.mxu1 %vm3228_vm11, %v7235_v18  ;;  %6818 = vmatprep.subr.msk.mxu0 %vm3276_vm5, %v7235_v18  ;;  %vm3203_vm11 = vcmp.eq.s32.totalorder %v9486_v10, %v9628_v45  ;;  %vm3251_vm5 = vcmp.eq.s32.totalorder %v9379_v58, %v9628_v45 }
 0x1ad   :  { %6767 = vmatpush2.msk.msra.mxu1 %vm3227_vm12, %v7235_v18  ;;  %6819 = vmatpush1.msk.msra.mxu0 %vm3275_vm4, %v7235_v18  ;;  %vm3196_vm12 = vcmp.eq.s32.totalorder %v9504_v13, %v9618_v12  ;;  %vm3244_vm4 = vcmp.eq.s32.totalorder %v9394_v59, %v9618_v12 }
 0x1ae   :  { %6768 = vmatprep.subr.msk.mxu1 %vm3220_vm13, %v7235_v18  ;;  %6820 = vmatprep.subr.msk.mxu0 %vm3268_vm14, %v7235_v18  ;;  %vm3195_vm13 = vcmp.eq.s32.totalorder %v9504_v13, %v9628_v45  ;;  %vm3243_vm14 = vcmp.eq.s32.totalorder %v9394_v59, %v9628_v45 }
 0x1af   :  { %6769 = vmatpush2.msk.msra.mxu1 %vm3219_vm0, %v7235_v18  ;;  %6821 = vmatpush1.msk.msra.mxu0 %vm3267_vm1, %v7235_v18  ;;  %vm3436_vm0 = vcmp.eq.s32.totalorder %v9403_v60, %v9618_v12  ;;  %vm3188_vm1 = vcmp.eq.s32.totalorder %v9522_v16, %v9618_v12 }
 0x1b0   :  { %6770 = vmatprep.subr.msk.mxu1 %vm3212_vm2, %v7235_v18  ;;  %6822 = vmatprep.subr.msk.mxu0 %vm3260_vm3, %v7235_v18  ;;  %vm3236_vm2 = vcmp.eq.s32.totalorder %v9412_v61, %v9618_v12  ;;  %vm3435_vm3 = vcmp.eq.s32.totalorder %v9403_v60, %v9628_v45  ;;  %v6612_v8 = vsel %vm3436_vm0, 1.0, %v10949_v6  ;;  %vm3163_vm0 = vcmp.eq.s32.totalorder %v9576_v42, %v9628_v45 }
 0x1b1   :  { %6771 = vmatpush2.msk.msra.mxu1 %vm3211_vm6, %v7235_v18  ;;  %6823 = vmatpush1.msk.msra.mxu0 %vm3259_vm7, %v7235_v18  ;;  %vm3187_vm6 = vcmp.eq.s32.totalorder %v9522_v16, %v9628_v45  ;;  %vm3235_vm7 = vcmp.eq.s32.totalorder %v9412_v61, %v9628_v45  ;;  %v6611_v37 = vsel %vm3435_vm3, 1.0, %v10949_v6  ;;  %vm3412_vm3 = vcmp.eq.s32.totalorder %v10950_v43, %v9618_v12 }
 0x1b2   :  { %6772 = vmatprep.subr.msk.mxu1 %vm3204_vm9, %v7235_v18  ;;  %6824 = vmatprep.subr.msk.mxu0 %vm3252_vm10, %v7235_v18  ;;  %vm3180_vm9 = vcmp.eq.s32.totalorder %v9540_v1, %v9618_v12  ;;  %vm3179_vm10 = vcmp.eq.s32.totalorder %v9540_v1, %v9628_v45 }
 0x1b3   :  { %6773 = vmatpush2.msk.msra.mxu1 %vm3203_vm11, %v7235_v18  ;;  %6825 = vmatpush1.msk.msra.mxu0 %vm3251_vm5, %v7235_v18  ;;  %vm3172_vm11 = vcmp.eq.s32.totalorder %v9558_v33, %v9618_v12  ;;  %vm3428_vm5 = vcmp.eq.s32.totalorder %v9449_v0, %v9618_v12 }
 0x1b4   :  { %6774 = vmatprep.subr.msk.mxu1 %vm3196_vm12, %v7235_v18  ;;  %6826 = vmatprep.subr.msk.mxu0 %vm3244_vm4, %v7235_v18  ;;  %vm3171_vm12 = vcmp.eq.s32.totalorder %v9558_v33, %v9628_v45  ;;  %vm3427_vm4 = vcmp.eq.s32.totalorder %v9449_v0, %v9628_v45 }
 0x1b5   :  { %6775 = vmatpush2.msk.msra.mxu1 %vm3195_vm13, %v7235_v18  ;;  %6827 = vmatpush1.msk.msra.mxu0 %vm3243_vm14, %v7235_v18  ;;  %vm3164_vm13 = vcmp.eq.s32.totalorder %v9576_v42, %v9618_v12  ;;  %vm3420_vm14 = vcmp.eq.s32.totalorder %v9469_v3, %v9618_v12  ;;  %v10958_v42 = vld [vmem:[#allocation27_spill] sm:$0xff] }
 0x1b6   :  { %6776 = vmatprep.subr.msk.mxu1 %vm3188_vm1, %v7235_v18  ;;  %6828 = vmatprep.subr.msk.mxu0 %vm3236_vm2, %v7235_v18  ;;  %vm3419_vm1 = vcmp.eq.s32.totalorder %v9469_v3, %v9628_v45  ;;  %vm3156_vm2 = vcmp.eq.s32.totalorder %v9594_v41, %v9618_v12 }
 0x1b7   :  { %6777 = vmatpush2.msk.msra.mxu1 %vm3187_vm6, %v7235_v18  ;;  %6829 = vmatpush1.msk.msra.mxu0 %vm3235_vm7, %v7235_v18  ;;  %vm3155_vm6 = vcmp.eq.s32.totalorder %v9594_v41, %v9628_v45  ;;  %vm3411_vm7 = vcmp.eq.s32.totalorder %v10950_v43, %v9628_v45 }
 0x1b8   :  { %6778 = vmatprep.subr.msk.mxu1 %vm3180_vm9, %v7235_v18  ;;  %6830 = vmatprep.subr.msk.mxu0 %vm4393_vm8, %v6612_v8  ;;  %vm3148_vm9 = vcmp.eq.s32.totalorder %v9614_v14, %v9618_v12  ;;  %v10952_v8 = vld [vmem:[#allocation32_spill] sm:$0xff] }
 0x1b9   :  { %6779 = vmatpush2.msk.msra.mxu1 %vm3179_vm10, %v7235_v18  ;;  %6831 = vmatpush2.msk.msra.mxu0 %vm4393_vm8, %v6611_v37  ;;  %vm3404_vm10 = vcmp.eq.s32.totalorder %v10951_v5, %v9618_v12  ;;  %v10953_v37 = vld [vmem:[#allocation33_spill] sm:$0xff] }
 0x1ba   :  { %6780 = vmatprep.subr.msk.mxu1 %vm3172_vm11, %v7235_v18  ;;  %6832 = vmatprep.subr.msk.mxu0 %vm3428_vm5, %v7235_v18  ;;  %vm3147_vm11 = vcmp.eq.s32.totalorder %v9614_v14, %v9628_v45  ;;  %vm3403_vm5 = vcmp.eq.s32.totalorder %v10951_v5, %v9628_v45  ;;  %v10957_v14 = vld [vmem:[#allocation29_spill] sm:$0xff] }
 0x1bb   :  { %6781 = vmatpush2.msk.msra.mxu1 %vm3171_vm12, %v7235_v18  ;;  %6833 = vmatpush2.msk.msra.mxu0 %vm3427_vm4, %v7235_v18  ;;  %vm3140_vm12 = vcmp.eq.s32.totalorder %v7527_v31, %v9618_v12  ;;  %vm3396_vm4 = vcmp.eq.s32.totalorder %v10952_v8, %v9618_v12 }
 0x1bc   :  { %6782 = vmatprep.subr.msk.mxu1 %vm3164_vm13, %v7235_v18  ;;  %6834 = vmatprep.subr.msk.mxu0 %vm3420_vm14, %v7235_v18  ;;  %vm3139_vm13 = vcmp.eq.s32.totalorder %v7527_v31, %v9628_v45  ;;  %vm3395_vm14 = vcmp.eq.s32.totalorder %v10952_v8, %v9628_v45  ;;  %v10954_v31 = vld [vmem:[#allocation34_spill] sm:$0xff] }
 0x1bd   :  { %6783 = vmatpush2.msk.msra.mxu1 %vm3163_vm0, %v7235_v18  ;;  %6835 = vmatpush2.msk.msra.mxu0 %vm3419_vm1, %v7235_v18  ;;  %vm3132_vm0 = vcmp.eq.s32.totalorder %v7568_v32, %v9618_v12  ;;  %vm3388_vm1 = vcmp.eq.s32.totalorder %v10953_v37, %v9618_v12 }
 0x1be   :  { %6784 = vmatprep.subr.msk.mxu1 %vm3156_vm2, %v7235_v18  ;;  %6836 = vmatprep.subr.msk.mxu0 %vm3412_vm3, %v7235_v18  ;;  %vm3131_vm2 = vcmp.eq.s32.totalorder %v7568_v32, %v9628_v45  ;;  %vm3387_vm3 = vcmp.eq.s32.totalorder %v10953_v37, %v9628_v45  ;;  %v10955_v32 = vld [vmem:[#allocation36_spill] sm:$0xff] }
 0x1bf   :  { %6785 = vmatpush2.msk.msra.mxu1 %vm3155_vm6, %v7235_v18  ;;  %6837 = vmatpush2.msk.msra.mxu0 %vm3411_vm7, %v7235_v18  ;;  %vm3124_vm6 = vcmp.eq.s32.totalorder %v7593_v36, %v9618_v12  ;;  %vm3380_vm7 = vcmp.eq.s32.totalorder %v10954_v31, %v9618_v12 }
 0x1c0   :  { %6786 = vmatprep.subr.msk.mxu1 %vm3148_vm9, %v7235_v18  ;;  %6838 = vmatprep.subr.msk.mxu0 %vm3404_vm10, %v7235_v18  ;;  %vm3123_vm9 = vcmp.eq.s32.totalorder %v7593_v36, %v9628_v45  ;;  %vm3379_vm10 = vcmp.eq.s32.totalorder %v10954_v31, %v9628_v45  ;;  %v10956_v36 = vld [vmem:[#allocation25_spill] sm:$0xff] }
 0x1c1   :  { %6787 = vmatpush2.msk.msra.mxu1 %vm3147_vm11, %v7235_v18  ;;  %6839 = vmatpush2.msk.msra.mxu0 %vm3403_vm5, %v7235_v18  ;;  %vm3116_vm11 = vcmp.eq.s32.totalorder %v7618_v39, %v9618_v12  ;;  %vm3372_vm5 = vcmp.eq.s32.totalorder %v10955_v32, %v9618_v12  ;;  %v10039_v41 = vrot.slane %v10957_v14, %v10956_v36 }
 0x1c2   :  { %6788 = vmatprep.subr.msk.mxu1 %vm3140_vm12, %v7235_v18  ;;  %6840 = vmatprep.subr.msk.mxu0 %vm3396_vm4, %v7235_v18  ;;  %vm3115_vm12 = vcmp.eq.s32.totalorder %v7618_v39, %v9628_v45  ;;  %vm3371_vm4 = vcmp.eq.s32.totalorder %v10955_v32, %v9628_v45  ;;  %v10049_v39 = vrot.slane %v10957_v14, %v10958_v42 }
 0x1c3   :  { %6789 = vmatpush2.msk.msra.mxu1 %vm3139_vm13, %v7235_v18  ;;  %6841 = vmatpush2.msk.msra.mxu0 %vm3395_vm14, %v7235_v18  ;;  %vm3108_vm13 = vcmp.eq.s32.totalorder %v7627_v40, %v9618_v12  ;;  %vm3364_vm14 = vcmp.eq.s32.totalorder %v9597_v34, %v9618_v12  ;;  %v10960_v12 = vld [vmem:[#allocation26_spill] sm:$0xff] }
 0x1c4   :  { %6790 = vmatprep.subr.msk.mxu1 %vm3132_vm0, %v7235_v18  ;;  %6842 = vmatprep.subr.msk.mxu0 %vm3388_vm1, %v7235_v18  ;;  %vm3107_vm0 = vcmp.eq.s32.totalorder %v7627_v40, %v9628_v45  ;;  %vm3363_vm1 = vcmp.eq.s32.totalorder %v9597_v34, %v9628_v45  ;;  %v10959_v45 = vld [vmem:[#allocation35_spill] sm:$0xff] }
 0x1c5   :  { %6791 = vmatpush2.msk.msra.mxu1 %vm3131_vm2, %v7235_v18  ;;  %6843 = vmatpush2.msk.msra.mxu0 %vm3387_vm3, %v7235_v18  ;;  %vm3102_vm2 = vcmp.eq.s32.totalorder %v7311_v9, %v10039_v41  ;;  %vm3358_vm3 = vcmp.eq.s32.totalorder %v9186_v38, %v10039_v41 }
 0x1c6   :  { %6792 = vmatprep.subr.msk.mxu1 %vm3124_vm6, %v7235_v18  ;;  %6844 = vmatprep.subr.msk.mxu0 %vm3380_vm7, %v7235_v18  ;;  %vm3101_vm6 = vcmp.eq.s32.totalorder %v7311_v9, %v10049_v39  ;;  %vm3357_vm7 = vcmp.eq.s32.totalorder %v9186_v38, %v10049_v39 }
 0x1c7   :  { %6793 = vmatpush2.msk.msra.mxu1 %vm3123_vm9, %v7235_v18  ;;  %6845 = vmatpush2.msk.msra.mxu0 %vm3379_vm10, %v7235_v18  ;;  %vm3094_vm9 = vcmp.eq.s32.totalorder %v7331_v15, %v10039_v41  ;;  %vm3350_vm10 = vcmp.eq.s32.totalorder %v9201_v46, %v10039_v41 }
 0x1c8   :  { %6794 = vmatprep.subr.msk.mxu1 %vm3116_vm11, %v7235_v18  ;;  %6846 = vmatprep.subr.msk.mxu0 %vm3372_vm5, %v7235_v18  ;;  %vm3093_vm11 = vcmp.eq.s32.totalorder %v7331_v15, %v10049_v39  ;;  %vm3349_vm5 = vcmp.eq.s32.totalorder %v9201_v46, %v10049_v39 }
 0x1c9   :  { %6795 = vmatpush2.msk.msra.mxu1 %vm3115_vm12, %v7235_v18  ;;  %6847 = vmatpush2.msk.msra.mxu0 %vm3371_vm4, %v7235_v18  ;;  %vm3086_vm12 = vcmp.eq.s32.totalorder %v7338_v17, %v10039_v41  ;;  %vm3342_vm4 = vcmp.eq.s32.totalorder %v9213_v47, %v10039_v41 }
 0x1ca   :  { %6796 = vmatprep.subr.msk.mxu1 %vm3108_vm13, %v7235_v18  ;;  %6848 = vmatprep.subr.msk.mxu0 %vm3364_vm14, %v7235_v18  ;;  %vm3085_vm13 = vcmp.eq.s32.totalorder %v7338_v17, %v10049_v39  ;;  %vm3341_vm14 = vcmp.eq.s32.totalorder %v9213_v47, %v10049_v39 }
 0x1cb   :  { %6797 = vmatpush2.msk.msra.mxu1 %vm3107_vm0, %v7235_v18  ;;  %4624 = vmatprep.mubr.f32.mxu1 %v9721_v7  ;;  %vm3078_vm0 = vcmp.eq.s32.totalorder %v7351_v19, %v10039_v41 }
 0x1cc   :  { %6849 = vmatpush2.msk.msra.mxu0 %vm3363_vm1, %v7235_v18  ;;  %6850 = vmatprep.mubr.msk.f32.mxu0 %vm4390_vm15, %v9644_v35  ;;  %vm3334_vm1 = vcmp.eq.s32.totalorder %v9229_v48, %v10039_v41 }
 0x1cd   :  { %4625 = vmatmul.mubr.f32.vlgmr.msra.gmra.mxu1 %v9729_v11  ;;  %4696 = vmatmul.mubr.f32.vlgmr.msra.gmra.mxu0 %v9652_v44 }
 0x1ce   :  { %6851 = vmatprep.subr.msk.mxu0 %vm3102_vm2, %v7235_v18  ;;  %6915 = vmatprep.subr.msk.mxu1 %vm3358_vm3, %v7235_v18  ;;  %vm3077_vm2 = vcmp.eq.s32.totalorder %v7351_v19, %v10049_v39  ;;  %vm3333_vm3 = vcmp.eq.s32.totalorder %v9229_v48, %v10049_v39 }
 0x1cf   :  { %6852 = vmatpush1.msk.msra.mxu0 %vm3101_vm6, %v7235_v18  ;;  %6916 = vmatpush1.msk.msra.mxu1 %vm3357_vm7, %v7235_v18  ;;  %vm3070_vm6 = vcmp.eq.s32.totalorder %v7360_v20, %v10039_v41  ;;  %vm3326_vm7 = vcmp.eq.s32.totalorder %v9244_v49, %v10039_v41 }
 0x1d0   :  { %6853 = vmatprep.subr.msk.mxu0 %vm3094_vm9, %v7235_v18  ;;  %6917 = vmatprep.subr.msk.mxu1 %vm3350_vm10, %v7235_v18  ;;  %vm3069_vm9 = vcmp.eq.s32.totalorder %v7360_v20, %v10049_v39  ;;  %vm3325_vm10 = vcmp.eq.s32.totalorder %v9244_v49, %v10049_v39 }
 0x1d1   :  { %6854 = vmatpush1.msk.msra.mxu0 %vm3093_vm11, %v7235_v18  ;;  %6918 = vmatpush1.msk.msra.mxu1 %vm3349_vm5, %v7235_v18  ;;  %vm3062_vm11 = vcmp.eq.s32.totalorder %v7379_v21, %v10039_v41  ;;  %vm3318_vm5 = vcmp.eq.s32.totalorder %v9259_v50, %v10039_v41 }
 0x1d2   :  { %6855 = vmatprep.subr.msk.mxu0 %vm3086_vm12, %v7235_v18  ;;  %6919 = vmatprep.subr.msk.mxu1 %vm3342_vm4, %v7235_v18  ;;  %vm3061_vm12 = vcmp.eq.s32.totalorder %v7379_v21, %v10049_v39  ;;  %vm3317_vm4 = vcmp.eq.s32.totalorder %v9259_v50, %v10049_v39 }
 0x1d3   :  { %6856 = vmatpush1.msk.msra.mxu0 %vm3085_vm13, %v7235_v18  ;;  %6920 = vmatpush1.msk.msra.mxu1 %vm3341_vm14, %v7235_v18  ;;  %vm3054_vm13 = vcmp.eq.s32.totalorder %v7398_v22, %v10039_v41  ;;  %vm3310_vm14 = vcmp.eq.s32.totalorder %v9274_v51, %v10039_v41 }
 0x1d4   :  { %6857 = vmatprep.subr.msk.mxu0 %vm3078_vm0, %v7235_v18  ;;  %6921 = vmatprep.subr.msk.mxu1 %vm3334_vm1, %v7235_v18  ;;  %vm3053_vm0 = vcmp.eq.s32.totalorder %v7398_v22, %v10049_v39  ;;  %vm3309_vm1 = vcmp.eq.s32.totalorder %v9274_v51, %v10049_v39 }
 0x1d5   :  { %6858 = vmatpush1.msk.msra.mxu0 %vm3077_vm2, %v7235_v18  ;;  %6922 = vmatpush1.msk.msra.mxu1 %vm3333_vm3, %v7235_v18  ;;  %vm3046_vm2 = vcmp.eq.s32.totalorder %v7413_v23, %v10039_v41  ;;  %vm3302_vm3 = vcmp.eq.s32.totalorder %v9289_v52, %v10039_v41 }
 0x1d6   :  { %6859 = vmatprep.subr.msk.mxu0 %vm3070_vm6, %v7235_v18  ;;  %6923 = vmatprep.subr.msk.mxu1 %vm3326_vm7, %v7235_v18  ;;  %vm3045_vm6 = vcmp.eq.s32.totalorder %v7413_v23, %v10049_v39  ;;  %vm3301_vm7 = vcmp.eq.s32.totalorder %v9289_v52, %v10049_v39 }
 0x1d7   :  { %6860 = vmatpush1.msk.msra.mxu0 %vm3069_vm9, %v7235_v18  ;;  %6924 = vmatpush1.msk.msra.mxu1 %vm3325_vm10, %v7235_v18  ;;  %vm3038_vm9 = vcmp.eq.s32.totalorder %v7428_v24, %v10039_v41  ;;  %vm3294_vm10 = vcmp.eq.s32.totalorder %v9304_v53, %v10039_v41 }
 0x1d8   :  { %6861 = vmatprep.subr.msk.mxu0 %vm3062_vm11, %v7235_v18  ;;  %6925 = vmatprep.subr.msk.mxu1 %vm3318_vm5, %v7235_v18  ;;  %vm3037_vm11 = vcmp.eq.s32.totalorder %v7428_v24, %v10049_v39  ;;  %vm3293_vm5 = vcmp.eq.s32.totalorder %v9304_v53, %v10049_v39 }
 0x1d9   :  { %6862 = vmatpush1.msk.msra.mxu0 %vm3061_vm12, %v7235_v18  ;;  %6926 = vmatpush1.msk.msra.mxu1 %vm3317_vm4, %v7235_v18  ;;  %vm3030_vm12 = vcmp.eq.s32.totalorder %v7443_v25, %v10039_v41  ;;  %vm3286_vm4 = vcmp.eq.s32.totalorder %v9319_v54, %v10039_v41 }
 0x1da   :  { %6863 = vmatprep.subr.msk.mxu0 %vm3054_vm13, %v7235_v18  ;;  %6927 = vmatprep.subr.msk.mxu1 %vm3310_vm14, %v7235_v18  ;;  %vm3029_vm13 = vcmp.eq.s32.totalorder %v7443_v25, %v10049_v39  ;;  %vm3285_vm14 = vcmp.eq.s32.totalorder %v9319_v54, %v10049_v39 }
 0x1db   :  { %6864 = vmatpush1.msk.msra.mxu0 %vm3053_vm0, %v7235_v18  ;;  %6928 = vmatpush1.msk.msra.mxu1 %vm3309_vm1, %v7235_v18  ;;  %vm3022_vm0 = vcmp.eq.s32.totalorder %v7458_v26, %v10039_v41  ;;  %vm3278_vm1 = vcmp.eq.s32.totalorder %v9334_v55, %v10039_v41 }
 0x1dc   :  { %6865 = vmatprep.subr.msk.mxu0 %vm3046_vm2, %v7235_v18  ;;  %6929 = vmatprep.subr.msk.mxu1 %vm3302_vm3, %v7235_v18  ;;  %vm3021_vm2 = vcmp.eq.s32.totalorder %v7458_v26, %v10049_v39  ;;  %vm3277_vm3 = vcmp.eq.s32.totalorder %v9334_v55, %v10049_v39 }
 0x1dd   :  { %6866 = vmatpush1.msk.msra.mxu0 %vm3045_vm6, %v7235_v18  ;;  %6930 = vmatpush1.msk.msra.mxu1 %vm3301_vm7, %v7235_v18  ;;  %vm3014_vm6 = vcmp.eq.s32.totalorder %v7473_v27, %v10039_v41  ;;  %vm3270_vm7 = vcmp.eq.s32.totalorder %v9349_v56, %v10039_v41 }
 0x1de   :  { %6867 = vmatprep.subr.msk.mxu0 %vm3038_vm9, %v7235_v18  ;;  %6931 = vmatprep.subr.msk.mxu1 %vm3294_vm10, %v7235_v18  ;;  %vm3013_vm9 = vcmp.eq.s32.totalorder %v7473_v27, %v10049_v39  ;;  %vm3269_vm10 = vcmp.eq.s32.totalorder %v9349_v56, %v10049_v39 }
 0x1df   :  { %6868 = vmatpush1.msk.msra.mxu0 %vm3037_vm11, %v7235_v18  ;;  %6932 = vmatpush1.msk.msra.mxu1 %vm3293_vm5, %v7235_v18  ;;  %vm3006_vm11 = vcmp.eq.s32.totalorder %v7488_v28, %v10039_v41  ;;  %vm3262_vm5 = vcmp.eq.s32.totalorder %v9364_v57, %v10039_v41 }
 0x1e0   :  { %6869 = vmatprep.subr.msk.mxu0 %vm3030_vm12, %v7235_v18  ;;  %6933 = vmatprep.subr.msk.mxu1 %vm3286_vm4, %v7235_v18  ;;  %vm3005_vm12 = vcmp.eq.s32.totalorder %v7488_v28, %v10049_v39  ;;  %vm3261_vm4 = vcmp.eq.s32.totalorder %v9364_v57, %v10049_v39 }
 0x1e1   :  { %6870 = vmatpush1.msk.msra.mxu0 %vm3029_vm13, %v7235_v18  ;;  %6934 = vmatpush1.msk.msra.mxu1 %vm3285_vm14, %v7235_v18  ;;  %vm2998_vm13 = vcmp.eq.s32.totalorder %v7503_v29, %v10039_v41  ;;  %vm3254_vm14 = vcmp.eq.s32.totalorder %v9379_v58, %v10039_v41 }
 0x1e2   :  { %6871 = vmatprep.subr.msk.mxu0 %vm3022_vm0, %v7235_v18  ;;  %6935 = vmatprep.subr.msk.mxu1 %vm3278_vm1, %v7235_v18  ;;  %vm2997_vm0 = vcmp.eq.s32.totalorder %v7503_v29, %v10049_v39  ;;  %vm3253_vm1 = vcmp.eq.s32.totalorder %v9379_v58, %v10049_v39 }
 0x1e3   :  { %6872 = vmatpush1.msk.msra.mxu0 %vm3021_vm2, %v7235_v18  ;;  %6936 = vmatpush1.msk.msra.mxu1 %vm3277_vm3, %v7235_v18  ;;  %vm2990_vm2 = vcmp.eq.s32.totalorder %v7512_v30, %v10039_v41  ;;  %vm3246_vm3 = vcmp.eq.s32.totalorder %v9394_v59, %v10039_v41 }
 0x1e4   :  { %6873 = vmatprep.subr.msk.mxu0 %vm3014_vm6, %v7235_v18  ;;  %6937 = vmatprep.subr.msk.mxu1 %vm3270_vm7, %v7235_v18  ;;  %vm2989_vm6 = vcmp.eq.s32.totalorder %v7512_v30, %v10049_v39  ;;  %vm3245_vm7 = vcmp.eq.s32.totalorder %v9394_v59, %v10049_v39 }
 0x1e5   :  { %6874 = vmatpush1.msk.msra.mxu0 %vm3013_vm9, %v7235_v18  ;;  %6938 = vmatpush1.msk.msra.mxu1 %vm3269_vm10, %v7235_v18  ;;  %vm3438_vm9 = vcmp.eq.s32.totalorder %v9403_v60, %v10039_v41  ;;  %vm2982_vm10 = vcmp.eq.s32.totalorder %v7299_v4, %v10039_v41 }
 0x1e6   :  { %6875 = vmatprep.subr.msk.mxu0 %vm3006_vm11, %v7235_v18  ;;  %6939 = vmatprep.subr.msk.mxu1 %vm3262_vm5, %v7235_v18  ;;  %vm3238_vm11 = vcmp.eq.s32.totalorder %v9412_v61, %v10039_v41  ;;  %vm3437_vm5 = vcmp.eq.s32.totalorder %v9403_v60, %v10049_v39  ;;  %v6614_v36 = vsel %vm3438_vm9, 1.0, %v10949_v6  ;;  %vm3213_vm9 = vcmp.eq.s32.totalorder %v9466_v2, %v10049_v39 }
 0x1e7   :  { %6876 = vmatpush1.msk.msra.mxu0 %vm3005_vm12, %v7235_v18  ;;  %6940 = vmatpush1.msk.msra.mxu1 %vm3261_vm4, %v7235_v18  ;;  %vm2981_vm12 = vcmp.eq.s32.totalorder %v7299_v4, %v10049_v39  ;;  %vm3237_vm4 = vcmp.eq.s32.totalorder %v9412_v61, %v10049_v39  ;;  %v6613_v42 = vsel %vm3437_vm5, 1.0, %v10949_v6  ;;  %vm3414_vm5 = vcmp.eq.s32.totalorder %v10950_v43, %v10039_v41 }
 0x1e8   :  { %6877 = vmatprep.subr.msk.mxu0 %vm2998_vm13, %v7235_v18  ;;  %6941 = vmatprep.subr.msk.mxu1 %vm3254_vm14, %v7235_v18  ;;  %vm3230_vm13 = vcmp.eq.s32.totalorder %v9427_v62, %v10039_v41  ;;  %vm3229_vm14 = vcmp.eq.s32.totalorder %v9427_v62, %v10049_v39 }
 0x1e9   :  { %6878 = vmatpush1.msk.msra.mxu0 %vm2997_vm0, %v7235_v18  ;;  %6942 = vmatpush1.msk.msra.mxu1 %vm3253_vm1, %v7235_v18  ;;  %vm3222_vm0 = vcmp.eq.s32.totalorder %v9438_v63, %v10039_v41  ;;  %vm3430_vm1 = vcmp.eq.s32.totalorder %v9449_v0, %v10039_v41 }
 0x1ea   :  { %6879 = vmatprep.subr.msk.mxu0 %vm2990_vm2, %v7235_v18  ;;  %6943 = vmatprep.subr.msk.mxu1 %vm3246_vm3, %v7235_v18  ;;  %vm3221_vm2 = vcmp.eq.s32.totalorder %v9438_v63, %v10049_v39  ;;  %vm3429_vm3 = vcmp.eq.s32.totalorder %v9449_v0, %v10049_v39 }
 0x1eb   :  { %6880 = vmatpush1.msk.msra.mxu0 %vm2989_vm6, %v7235_v18  ;;  %6944 = vmatpush1.msk.msra.mxu1 %vm3245_vm7, %v7235_v18  ;;  %vm3214_vm6 = vcmp.eq.s32.totalorder %v9466_v2, %v10039_v41  ;;  %vm3422_vm7 = vcmp.eq.s32.totalorder %v9469_v3, %v10039_v41 }
 0x1ec   :  { %6881 = vmatprep.subr.msk.mxu0 %vm2982_vm10, %v7235_v18  ;;  %6945 = vmatprep.subr.msk.mxu1 %vm3238_vm11, %v7235_v18  ;;  %vm3421_vm10 = vcmp.eq.s32.totalorder %v9469_v3, %v10049_v39  ;;  %vm3206_vm11 = vcmp.eq.s32.totalorder %v9486_v10, %v10039_v41 }
 0x1ed   :  { %6882 = vmatpush1.msk.msra.mxu0 %vm2981_vm12, %v7235_v18  ;;  %6946 = vmatpush1.msk.msra.mxu1 %vm3237_vm4, %v7235_v18  ;;  %vm3205_vm12 = vcmp.eq.s32.totalorder %v9486_v10, %v10049_v39  ;;  %vm3413_vm4 = vcmp.eq.s32.totalorder %v10950_v43, %v10049_v39 }
 0x1ee   :  { %6883 = vmatprep.subr.msk.mxu0 %vm3230_vm13, %v7235_v18  ;;  %6947 = vmatprep.subr.msk.mxu1 %vm4393_vm8, %v6614_v36  ;;  %vm3198_vm13 = vcmp.eq.s32.totalorder %v9504_v13, %v10039_v41  ;;  %v10360_v36 = vrot.slane %v10957_v14, %v10960_v12  ;;  %v10962_v12 = vld [vmem:[#allocation37_spill] sm:$0xff] }
 0x1ef   :  { %6884 = vmatpush2.msk.msra.mxu0 %vm3229_vm14, %v7235_v18  ;;  %6948 = vmatpush2.msk.msra.mxu1 %vm4393_vm8, %v6613_v42  ;;  %vm3406_vm14 = vcmp.eq.s32.totalorder %v10951_v5, %v10039_v41  ;;  %v10961_v42 = vld [vmem:[#allocation28_spill] sm:$0xff] }
 0x1f0   :  { %6885 = vmatprep.subr.msk.mxu0 %vm3222_vm0, %v7235_v18  ;;  %6949 = vmatprep.subr.msk.mxu1 %vm3430_vm1, %v7235_v18  ;;  %vm3197_vm0 = vcmp.eq.s32.totalorder %v9504_v13, %v10049_v39  ;;  %vm3405_vm1 = vcmp.eq.s32.totalorder %v10951_v5, %v10049_v39 }
 0x1f1   :  { %6886 = vmatpush2.msk.msra.mxu0 %vm3221_vm2, %v7235_v18  ;;  %6950 = vmatpush2.msk.msra.mxu1 %vm3429_vm3, %v7235_v18  ;;  %vm3190_vm2 = vcmp.eq.s32.totalorder %v9522_v16, %v10039_v41  ;;  %vm3398_vm3 = vcmp.eq.s32.totalorder %v10952_v8, %v10039_v41 }
 0x1f2   :  { %6887 = vmatprep.subr.msk.mxu0 %vm3214_vm6, %v7235_v18  ;;  %6951 = vmatprep.subr.msk.mxu1 %vm3422_vm7, %v7235_v18  ;;  %vm3189_vm6 = vcmp.eq.s32.totalorder %v9522_v16, %v10049_v39  ;;  %vm3397_vm7 = vcmp.eq.s32.totalorder %v10952_v8, %v10049_v39 }
 0x1f3   :  { %6888 = vmatpush2.msk.msra.mxu0 %vm3213_vm9, %v7235_v18  ;;  %6952 = vmatpush2.msk.msra.mxu1 %vm3421_vm10, %v7235_v18  ;;  %vm3182_vm9 = vcmp.eq.s32.totalorder %v9540_v1, %v10039_v41  ;;  %vm3390_vm10 = vcmp.eq.s32.totalorder %v10953_v37, %v10039_v41 }
 0x1f4   :  { %6889 = vmatprep.subr.msk.mxu0 %vm3206_vm11, %v7235_v18  ;;  %6953 = vmatprep.subr.msk.mxu1 %vm3414_vm5, %v7235_v18  ;;  %vm3181_vm11 = vcmp.eq.s32.totalorder %v9540_v1, %v10049_v39  ;;  %vm3389_vm5 = vcmp.eq.s32.totalorder %v10953_v37, %v10049_v39 }
 0x1f5   :  { %6890 = vmatpush2.msk.msra.mxu0 %vm3205_vm12, %v7235_v18  ;;  %6954 = vmatpush2.msk.msra.mxu1 %vm3413_vm4, %v7235_v18  ;;  %vm3174_vm12 = vcmp.eq.s32.totalorder %v9558_v33, %v10039_v41  ;;  %vm3382_vm4 = vcmp.eq.s32.totalorder %v10954_v31, %v10039_v41 }
 0x1f6   :  { %6891 = vmatprep.subr.msk.mxu0 %vm3198_vm13, %v7235_v18  ;;  %6955 = vmatprep.subr.msk.mxu1 %vm3406_vm14, %v7235_v18  ;;  %vm3173_vm13 = vcmp.eq.s32.totalorder %v9558_v33, %v10049_v39  ;;  %vm3381_vm14 = vcmp.eq.s32.totalorder %v10954_v31, %v10049_v39  ;;  %v10370_v31 = vrot.slane %v10957_v14, %v10961_v42  ;;  %v10963_v14 = vld [vmem:[#allocation38_spill] sm:$0xff]  ;;  %v10964_v42 = vld [vmem:[#allocation21_spill] sm:$0xff] }
 0x1f7   :  { %6892 = vmatpush2.msk.msra.mxu0 %vm3197_vm0, %v7235_v18  ;;  %6956 = vmatpush2.msk.msra.mxu1 %vm3405_vm1, %v7235_v18  ;;  %vm3166_vm0 = vcmp.eq.s32.totalorder %v10959_v45, %v10039_v41  ;;  %vm3374_vm1 = vcmp.eq.s32.totalorder %v10955_v32, %v10039_v41 }
 0x1f8   :  { %6893 = vmatprep.subr.msk.mxu0 %vm3190_vm2, %v7235_v18  ;;  %6957 = vmatprep.subr.msk.mxu1 %vm3398_vm3, %v7235_v18  ;;  %vm3165_vm2 = vcmp.eq.s32.totalorder %v10959_v45, %v10049_v39  ;;  %vm3373_vm3 = vcmp.eq.s32.totalorder %v10955_v32, %v10049_v39 }
 0x1f9   :  { %6894 = vmatpush2.msk.msra.mxu0 %vm3189_vm6, %v7235_v18  ;;  %6958 = vmatpush2.msk.msra.mxu1 %vm3397_vm7, %v7235_v18  ;;  %vm3158_vm6 = vcmp.eq.s32.totalorder %v10962_v12, %v10039_v41  ;;  %vm3366_vm7 = vcmp.eq.s32.totalorder %v9597_v34, %v10039_v41 }
 0x1fa   :  { %6895 = vmatprep.subr.msk.mxu0 %vm3182_vm9, %v7235_v18  ;;  %6959 = vmatprep.subr.msk.mxu1 %vm3390_vm10, %v7235_v18  ;;  %vm3157_vm9 = vcmp.eq.s32.totalorder %v10962_v12, %v10049_v39  ;;  %vm3365_vm10 = vcmp.eq.s32.totalorder %v9597_v34, %v10049_v39 }
 0x1fb   :  { %6896 = vmatpush2.msk.msra.mxu0 %vm3181_vm11, %v7235_v18  ;;  %6960 = vmatpush2.msk.msra.mxu1 %vm3389_vm5, %v7235_v18  ;;  %vm3150_vm11 = vcmp.eq.s32.totalorder %v10963_v14, %v10039_v41  ;;  %vm3104_vm5 = vcmp.eq.s32.totalorder %v7311_v9, %v10360_v36 }
 0x1fc   :  { %6897 = vmatprep.subr.msk.mxu0 %vm3174_vm12, %v7235_v18  ;;  %6961 = vmatprep.subr.msk.mxu1 %vm3382_vm4, %v7235_v18  ;;  %vm3149_vm12 = vcmp.eq.s32.totalorder %v10963_v14, %v10049_v39  ;;  %vm3103_vm4 = vcmp.eq.s32.totalorder %v7311_v9, %v10370_v31  ;;  %v10965_v9 = vld [vmem:[#allocation22_spill] sm:$0xff] }
 0x1fd   :  { %6898 = vmatpush2.msk.msra.mxu0 %vm3173_vm13, %v7235_v18  ;;  %6962 = vmatpush2.msk.msra.mxu1 %vm3381_vm14, %v7235_v18  ;;  %vm3142_vm13 = vcmp.eq.s32.totalorder %v10964_v42, %v10039_v41  ;;  %vm3096_vm14 = vcmp.eq.s32.totalorder %v7331_v15, %v10360_v36 }
 0x1fe   :  { %6899 = vmatprep.subr.msk.mxu0 %vm3166_vm0, %v7235_v18  ;;  %6963 = vmatprep.subr.msk.mxu1 %vm3374_vm1, %v7235_v18  ;;  %vm3141_vm0 = vcmp.eq.s32.totalorder %v10964_v42, %v10049_v39  ;;  %vm3095_vm1 = vcmp.eq.s32.totalorder %v7331_v15, %v10370_v31  ;;  %v10966_v15 = vld [vmem:[#allocation23_spill] sm:$0xff] }
 0x1ff   :  { %6900 = vmatpush2.msk.msra.mxu0 %vm3165_vm2, %v7235_v18  ;;  %6964 = vmatpush2.msk.msra.mxu1 %vm3373_vm3, %v7235_v18  ;;  %vm3134_vm2 = vcmp.eq.s32.totalorder %v10965_v9, %v10039_v41  ;;  %vm3088_vm3 = vcmp.eq.s32.totalorder %v7338_v17, %v10360_v36 }
 0x200   :  { %6901 = vmatprep.subr.msk.mxu0 %vm3158_vm6, %v7235_v18  ;;  %6965 = vmatprep.subr.msk.mxu1 %vm3366_vm7, %v7235_v18  ;;  %vm3133_vm6 = vcmp.eq.s32.totalorder %v10965_v9, %v10049_v39  ;;  %vm3087_vm7 = vcmp.eq.s32.totalorder %v7338_v17, %v10370_v31  ;;  %v10967_v17 = vld [vmem:[#allocation24_spill] sm:$0xff] }
 0x201   :  { %6902 = vmatpush2.msk.msra.mxu0 %vm3157_vm9, %v7235_v18  ;;  %6966 = vmatpush2.msk.msra.mxu1 %vm3365_vm10, %v7235_v18  ;;  %vm3126_vm9 = vcmp.eq.s32.totalorder %v10966_v15, %v10039_v41  ;;  %vm3080_vm10 = vcmp.eq.s32.totalorder %v7351_v19, %v10360_v36 }
 0x202   :  { %6967 = vmatprep.mubr.msk.f32.mxu1 %vm4390_vm15, %v9644_v35  ;;  %6903 = vmatprep.subr.msk.mxu0 %vm3150_vm11, %v7235_v18  ;;  %vm3125_vm11 = vcmp.eq.s32.totalorder %v10966_v15, %v10049_v39 }
 0x203   :  { %4838 = vmatmul.mubr.f32.vlgmr.msra.gmra.mxu1 %v9652_v44  ;;  %6968 = vmatprep.subr.msk.mxu1 %vm3104_vm5, %v7235_v18  ;;  %vm3079_vm5 = vcmp.eq.s32.totalorder %v7351_v19, %v10370_v31 }
 0x204   :  { %6904 = vmatpush2.msk.msra.mxu0 %vm3149_vm12, %v7235_v18  ;;  %6969 = vmatpush1.msk.msra.mxu1 %vm3103_vm4, %v7235_v18  ;;  %vm3118_vm12 = vcmp.eq.s32.totalorder %v10967_v17, %v10039_v41  ;;  %vm3072_vm4 = vcmp.eq.s32.totalorder %v7360_v20, %v10360_v36 }
 0x205   :  { %6905 = vmatprep.subr.msk.mxu0 %vm3142_vm13, %v7235_v18  ;;  %6970 = vmatprep.subr.msk.mxu1 %vm3096_vm14, %v7235_v18  ;;  %vm3117_vm13 = vcmp.eq.s32.totalorder %v10967_v17, %v10049_v39  ;;  %vm3071_vm14 = vcmp.eq.s32.totalorder %v7360_v20, %v10370_v31 }
 0x206   :  { %6906 = vmatpush2.msk.msra.mxu0 %vm3141_vm0, %v7235_v18  ;;  %6971 = vmatpush1.msk.msra.mxu1 %vm3095_vm1, %v7235_v18  ;;  %vm3110_vm0 = vcmp.eq.s32.totalorder %v7627_v40, %v10039_v41  ;;  %vm3064_vm1 = vcmp.eq.s32.totalorder %v7379_v21, %v10360_v36 }
 0x207   :  { %6907 = vmatprep.subr.msk.mxu0 %vm3134_vm2, %v7235_v18  ;;  %6972 = vmatprep.subr.msk.mxu1 %vm3088_vm3, %v7235_v18  ;;  %vm3109_vm2 = vcmp.eq.s32.totalorder %v7627_v40, %v10049_v39  ;;  %vm3063_vm3 = vcmp.eq.s32.totalorder %v7379_v21, %v10370_v31  ;;  %v10968_v21 = vld [vmem:[#allocation34_spill] sm:$0xff] }
 0x208   :  { %6908 = vmatpush2.msk.msra.mxu0 %vm3133_vm6, %v7235_v18  ;;  %6973 = vmatpush1.msk.msra.mxu1 %vm3087_vm7, %v7235_v18  ;;  %vm3056_vm6 = vcmp.eq.s32.totalorder %v7398_v22, %v10360_v36  ;;  %vm3360_vm7 = vcmp.eq.s32.totalorder %v9186_v38, %v10360_v36 }
 0x209   :  { %6909 = vmatprep.subr.msk.mxu0 %vm3126_vm9, %v7235_v18  ;;  %6974 = vmatprep.subr.msk.mxu1 %vm3080_vm10, %v7235_v18  ;;  %vm3055_vm9 = vcmp.eq.s32.totalorder %v7398_v22, %v10370_v31  ;;  %vm3359_vm10 = vcmp.eq.s32.totalorder %v9186_v38, %v10370_v31  ;;  %v782_v22 = vpop.f32.mrf.mxu0 }
 0x20a   :  { %6910 = vmatpush2.msk.msra.mxu0 %vm3125_vm11, %v7235_v18  ;;  %6975 = vmatpush1.msk.msra.mxu1 %vm3079_vm5, %v7235_v18  ;;  %vm3048_vm11 = vcmp.eq.s32.totalorder %v7413_v23, %v10360_v36  ;;  %vm3352_vm5 = vcmp.eq.s32.totalorder %v9201_v46, %v10360_v36 }
 0x20b   :  { %6911 = vmatprep.subr.msk.mxu0 %vm3118_vm12, %v7235_v18  ;;  %6976 = vmatprep.subr.msk.mxu1 %vm3072_vm4, %v7235_v18  ;;  %vm3047_vm12 = vcmp.eq.s32.totalorder %v7413_v23, %v10370_v31  ;;  %vm3351_vm4 = vcmp.eq.s32.totalorder %v9201_v46, %v10370_v31  ;;  %v853_v23 = vpop.f32.mrf.mxu1 }
 0x20c   :  { %6912 = vmatpush2.msk.msra.mxu0 %vm3117_vm13, %v7235_v18  ;;  %6977 = vmatpush1.msk.msra.mxu1 %vm3071_vm14, %v7235_v18  ;;  %vm3040_vm13 = vcmp.eq.s32.totalorder %v7428_v24, %v10360_v36  ;;  %vm3344_vm14 = vcmp.eq.s32.totalorder %v9213_v47, %v10360_v36 }
 0x20d   :  { %6913 = vmatprep.subr.msk.mxu0 %vm3110_vm0, %v7235_v18  ;;  %6978 = vmatprep.subr.msk.mxu1 %vm3064_vm1, %v7235_v18  ;;  %vm3039_vm0 = vcmp.eq.s32.totalorder %v7428_v24, %v10370_v31  ;;  %vm3343_vm1 = vcmp.eq.s32.totalorder %v9213_v47, %v10370_v31  ;;  %v784_v24 = vpop.f32.mrf.mxu0 }
 0x20e   :  { %6914 = vmatpush2.msk.msra.mxu0 %vm3109_vm2, %v7235_v18  ;;  %4766 = vmatprep.mubr.f32.mxu0 %v9721_v7  ;;  %vm3032_vm2 = vcmp.eq.s32.totalorder %v7443_v25, %v10360_v36 }
 0x20f   :  { %6979 = vmatpush1.msk.msra.mxu1 %vm3063_vm3, %v7235_v18  ;;  %4767 = vmatmul.mubr.f32.vlgmr.msra.gmra.mxu0 %v9729_v11  ;;  %vm3336_vm3 = vcmp.eq.s32.totalorder %v9229_v48, %v10360_v36 }
 0x210   :  { %6980 = vmatprep.subr.msk.mxu1 %vm3056_vm6, %v7235_v18  ;;  %7032 = vmatprep.subr.msk.mxu0 %vm3360_vm7, %v7235_v18  ;;  %vm3031_vm6 = vcmp.eq.s32.totalorder %v7443_v25, %v10370_v31  ;;  %vm3335_vm7 = vcmp.eq.s32.totalorder %v9229_v48, %v10370_v31  ;;  %v855_v25 = vpop.f32.mrf.mxu1  ;;  %v94_v48 = vld [vmem:[#allocation4] ss:$8 sm:$0xf] }
 0x211   :  { %6981 = vmatpush1.msk.msra.mxu1 %vm3055_vm9, %v7235_v18  ;;  %7033 = vmatpush1.msk.msra.mxu0 %vm3359_vm10, %v7235_v18  ;;  %vm3024_vm9 = vcmp.eq.s32.totalorder %v7458_v26, %v10360_v36  ;;  %vm3328_vm10 = vcmp.eq.s32.totalorder %v9244_v49, %v10360_v36 }
 0x212   :  { %6982 = vmatprep.subr.msk.mxu1 %vm3048_vm11, %v7235_v18  ;;  %7034 = vmatprep.subr.msk.mxu0 %vm3352_vm5, %v7235_v18  ;;  %vm3023_vm11 = vcmp.eq.s32.totalorder %v7458_v26, %v10370_v31  ;;  %vm3327_vm5 = vcmp.eq.s32.totalorder %v9244_v49, %v10370_v31  ;;  %v924_v26 = vpop.f32.mrf.mxu0  ;;  %v95_v49 = vld [vmem:[#allocation4] ss:$8 sm:$0xf0] }
 0x213   :  { %6983 = vmatpush1.msk.msra.mxu1 %vm3047_vm12, %v7235_v18  ;;  %7035 = vmatpush1.msk.msra.mxu0 %vm3351_vm4, %v7235_v18  ;;  %vm3016_vm12 = vcmp.eq.s32.totalorder %v7473_v27, %v10360_v36  ;;  %vm3320_vm4 = vcmp.eq.s32.totalorder %v9259_v50, %v10360_v36 }
 0x214   :  { %6984 = vmatprep.subr.msk.mxu1 %vm3040_vm13, %v7235_v18  ;;  %7036 = vmatprep.subr.msk.mxu0 %vm3344_vm14, %v7235_v18  ;;  %vm3015_vm13 = vcmp.eq.s32.totalorder %v7473_v27, %v10370_v31  ;;  %vm3319_vm14 = vcmp.eq.s32.totalorder %v9259_v50, %v10370_v31  ;;  %v995_v27 = vpop.f32.mrf.mxu1 }
 0x215   :  { %6985 = vmatpush1.msk.msra.mxu1 %vm3039_vm0, %v7235_v18  ;;  %7037 = vmatpush1.msk.msra.mxu0 %vm3343_vm1, %v7235_v18  ;;  %vm3008_vm0 = vcmp.eq.s32.totalorder %v7488_v28, %v10360_v36  ;;  %vm3312_vm1 = vcmp.eq.s32.totalorder %v9274_v51, %v10360_v36 }
 0x216   :  { %6986 = vmatprep.subr.msk.mxu1 %vm3032_vm2, %v7235_v18  ;;  %7038 = vmatprep.subr.msk.mxu0 %vm3336_vm3, %v7235_v18  ;;  %vm3007_vm2 = vcmp.eq.s32.totalorder %v7488_v28, %v10370_v31  ;;  %vm3311_vm3 = vcmp.eq.s32.totalorder %v9274_v51, %v10370_v31  ;;  %v926_v28 = vpop.f32.mrf.mxu0 }
 0x217   :  { %6987 = vmatpush1.msk.msra.mxu1 %vm3031_vm6, %v7235_v18  ;;  %7039 = vmatpush1.msk.msra.mxu0 %vm3335_vm7, %v7235_v18  ;;  %vm3000_vm6 = vcmp.eq.s32.totalorder %v7503_v29, %v10360_v36  ;;  %vm3304_vm7 = vcmp.eq.s32.totalorder %v9289_v52, %v10360_v36 }
 0x218   :  { %6988 = vmatprep.subr.msk.mxu1 %vm3024_vm9, %v7235_v18  ;;  %7040 = vmatprep.subr.msk.mxu0 %vm3328_vm10, %v7235_v18  ;;  %vm2999_vm9 = vcmp.eq.s32.totalorder %v7503_v29, %v10370_v31  ;;  %vm3303_vm10 = vcmp.eq.s32.totalorder %v9289_v52, %v10370_v31  ;;  %v997_v29 = vpop.f32.mrf.mxu1  ;;  %v96_v52 = vor.u32 %v95_v49, %v94_v48 }
 0x219   :  { %6989 = vmatpush1.msk.msra.mxu1 %vm3023_vm11, %v7235_v18  ;;  %7041 = vmatpush1.msk.msra.mxu0 %vm3327_vm5, %v7235_v18  ;;  %vm2992_vm11 = vcmp.eq.s32.totalorder %v7512_v30, %v10360_v36  ;;  %vm3296_vm5 = vcmp.eq.s32.totalorder %v9304_v53, %v10360_v36 }
 0x21a   :  { %6990 = vmatprep.subr.msk.mxu1 %vm3016_vm12, %v7235_v18  ;;  %7042 = vmatprep.subr.msk.mxu0 %vm3320_vm4, %v7235_v18  ;;  %vm2991_vm12 = vcmp.eq.s32.totalorder %v7512_v30, %v10370_v31  ;;  %vm3295_vm4 = vcmp.eq.s32.totalorder %v9304_v53, %v10370_v31  ;;  %v10786_v30 = vpop.f32.mrf.mxu0  ;;  %v7237_v53 = vmov 1966171168  }
 0x21b   :  { %6991 = vmatpush1.msk.msra.mxu1 %vm3015_vm13, %v7235_v18  ;;  %7043 = vmatpush1.msk.msra.mxu0 %vm3319_vm14, %v7235_v18  ;;  %vm2984_vm13 = vcmp.eq.s32.totalorder %v7299_v4, %v10360_v36  ;;  %vm3288_vm14 = vcmp.eq.s32.totalorder %v9319_v54, %v10360_v36 }
 0x21c   :  { %6992 = vmatprep.subr.msk.mxu1 %vm3008_vm0, %v7235_v18  ;;  %7044 = vmatprep.subr.msk.mxu0 %vm3312_vm1, %v7235_v18  ;;  %vm2983_vm0 = vcmp.eq.s32.totalorder %v7299_v4, %v10370_v31  ;;  %vm3287_vm1 = vcmp.eq.s32.totalorder %v9319_v54, %v10370_v31  ;;  %v1013_v54 = vunpack.c.l.s4 %v7237_v53 }
 0x21d   :  { %6993 = vmatpush1.msk.msra.mxu1 %vm3007_vm2, %v7235_v18  ;;  %7045 = vmatpush1.msk.msra.mxu0 %vm3311_vm3, %v7235_v18  ;;  %vm3232_vm2 = vcmp.eq.s32.totalorder %v9427_v62, %v10360_v36  ;;  %vm3280_vm3 = vcmp.eq.s32.totalorder %v9334_v55, %v10360_v36 }
 0x21e   :  { %6994 = vmatprep.subr.msk.mxu1 %vm3000_vm6, %v7235_v18  ;;  %7046 = vmatprep.subr.msk.mxu0 %vm3304_vm7, %v7235_v18  ;;  %vm3231_vm6 = vcmp.eq.s32.totalorder %v9427_v62, %v10370_v31  ;;  %vm3279_vm7 = vcmp.eq.s32.totalorder %v9334_v55, %v10370_v31 }
 0x21f   :  { %6995 = vmatpush1.msk.msra.mxu1 %vm2999_vm9, %v7235_v18  ;;  %7047 = vmatpush1.msk.msra.mxu0 %vm3303_vm10, %v7235_v18  ;;  %vm3224_vm9 = vcmp.eq.s32.totalorder %v9438_v63, %v10360_v36  ;;  %vm3272_vm10 = vcmp.eq.s32.totalorder %v9349_v56, %v10360_v36 }
 0x220   :  { %6996 = vmatprep.subr.msk.mxu1 %vm2992_vm11, %v7235_v18  ;;  %7048 = vmatprep.subr.msk.mxu0 %vm3296_vm5, %v7235_v18  ;;  %vm3223_vm11 = vcmp.eq.s32.totalorder %v9438_v63, %v10370_v31  ;;  %vm3271_vm5 = vcmp.eq.s32.totalorder %v9349_v56, %v10370_v31 }
 0x221   :  { %6997 = vmatpush1.msk.msra.mxu1 %vm2991_vm12, %v7235_v18  ;;  %7049 = vmatpush1.msk.msra.mxu0 %vm3295_vm4, %v7235_v18  ;;  %vm3216_vm12 = vcmp.eq.s32.totalorder %v9466_v2, %v10360_v36  ;;  %vm3264_vm4 = vcmp.eq.s32.totalorder %v9364_v57, %v10360_v36 }
 0x222   :  { %6998 = vmatprep.subr.msk.mxu1 %vm2984_vm13, %v7235_v18  ;;  %7050 = vmatprep.subr.msk.mxu0 %vm3288_vm14, %v7235_v18  ;;  %vm3215_vm13 = vcmp.eq.s32.totalorder %v9466_v2, %v10370_v31  ;;  %vm3263_vm14 = vcmp.eq.s32.totalorder %v9364_v57, %v10370_v31 }
 0x223   :  { %6999 = vmatpush1.msk.msra.mxu1 %vm2983_vm0, %v7235_v18  ;;  %7051 = vmatpush1.msk.msra.mxu0 %vm3287_vm1, %v7235_v18  ;;  %vm3208_vm0 = vcmp.eq.s32.totalorder %v9486_v10, %v10360_v36  ;;  %vm3256_vm1 = vcmp.eq.s32.totalorder %v9379_v58, %v10360_v36 }
 0x224   :  { %7000 = vmatprep.subr.msk.mxu1 %vm3232_vm2, %v7235_v18  ;;  %7052 = vmatprep.subr.msk.mxu0 %vm3280_vm3, %v7235_v18  ;;  %vm3207_vm2 = vcmp.eq.s32.totalorder %v9486_v10, %v10370_v31  ;;  %vm3255_vm3 = vcmp.eq.s32.totalorder %v9379_v58, %v10370_v31  ;;  %v7091_v58 = vtrunc.f32 %v96_v52 }
 0x225   :  { %7001 = vmatpush2.msk.msra.mxu1 %vm3231_vm6, %v7235_v18  ;;  %7053 = vmatpush1.msk.msra.mxu0 %vm3279_vm7, %v7235_v18  ;;  %vm3200_vm6 = vcmp.eq.s32.totalorder %v9504_v13, %v10360_v36  ;;  %vm3248_vm7 = vcmp.eq.s32.totalorder %v9394_v59, %v10360_v36 }
 0x226   :  { %7002 = vmatprep.subr.msk.mxu1 %vm3224_vm9, %v7235_v18  ;;  %7054 = vmatprep.subr.msk.mxu0 %vm3272_vm10, %v7235_v18  ;;  %vm3199_vm9 = vcmp.eq.s32.totalorder %v9504_v13, %v10370_v31  ;;  %vm3247_vm10 = vcmp.eq.s32.totalorder %v9394_v59, %v10370_v31  ;;  %v1014_v59 = vunpack.c.0.s8 %v1013_v54  ;;  %v10806_v63 = vcvt.f32.s32 %v7091_v58 }
 0x227   :  { %7003 = vmatpush2.msk.msra.mxu1 %vm3223_vm11, %v7235_v18  ;;  %7055 = vmatpush1.msk.msra.mxu0 %vm3271_vm5, %v7235_v18  ;;  %vm3440_vm11 = vcmp.eq.s32.totalorder %v9403_v60, %v10360_v36  ;;  %vm3192_vm5 = vcmp.eq.s32.totalorder %v9522_v16, %v10360_v36  ;;  %v1010_v13 = vcombine.low %v924_v26, %v926_v28 }
 0x228   :  { %7004 = vmatprep.subr.msk.mxu1 %vm3216_vm12, %v7235_v18  ;;  %7056 = vmatprep.subr.msk.mxu0 %vm3264_vm4, %v7235_v18  ;;  %vm3240_vm12 = vcmp.eq.s32.totalorder %v9412_v61, %v10360_v36  ;;  %vm3439_vm4 = vcmp.eq.s32.totalorder %v9403_v60, %v10370_v31  ;;  %v6616_v19 = vsel %vm3440_vm11, 1.0, %v10949_v6  ;;  %vm3167_vm11 = vcmp.eq.s32.totalorder %v10959_v45, %v10370_v31 }
 0x229   :  { %7005 = vmatpush2.msk.msra.mxu1 %vm3215_vm13, %v7235_v18  ;;  %7057 = vmatpush1.msk.msra.mxu0 %vm3263_vm14, %v7235_v18  ;;  %vm3191_vm13 = vcmp.eq.s32.totalorder %v9522_v16, %v10370_v31  ;;  %vm3239_vm14 = vcmp.eq.s32.totalorder %v9412_v61, %v10370_v31  ;;  %v6615_v20 = vsel %vm3439_vm4, 1.0, %v10949_v6  ;;  %vm3159_vm4 = vcmp.eq.s32.totalorder %v10962_v12, %v10370_v31 }
 0x22a   :  { %7006 = vmatprep.subr.msk.mxu1 %vm3208_vm0, %v7235_v18  ;;  %7058 = vmatprep.subr.msk.mxu0 %vm3256_vm1, %v7235_v18  ;;  %vm3184_vm0 = vcmp.eq.s32.totalorder %v9540_v1, %v10360_v36  ;;  %vm3183_vm1 = vcmp.eq.s32.totalorder %v9540_v1, %v10370_v31  ;;  %v10811_v2 = vsub.s32 %v1014_v59, %v7299_v4  ;;  %v104_v6 = vstv %s10804_s11 }
 0x22b   :  { %7007 = vmatpush2.msk.msra.mxu1 %vm3207_vm2, %v7235_v18  ;;  %7059 = vmatpush1.msk.msra.mxu0 %vm3255_vm3, %v7235_v18  ;;  %vm3176_vm2 = vcmp.eq.s32.totalorder %v9558_v33, %v10360_v36  ;;  %vm3432_vm3 = vcmp.eq.s32.totalorder %v9449_v0, %v10360_v36  ;;  %v1011_v16 = vcombine.low %v995_v27, %v997_v29 }
 0x22c   :  { %7008 = vmatprep.subr.msk.mxu1 %vm3200_vm6, %v7235_v18  ;;  %7060 = vmatprep.subr.msk.mxu0 %vm3248_vm7, %v7235_v18  ;;  %vm3175_vm6 = vcmp.eq.s32.totalorder %v9558_v33, %v10370_v31  ;;  %vm3431_vm7 = vcmp.eq.s32.totalorder %v9449_v0, %v10370_v31  ;;  %v1008_v0 = vcombine.low %v782_v22, %v784_v24 }
 0x22d   :  { %7009 = vmatpush2.msk.msra.mxu1 %vm3199_vm9, %v7235_v18  ;;  %7061 = vmatpush1.msk.msra.mxu0 %vm3247_vm10, %v7235_v18  ;;  %vm3168_vm9 = vcmp.eq.s32.totalorder %v10959_v45, %v10360_v36  ;;  %vm3424_vm10 = vcmp.eq.s32.totalorder %v9469_v3, %v10360_v36 }
 0x22e   :  { %7010 = vmatprep.subr.msk.mxu1 %vm3192_vm5, %v7235_v18  ;;  %7062 = vmatprep.subr.msk.mxu0 %vm3240_vm12, %v7235_v18  ;;  %vm3423_vm5 = vcmp.eq.s32.totalorder %v9469_v3, %v10370_v31  ;;  %vm3416_vm12 = vcmp.eq.s32.totalorder %v10950_v43, %v10360_v36  ;;  %v1009_v3 = vcombine.low %v853_v23, %v855_v25 }
 0x22f   :  { %7011 = vmatpush2.msk.msra.mxu1 %vm3191_vm13, %v7235_v18  ;;  %7063 = vmatpush1.msk.msra.mxu0 %vm3239_vm14, %v7235_v18  ;;  %vm3415_vm13 = vcmp.eq.s32.totalorder %v10950_v43, %v10370_v31  ;;  %vm3152_vm14 = vcmp.eq.s32.totalorder %v10963_v14, %v10360_v36  ;;  %v1018_v43 = vrot.slane %v1008_v0, %v10811_v2 }
 0x230   :  { %7012 = vmatprep.subr.msk.mxu1 %vm3184_vm0, %v7235_v18  ;;  %7064 = vmatprep.subr.msk.mxu0 %vm4393_vm8, %v6616_v19  ;;  %vm3408_vm0 = vcmp.eq.s32.totalorder %v10951_v5, %v10360_v36 }
 0x231   :  { %7013 = vmatpush2.msk.msra.mxu1 %vm3183_vm1, %v7235_v18  ;;  %7065 = vmatpush2.msk.msra.mxu0 %vm4393_vm8, %v6615_v20  ;;  %vm3160_vm8 = vcmp.eq.s32.totalorder %v10962_v12, %v10360_v36  ;;  %vm3151_vm1 = vcmp.eq.s32.totalorder %v10963_v14, %v10370_v31  ;;  %v1039_v12 = vrot.slane %v1011_v16, %v10811_v2 }
 0x232   :  { %7014 = vmatprep.subr.msk.mxu1 %vm3176_vm2, %v7235_v18  ;;  %7066 = vmatprep.subr.msk.mxu0 %vm3432_vm3, %v7235_v18  ;;  %vm3407_vm2 = vcmp.eq.s32.totalorder %v10951_v5, %v10370_v31  ;;  %vm3144_vm3 = vcmp.eq.s32.totalorder %v10964_v42, %v10360_v36  ;;  %v1025_v5 = vrot.slane %v1009_v3, %v10811_v2 }
 0x233   :  { %7015 = vmatpush2.msk.msra.mxu1 %vm3175_vm6, %v7235_v18  ;;  %7067 = vmatpush2.msk.msra.mxu0 %vm3431_vm7, %v7235_v18  ;;  %vm3400_vm6 = vcmp.eq.s32.totalorder %v10952_v8, %v10360_v36  ;;  %vm3143_vm7 = vcmp.eq.s32.totalorder %v10964_v42, %v10370_v31 }
 0x234   :  { %7016 = vmatprep.subr.msk.mxu1 %vm3168_vm9, %v7235_v18  ;;  %7068 = vmatprep.subr.msk.mxu0 %vm3424_vm10, %v7235_v18  ;;  %vm3399_vm9 = vcmp.eq.s32.totalorder %v10952_v8, %v10370_v31  ;;  %vm3136_vm10 = vcmp.eq.s32.totalorder %v10965_v9, %v10360_v36 }
 0x235   :  { %7017 = vmatpush2.msk.msra.mxu1 %vm3167_vm11, %v7235_v18  ;;  %7069 = vmatpush2.msk.msra.mxu0 %vm3423_vm5, %v7235_v18  ;;  %vm3392_vm11 = vcmp.eq.s32.totalorder %v10953_v37, %v10360_v36  ;;  %vm3135_vm5 = vcmp.eq.s32.totalorder %v10965_v9, %v10370_v31 }
 0x236   :  { %7018 = vmatprep.subr.msk.mxu1 %vm3160_vm8, %v7235_v18  ;;  %7070 = vmatprep.subr.msk.mxu0 %vm3416_vm12, %v7235_v18  ;;  %vm3391_vm8 = vcmp.eq.s32.totalorder %v10953_v37, %v10370_v31  ;;  %vm3128_vm12 = vcmp.eq.s32.totalorder %v10966_v15, %v10360_v36 }
 0x237   :  { %7019 = vmatpush2.msk.msra.mxu1 %vm3159_vm4, %v7235_v18  ;;  %7071 = vmatpush2.msk.msra.mxu0 %vm3415_vm13, %v7235_v18  ;;  %vm3384_vm4 = vcmp.eq.s32.totalorder %v10968_v21, %v10360_v36  ;;  %vm3127_vm13 = vcmp.eq.s32.totalorder %v10966_v15, %v10370_v31 }
 0x238   :  { %7020 = vmatprep.subr.msk.mxu1 %vm3152_vm14, %v7235_v18  ;;  %7072 = vmatprep.subr.msk.mxu0 %vm3408_vm0, %v7235_v18  ;;  %vm3383_vm14 = vcmp.eq.s32.totalorder %v10968_v21, %v10370_v31  ;;  %vm3120_vm0 = vcmp.eq.s32.totalorder %v10967_v17, %v10360_v36  ;;  %v108_v21 = vstv %s10808_s12 }
 0x239   :  { %7021 = vmatpush2.msk.msra.mxu1 %vm3151_vm1, %v7235_v18  ;;  %7073 = vmatpush2.msk.msra.mxu0 %vm3407_vm2, %v7235_v18  ;;  %vm3376_vm1 = vcmp.eq.s32.totalorder %v10955_v32, %v10360_v36  ;;  %vm3119_vm2 = vcmp.eq.s32.totalorder %v10967_v17, %v10370_v31 }
 0x23a   :  { %7022 = vmatprep.subr.msk.mxu1 %vm3144_vm3, %v7235_v18  ;;  %7074 = vmatprep.subr.msk.mxu0 %vm3400_vm6, %v7235_v18  ;;  %vm3375_vm3 = vcmp.eq.s32.totalorder %v10955_v32, %v10370_v31  ;;  %vm3112_vm6 = vcmp.eq.s32.totalorder %v7627_v40, %v10360_v36 }
 0x23b   :  { %7023 = vmatpush2.msk.msra.mxu1 %vm3143_vm7, %v7235_v18  ;;  %7075 = vmatpush2.msk.msra.mxu0 %vm3399_vm9, %v7235_v18  ;;  %vm3368_vm7 = vcmp.eq.s32.totalorder %v9597_v34, %v10360_v36  ;;  %vm3111_vm9 = vcmp.eq.s32.totalorder %v7627_v40, %v10370_v31  ;;  %v1032_v36 = vrot.slane %v1010_v13, %v10811_v2 }
 0x23c   :  { %7024 = vmatprep.subr.msk.mxu1 %vm3136_vm10, %v7235_v18  ;;  %7076 = vmatprep.subr.msk.mxu0 %vm3392_vm11, %v7235_v18  ;;  %vm3367_vm10 = vcmp.eq.s32.totalorder %v9597_v34, %v10370_v31  ;;  %v10788_v31 = vpop.f32.mrf.mxu1  ;;  %vm102_vm11 = vcmp.eq.s32.totalorder %v10806_v63, 1 }
 0x23d   :  { %7025 = vmatpush2.msk.msra.mxu1 %vm3135_vm5, %v7235_v18  ;;  %7077 = vmatpush2.msk.msra.mxu0 %vm3391_vm8, %v7235_v18  ;;  %vm106_vm5 = vcmp.eq.s32.totalorder %v10806_v63, 2  ;;  %v1041_v28 = vcombine.low %v1032_v36, %v1039_v12  ;;  %vm110_vm8 = vcmp.eq.s32.totalorder %v10806_v63, 3 }
 0x23e   :  { %7026 = vmatprep.subr.msk.mxu1 %vm3128_vm12, %v7235_v18  ;;  %7078 = vmatprep.subr.msk.mxu0 %vm3384_vm4, %v7235_v18  ;;  %v10792_v32 = vpop.f32.mrf.mxu1 }
 0x23f   :  { %7027 = vmatpush2.msk.msra.mxu1 %vm3127_vm13, %v7235_v18  ;;  %7079 = vmatpush2.msk.msra.mxu0 %vm3383_vm14, %v7235_v18  ;;  %v1931_v8 = vcombine.low %v10788_v31, %v10792_v32 }
 0x240   :  { %7028 = vmatprep.subr.msk.mxu1 %vm3120_vm0, %v7235_v18  ;;  %7080 = vmatprep.subr.msk.mxu0 %vm3376_vm1, %v7235_v18  ;;  %v1917_v39 = vpop.f32.mrf.mxu1 }
 0x241   :  { %7029 = vmatpush2.msk.msra.mxu1 %vm3119_vm2, %v7235_v18  ;;  %7081 = vmatpush2.msk.msra.mxu0 %vm3375_vm3, %v7235_v18  ;;  %v1947_v26 = vrot.slane %v1931_v8, %v10811_v2 }
 0x242   :  { %7030 = vmatprep.subr.msk.mxu1 %vm3112_vm6, %v7235_v18  ;;  %7082 = vmatprep.subr.msk.mxu0 %vm3368_vm7, %v7235_v18  ;;  %v1919_v41 = vpop.f32.mrf.mxu1 }
 0x243   :  { %7031 = vmatpush2.msk.msra.mxu1 %vm3111_vm9, %v7235_v18  ;;  %4908 = vmatprep.mubr.f32.mxu1 %v9721_v7  ;;  %v1933_v1 = vcombine.low %v1917_v39, %v1919_v41 }
 0x244   :  { %7083 = vmatpush2.msk.msra.mxu0 %vm3367_vm10, %v7235_v18  ;;  %7084 = vmatprep.mubr.msk.f32.mxu0 %vm4390_vm15, %v9644_v35  ;;  %v10790_v18 = vpop.f32.mrf.mxu0  ;;  %v10796_v35 = vpop.f32.mrf.mxu1  ;;  %vm98_vm15 = vcmp.eq.s32.totalorder %v10806_v63, 0 }
 0x245   :  { %4909 = vmatmul.mubr.f32.vlgmr.msra.gmra.mxu1 %v9729_v11  ;;  %4980 = vmatmul.mubr.f32.vlgmr.msra.gmra.mxu0 %v9652_v44  ;;  %v100_v11 = vstv %s10802_s3  ;;  %v1930_v4 = vcombine.low %v10786_v30, %v10790_v18  ;;  %v1961_v15 = vrot.slane %v1933_v1, %v10811_v2  ;;  %v1040_v18 = vcombine.low %v1018_v43, %v1025_v5  ;;  %v5047_v1 = vld [vmem:[#allocation4 + $0x5] ss:$8 sm:$0xf] }
 0x246   :  { %v1846_v33 = vpop.f32.mrf.mxu0  ;;  %v10800_v46 = vpop.f32.mrf.mxu1  ;;  %v101_v24 = vsel %vm98_vm15, %v100_v11, 0.0 }
 0x247   :  { %v2853_v19 = vcombine.low %v10796_v35, %v10800_v46  ;;  %v1940_v25 = vrot.slane %v1930_v4, %v10811_v2  ;;  %v105_v41 = vsel %vm102_vm11, %v104_v6, %v101_v24  ;;  %v112_v46 = vstv %s10818_s13  ;;  %v5048_v6 = vld [vmem:[#allocation4 + $0x5] ss:$8 sm:$0xf0]  ;;  %v5072_v24 = vld [vmem:[#allocation4 + $0x40] ss:$8 sm:$0xf0] }
 0x248   :  { %v1848_v40 = vpop.f32.mrf.mxu0  ;;  %v2839_v50 = vpop.f32.mrf.mxu1  ;;  %v1048_v54 = vrot.slane %v1040_v18, %v10811_v2 }
 0x249   :  { %v1932_v34 = vcombine.low %v1846_v33, %v1848_v40  ;;  %v2869_v39 = vrot.slane %v2853_v19, %v10811_v2 }
 0x24a   :  { %v10794_v44 = vpop.f32.mrf.mxu0  ;;  %v2841_v55 = vpop.f32.mrf.mxu1 }
 0x24b   :  { %v2855_v42 = vcombine.low %v2839_v50, %v2841_v55  ;;  %v1954_v9 = vrot.slane %v1932_v34, %v10811_v2  ;;  %v1055_v50 = vrot.slane %v1041_v28, %v10811_v2  ;;  %v109_v55 = vsel %vm106_vm5, %v108_v21, %v105_v41 }
 0x24c   :  { %v10798_v38 = vpop.f32.mrf.mxu0  ;;  %v4555_v57 = vpop.f32.mrf.mxu1 }
 0x24d   :  { %v2852_v17 = vcombine.low %v10794_v44, %v10798_v38  ;;  %v2883_v30 = vrot.slane %v2855_v42, %v10811_v2  ;;  %v1963_v32 = vcombine.low %v1954_v9, %v1961_v15  ;;  %v5063_v42 = vld [vmem:[#allocation4 + $0x7] ss:$8 sm:$0xf]  ;;  %v5050_v9 = vstv %s10852_s14 }
 0x24e   :  { %v2768_v47 = vpop.f32.mrf.mxu0  ;;  %v4557_v61 = vpop.f32.mrf.mxu1  ;;  %v5064_v15 = vld [vmem:[#allocation4 + $0x7] ss:$8 sm:$0xf0] }
 0x24f   :  { %v2862_v33 = vrot.slane %v2852_v17, %v10811_v2  ;;  %v5065_v28 = vor.u32 %v5064_v15, %v5063_v42 }
 0x250   :  { %v2770_v51 = vpop.f32.mrf.mxu0 }
 0x251   :  { %v2854_v14 = vcombine.low %v2768_v47, %v2770_v51  ;;  %v1962_v47 = vcombine.low %v1940_v25, %v1947_v26 }
 0x253   :  { %v2876_v29 = vrot.slane %v2854_v14, %v10811_v2  ;;  %v1970_v3 = vrot.slane %v1962_v47, %v10811_v2  ;;  %v5049_v14 = vor.u32 %v5048_v6, %v5047_v1  ;;  %v5096_v47 = vld [vmem:[#allocation4 + $0x43] ss:$8 sm:$0xf0] }
 0x255   :  { %v2885_v51 = vcombine.low %v2876_v29, %v2883_v30  ;;  %v5079_v29 = vld [vmem:[#allocation4 + $0x41] ss:$8 sm:$0xf]  ;;  %v5066_v30 = vstv %s10862_s16 }
 0x257   :  { %v4484_v56 = vpop.f32.mrf.mxu0  ;;  %v2899_v13 = vrot.slane %v2885_v51, %v10811_v2  ;;  %v5090_v51 = vstv %s7089_s19 }
 0x258   :  { %v4556_v44 = vadd.f32 %v4555_v57, %v4484_v56  ;;  %v1977_v56 = vrot.slane %v1963_v32, %v10811_v2  ;;  %v2884_v57 = vcombine.low %v2862_v33, %v2869_v39  ;;  %v5074_v39 = vstv %s10867_s17 }
 0x259   :  { %v4486_v60 = vpop.f32.mrf.mxu0 }
 0x25a   :  { %v4558_v31 = vadd.f32 %v4557_v61, %v4486_v60  ;;  %v1978_v11 = vcombine.low %v1970_v3, %v1977_v56  ;;  %v2892_v43 = vrot.slane %v2884_v57, %v10811_v2 }
 0x25c   :  { %v4994_v52 = vcombine.low %v4556_v44, %v4558_v31  ;;  %v2900_v63 = vcombine.low %v2892_v43, %v2899_v13  ;;  %v5080_v31 = vld [vmem:[#allocation4 + $0x41] ss:$8 sm:$0xf0]  ;;  %v5067_v44 = vmul.f32 %v5066_v30, %v5065_v28 }
 0x25e   :  { %v5004_v16 = vrot.slane %v4994_v52, %v10811_v2 }
 0x28d   :  { %v4697_v62 = vpop.f32.mrf.mxu0  ;;  %v4626_v10 = vpop.f32.mrf.mxu1 }
 0x28e   :  { %v4698_v22 = vadd.f32 %v4697_v62, %v4626_v10  ;;  %v1056_v10 = vcombine.low %v1048_v54, %v1055_v50 }
 0x28f   :  { %v4699_v7 = vpop.f32.mrf.mxu0  ;;  %v4628_v37 = vpop.f32.mrf.mxu1 }
 0x290   :  { %v4700_v23 = vadd.f32 %v4699_v7, %v4628_v37  ;;  %v113_v7 = vsel %vm110_vm8, %v112_v46, %v109_v55  ;;  %v5055_v37 = vld [vmem:[#allocation4 + $0x6] ss:$8 sm:$0xf]  ;;  %v5095_v46 = vld [vmem:[#allocation4 + $0x43] ss:$8 sm:$0xf]  ;;  %v5098_v55 = vstv %s7090_s20 }
 0x291   :  { %v1058_v36 = vadd.f32 %v1056_v10, %v113_v7  ;;  %v5097_v54 = vor.u32 %v5096_v47, %v5095_v46  ;;  %v5107_v10 = vstv %s10894_s7 }
 0x292   :  { %v4995_v35 = vcombine.low %v4698_v22, %v4700_v23  ;;  %v5071_v22 = vld [vmem:[#allocation4 + $0x40] ss:$8 sm:$0xf]  ;;  %v5058_v23 = vstv %s10856_s15 }
 0x293   :  { %v1980_v17 = vadd.f32 %v1978_v11, %v1058_v36  ;;  %v5073_v33 = vor.u32 %v5072_v24, %v5071_v22 }
 0x294   :  { %v5011_v60 = vrot.slane %v4995_v35, %v10811_v2  ;;  %v5081_v35 = vor.u32 %v5080_v31, %v5079_v29 }
 0x295   :  { %v2902_v25 = vadd.f32 %v2900_v63, %v1980_v17 }
 0x296   :  { %v5026_v5 = vcombine.low %v5004_v16, %v5011_v60 }
 0x298   :  { %v5034_v19 = vrot.slane %v5026_v5, %v10811_v2 }
 0x2c3   :  { %v4839_v20 = vpop.f32.mrf.mxu1 }
 0x2c5   :  { %v4841_v40 = vpop.f32.mrf.mxu1 }
 0x2cf   :  { %v4768_v45 = vpop.f32.mrf.mxu0 }
 0x2d0   :  { %v4840_v53 = vadd.f32 %v4839_v20, %v4768_v45  ;;  %v5056_v45 = vld [vmem:[#allocation4 + $0x6] ss:$8 sm:$0xf0] }
 0x2d1   :  { %v4770_v27 = vpop.f32.mrf.mxu0  ;;  %v5057_v21 = vor.u32 %v5056_v45, %v5055_v37 }
 0x2d2   :  { %v4842_v38 = vadd.f32 %v4841_v40, %v4770_v27  ;;  %v5051_v27 = vmul.f32 %v5050_v9, %v5049_v14  ;;  %v5088_v40 = vld [vmem:[#allocation4 + $0x42] ss:$8 sm:$0xf0] }
 0x2d3   :  { %v5059_v32 = vmul.f32 %v5058_v23, %v5057_v21 }
 0x2d4   :  { %v4996_v61 = vcombine.low %v4840_v53, %v4842_v38  ;;  %v5082_v38 = vstv %s10870_s18 }
 0x2d5   :  { %v5083_v53 = vmul.f32 %v5082_v38, %v5081_v35 }
 0x2d6   :  { %v5018_v4 = vrot.slane %v4996_v61, %v10811_v2  ;;  %v5099_v61 = vmul.f32 %v5098_v55, %v5097_v54 }
 0x305   :  { %v4910_v48 = vpop.f32.mrf.mxu1  ;;  %v4981_v49 = vpop.f32.mrf.mxu0 }
 0x306   :  { %v4982_v62 = vadd.f32 %v4981_v49, %v4910_v48  ;;  %v5075_v49 = vmul.f32 %v5074_v39, %v5073_v33 }
 0x307   :  { %v4912_v58 = vpop.f32.mrf.mxu1  ;;  %v4983_v59 = vpop.f32.mrf.mxu0 }
 0x308   :  { %v4984_v0 = vadd.f32 %v4983_v59, %v4912_v58  ;;  %v5101_v58 = vld [vmem:[#allocation8] sm:$0xff]  ;;  %v5103_v59 = vstv %s10893_s6 }
 0x30a   :  { %v4997_v34 = vcombine.low %v4982_v62, %v4984_v0  ;;  %v5104_v0 = vmul.f32 %v5103_v59, %v5101_v58 }
 0x30c   :  { %v5025_v8 = vrot.slane %v4997_v34, %v10811_v2 }
 0x30e   :  { %v5027_v12 = vcombine.low %v5018_v4, %v5025_v8 }
 0x310   :  { %v5041_v20 = vrot.slane %v5027_v12, %v10811_v2  ;;  %v5087_v2 = vld [vmem:[#allocation4 + $0x42] ss:$8 sm:$0xf] }
 0x311   :  { %v5089_v50 = vor.u32 %v5088_v40, %v5087_v2 }
 0x312   :  { %v5042_v26 = vcombine.low %v5034_v19, %v5041_v20 }
 0x313   :  { %v5091_v57 = vmul.f32 %v5090_v51, %v5089_v50 }
 0x314   :  { %v5044_v18 = vadd.f32 %v5042_v26, %v2902_v25 }
 0x316   :  { %v5052_v41 = vadd.f32 %v5051_v27, %v5044_v18 }
 0x318   :  { %v5060_v48 = vadd.f32 %v5059_v32, %v5052_v41 }
 0x31a   :  { %v5068_v52 = vadd.f32 %v5067_v44, %v5060_v48 }
 0x31c   :  { %v5076_v56 = vadd.f32 %v5075_v49, %v5068_v52 }
 0x31e   :  { %v5084_v60 = vadd.f32 %v5083_v53, %v5076_v56 }
 0x320   :  { %v5092_v62 = vadd.f32 %v5091_v57, %v5084_v60 }
 0x322   :  { %v5100_v3 = vadd.f32 %v5099_v61, %v5092_v62 }
 0x324   :  { %v5105_v13 = vadd.f32 %v5104_v0, %v5100_v3 }
 0x326   :  { %v5108_v16 = vadd.f32 %v5107_v10, %v5105_v13 }
 0x328   :  { %5109 = vst [vmem:[#allocation14] sm:$0xff] %v5108_v16 }
 0x329   :  { %7207 = shalt.err (!%p7204_p1)
}
 0x32a   :  { %5119 = dma.vmem_to_hbm [thread:$0]  %s5117_s0, 128, %s10895_s8, [#allocation6]  }
 0x32b   :  { %7226 = dma.done.wait [#allocation6], 128  }
 0x32c   :  { %7227 = vsyncadd [#allocation6], 4294967168 }
 0x32d   :  { %5123 = vsyncpa [#allocation5], 1 }
 0x32e   :  { %5124 = vsyncpa [#allocation9], 1 }
 0x32f   :  { %5125 = vsyncpa [#allocation6], 1 }
 0x330   :  { %5126 = vsyncpa [#allocation7], 1 }
 0x331   :  { %5127 = vsyncpa [#allocation13], 1 }

</bundles_post_ra>
